<compile_context>
chip_gen: v5e
topology: v5e:2x2
jax: 0.10.0
libtpu: 0.0.40
codegen_flags: <defaults>
</compile_context>

<pallas_src>
import math

import jax
import jax.numpy as jnp
import numpy as np
from jax import lax
from jax.experimental import pallas as pl
from jax.experimental.pallas import tpu as pltpu

NEG_SLOPE = 0.01      # nn.LeakyReLU default negative_slope
ROW_TILE = 1024       # rows per grid step (amortizes ~0.35us/step overhead)
NODE_CHUNK = 128      # in-kernel one-hot row chunk, node path (K = 200)
EDGE_CHUNK = 64       # in-kernel one-hot row chunk, edge path (K = 300/attr)


def _round_up(x, m):
    return ((x + m - 1) // m) * m


def _leaky(y):
    return jnp.where(y > 0, y, NEG_SLOPE * y)


# ---------------------------------------------------------------------------
# Node path: fused [Act_Embedder gather -> Linear -> LeakyReLU]
# (Linear already folded into the table, so it's a single gather-matmul.)
# ---------------------------------------------------------------------------
def _node_kernel(idx_ref, tab_ref, b_ref, o_ref):
    tm = idx_ref.shape[0]
    vocab = tab_ref.shape[0]
    n_chunks = tm // NODE_CHUNK

    def body(c, carry):
        r0 = pl.multiple_of(c * NODE_CHUNK, NODE_CHUNK)
        ids = idx_ref[pl.ds(r0, NODE_CHUNK), :]                        # (C, 1) int32
        iota = lax.broadcasted_iota(jnp.int32, (NODE_CHUNK, vocab), 1)
        onehot = (ids == iota).astype(jnp.float32)                     # exact gather
        y = jnp.dot(onehot, tab_ref[...],
                    preferred_element_type=jnp.float32) + b_ref[...]
        o_ref[pl.ds(r0, NODE_CHUNK), :] = _leaky(y).astype(o_ref.dtype)
        return carry

    lax.fori_loop(0, n_chunks, body, 0, unroll=True)


def node_transform(idx, tab, b, *, tm):
    n = idx.shape[0]
    vocab, h = tab.shape
    return pl.pallas_call(
        _node_kernel,
        out_shape=jax.ShapeDtypeStruct((n, h), jnp.float32),
        grid=(pl.cdiv(n, tm),),
        in_specs=[
            pl.BlockSpec((tm, 1), lambda i: (i, 0)),       # streamed node ids
            pl.BlockSpec((vocab, h), lambda i: (0, 0)),    # resident folded table
            pl.BlockSpec((1, h), lambda i: (0, 0)),        # resident bias
        ],
        out_specs=pl.BlockSpec((tm, h), lambda i: (i, 0)),
        compiler_params=pltpu.CompilerParams(dimension_semantics=("parallel",)),
    )(idx, tab, b)


# ---------------------------------------------------------------------------
# Edge path: fused [Attr_Embedder gathers + PositionalEncoding + Linear
#                   -> LeakyReLU], with the Linear folded into the tables:
#   y = sum_a onehot_a @ (E_a @ W_a)  +  pe @ (sum_a W_a)  +  b
# ---------------------------------------------------------------------------
def _make_edge_kernel(num_attr, vocab, h):
    if num_attr > 0:
        def kernel(attr_ref, tab_ref, wpe_ref, freq_ref, phase_ref, b_ref, o_ref):
            te = attr_ref.shape[0]
            edge_dim = attr_ref.shape[1]
            attr0 = edge_dim - num_attr        # first categorical column (== 1)
            n_chunks = te // EDGE_CHUNK

            def body(c, carry):
                r0 = pl.multiple_of(c * EDGE_CHUNK, EDGE_CHUNK)
                blk = attr_ref[pl.ds(r0, EDGE_CHUNK), :]               # (C, edge_dim) f32
                # PositionalEncoding: cat([sin(t*f), cos(t*f)]) == sin(t*[f,f] + [0, pi/2])
                pe = jnp.sin(blk[:, 0:1] * freq_ref[...] + phase_ref[...])   # (C, h)
                y = jnp.dot(pe, wpe_ref[...],
                            preferred_element_type=jnp.float32) + b_ref[...]
                iota = lax.broadcasted_iota(jnp.int32, (EDGE_CHUNK, vocab), 1)
                for a in range(num_attr):      # K-chunks of the stacked folded table
                    ids = blk[:, attr0 + a:attr0 + a + 1].astype(jnp.int32)  # (C, 1)
                    onehot = (ids == iota).astype(jnp.float32)               # (C, vocab)
                    y = y + jnp.dot(onehot, tab_ref[a],
                                    preferred_element_type=jnp.float32)
                o_ref[pl.ds(r0, EDGE_CHUNK), :] = _leaky(y).astype(o_ref.dtype)
                return carry

            lax.fori_loop(0, n_chunks, body, 0, unroll=True)
        return kernel

    def kernel(attr_ref, w_ref, freq_ref, phase_ref, b_ref, o_ref):
        te = attr_ref.shape[0]
        n_chunks = te // EDGE_CHUNK

        def body(c, carry):
            r0 = pl.multiple_of(c * EDGE_CHUNK, EDGE_CHUNK)
            t = attr_ref[pl.ds(r0, EDGE_CHUNK), :]                     # (C, 1)
            pe = jnp.sin(t * freq_ref[...] + phase_ref[...])
            y = jnp.dot(pe, w_ref[...], preferred_element_type=jnp.float32) + b_ref[...]
            o_ref[pl.ds(r0, EDGE_CHUNK), :] = _leaky(y).astype(o_ref.dtype)
            return carry

        lax.fori_loop(0, n_chunks, body, 0, unroll=True)
    return kernel


def edge_transform(edge_attr, tab, wpe, freq, phase, b, *, te, num_attr):
    e, edge_dim = edge_attr.shape
    h = wpe.shape[1]
    vocab = tab.shape[1] if num_attr > 0 else 0
    kernel = _make_edge_kernel(num_attr, vocab, h)
    row_spec = pl.BlockSpec((te, edge_dim), lambda i: (i, 0))   # ts + ids, one block
    if num_attr > 0:
        in_specs = [
            row_spec,
            pl.BlockSpec((num_attr, vocab, h), lambda i: (0, 0, 0)),  # folded tables
            pl.BlockSpec((h, h), lambda i: (0, 0)),                   # W_pe = sum_a W_a
            pl.BlockSpec((1, h), lambda i: (0, 0)),                   # PE freq
            pl.BlockSpec((1, h), lambda i: (0, 0)),                   # PE phase
            pl.BlockSpec((1, h), lambda i: (0, 0)),                   # bias
        ]
        args = (edge_attr, tab, wpe, freq, phase, b)
    else:
        in_specs = [
            row_spec,
            pl.BlockSpec((h, h), lambda i: (0, 0)),                   # Linear weight
            pl.BlockSpec((1, h), lambda i: (0, 0)),
            pl.BlockSpec((1, h), lambda i: (0, 0)),
            pl.BlockSpec((1, h), lambda i: (0, 0)),
        ]
        args = (edge_attr, wpe, freq, phase, b)
    return pl.pallas_call(
        kernel,
        out_shape=jax.ShapeDtypeStruct((e, h), jnp.float32),
        grid=(pl.cdiv(e, te),),
        in_specs=in_specs,
        out_specs=pl.BlockSpec((te, h), lambda i: (i, 0)),
        compiler_params=pltpu.CompilerParams(dimension_semantics=("parallel",)),
    )(*args)


# ---------------------------------------------------------------------------
# Module port (forward only, synthetic params)
# ---------------------------------------------------------------------------
class PreprocessLayersPallas:
    """Forward-only JAX/Pallas port of MuGAD_ PreprocessLayers."""

    def __init__(self, edge_dim, hidden_dim, key):
        assert hidden_dim % 2 == 0
        self.hidden_dim = hidden_dim
        self.num_attr = edge_dim - 1
        h = hidden_dim
        ks = jax.random.split(key, 6)
        # ---- raw (torch-equivalent) parameters ----
        self.act_emb = jax.random.normal(ks[0], (200, h), jnp.float32)     # nn.Embedding(200,H)
        self.attr_emb = (jax.random.normal(ks[1], (self.num_attr, 300, h), jnp.float32)
                         if self.num_attr > 0 else None)                   # nn.Embedding(300,H) x A
        self.node_w = jax.random.normal(ks[2], (h, h), jnp.float32) / math.sqrt(h)
        self.node_b = jax.random.normal(ks[3], (1, h), jnp.float32) * 0.01
        d_in = self.num_attr * h if self.num_attr > 0 else h
        self.edge_w = jax.random.normal(ks[4], (d_in, h), jnp.float32) / math.sqrt(d_in)
        self.edge_b = jax.random.normal(ks[5], (1, h), jnp.float32) * 0.01

        # ---- fold the Linear layers into the embedding tables (perf item 1/2) ----
        self.node_tab = self.act_emb @ self.node_w                          # (200, h)
        if self.num_attr > 0:
            w_blocks = self.edge_w.reshape(self.num_attr, h, h)             # W_a
            self.edge_tab = jnp.stack(
                [self.attr_emb[a] @ w_blocks[a] for a in range(self.num_attr)], axis=0)
            self.edge_wpe = w_blocks.sum(axis=0)                            # (h, h)
        else:
            self.edge_tab = None
            self.edge_wpe = self.edge_w

        # torch_geometric PositionalEncoding(H): freq = 1e-4 ** linspace(0,1,H//2)
        half = h // 2
        freq = (1e-4) ** jnp.linspace(0.0, 1.0, half)
        self.freq = jnp.concatenate([freq, freq]).reshape(1, h).astype(jnp.float32)
        self.phase = jnp.concatenate(
            [jnp.zeros((half,)), jnp.full((half,), jnp.pi / 2)]
        ).reshape(1, h).astype(jnp.float32)

        # jit the whole forward so the two pallas_calls + glue pipeline together
        self._fwd = jax.jit(self._forward)

    def _forward(self, x, edge_attr):
        # ---- node side ----
        x_idx = x.reshape(-1, 1).astype(jnp.int32)
        n = x_idx.shape[0]
        tm = min(ROW_TILE, _round_up(max(n, 1), NODE_CHUNK))
        x_emb = node_transform(x_idx, self.node_tab, self.node_b, tm=tm)

        # ---- edge side ----
        edge_attr = edge_attr.astype(jnp.float32)
        e = edge_attr.shape[0]
        te = min(ROW_TILE, _round_up(max(e, 1), EDGE_CHUNK))
        edge_emb = edge_transform(edge_attr, self.edge_tab, self.edge_wpe,
                                  self.freq, self.phase, self.edge_b,
                                  te=te, num_attr=self.num_attr)
        return x_emb, edge_emb

    def __call__(self, x, edge_attr):
        return self._fwd(x, edge_attr)


# ---------------------------------------------------------------------------
# Main: deterministic inputs, run, verify against a pure-JAX reference
# ---------------------------------------------------------------------------
if __name__ == "__main__":
    HIDDEN = 32
    EDGE_DIM = 3           # -> num_attr = 2
    N_NODES = 50           # deliberately NOT multiples of the tile sizes
    N_EDGES = 37
    NUM_ATTR = EDGE_DIM - 1

    key = jax.random.PRNGKey(0)
    k_params, k_x, k_t, k_a = jax.random.split(key, 4)

    model = PreprocessLayersPallas(EDGE_DIM, HIDDEN, k_params)

    # x: node activity ids (any shape; forward flattens it)
    x = jax.random.randint(k_x, (N_NODES, 1), 0, 200, dtype=jnp.int32)
    # edge_attr: column 0 = continuous timestamp (PE input), last num_attr
    # columns = categorical attribute ids in [0, 300)
    t_col = jax.random.uniform(k_t, (N_EDGES, 1), jnp.float32, 0.0, 10.0)
    attr_cols = jax.random.randint(k_a, (N_EDGES, NUM_ATTR), 0, 300).astype(jnp.float32)
    edge_attr = jnp.concatenate([t_col, attr_cols], axis=1)

    x_emb, edge_emb = model(x, edge_attr)
    jax.block_until_ready((x_emb, edge_emb))

    # Pure-JAX reference using the UNFOLDED parameters (mirrors the torch forward)
    def leaky(v):
        return jnp.where(v > 0, v, NEG_SLOPE * v)

    x_ref = leaky(jnp.take(model.act_emb, x.reshape(-1), axis=0)
                  @ model.node_w + model.node_b)
    embs = [jnp.take(model.attr_emb[i],
                     edge_attr[:, -NUM_ATTR + i].astype(jnp.int32), axis=0)
            for i in range(NUM_ATTR)]
    attr_emb_ref = jnp.concatenate(embs, axis=1)
    half = HIDDEN // 2
    freq = (1e-4) ** jnp.linspace(0.0, 1.0, half)
    pe_arg = edge_attr[:, 0:1] * freq.reshape(1, -1)
    pe = jnp.concatenate([jnp.sin(pe_arg), jnp.cos(pe_arg)], axis=-1)
    edge_ref = leaky((attr_emb_ref + jnp.tile(pe, (1, NUM_ATTR))) @ model.edge_w
                     + model.edge_b)

    np.testing.assert_allclose(np.asarray(x_emb), np.asarray(x_ref), atol=2e-3, rtol=2e-3)
    np.testing.assert_allclose(np.asarray(edge_emb), np.asarray(edge_ref), atol=2e-3, rtol=2e-3)
    print("KERNEL_OK")
</pallas_src>

<mosaic_0001>
module attributes {stable_mosaic.version = 11 : i64} {
  func.func @_node_kernel(%arg0: i32, %arg1: memref<128x1xi32, #tpu.memory_space<vmem>>, %arg2: memref<200x32xf32, #tpu.memory_space<vmem>>, %arg3: memref<1x32xf32, #tpu.memory_space<vmem>>, %arg4: memref<128x32xf32, #tpu.memory_space<vmem>>) attributes {dimension_semantics = [#tpu.dimension_semantics<parallel>], iteration_bounds = array<i64: 1>, scalar_prefetch = 0 : i64, scratch_operands = 0 : i64, tpu.core_type = #tpu.core_type<tc>, window_params = [{transform_indices = @transform_0, window_bounds = array<i64: 128, 1>}, {pipeline_mode = #tpu.pipeline_mode<synchronous>, transform_indices = @transform_1, window_bounds = array<i64: 200, 32>}, {pipeline_mode = #tpu.pipeline_mode<synchronous>, transform_indices = @transform_2, window_bounds = array<i64: 1, 32>}, {transform_indices = @transform_3, window_bounds = array<i64: 128, 32>}]} {
    %c0_i32 = arith.constant 0 : i32
    %c128_i32 = arith.constant 128 : i32
    %0 = arith.muli %c0_i32, %c128_i32 : i32
    %1 = tpu.assume_multiple %0, 128 : i32
    %2 = arith.index_cast %1 : i32 to index
    %c0 = arith.constant 0 : index
    %3 = vector.load %arg1[%2, %c0] : memref<128x1xi32, #tpu.memory_space<vmem>>, vector<128x1xi32>
    %4 = tpu.iota {dimensions = array<i32: 1>} : vector<128x200xi32>
    %5 = vector.broadcast %3 : vector<128x1xi32> to vector<128x200xi32>
    %6 = arith.cmpi eq, %5, %4 : vector<128x200xi32>
    %7 = arith.extui %6 : vector<128x200xi1> to vector<128x200xi32>
    %8 = arith.sitofp %7 : vector<128x200xi32> to vector<128x200xf32>
    %c0_0 = arith.constant 0 : index
    %c0_1 = arith.constant 0 : index
    %9 = vector.load %arg2[%c0_0, %c0_1] : memref<200x32xf32, #tpu.memory_space<vmem>>, vector<200x32xf32>
    %cst = arith.constant dense<0.000000e+00> : vector<128x32xf32>
    %10 = tpu.matmul %8, %9, %cst {dimension_numbers = #tpu.dot_dimension_numbers<[1], [0], [0], [1], [0, 0, 1, 1], [], []>} : vector<128x200xf32>, vector<200x32xf32>, vector<128x32xf32> -> vector<128x32xf32>
    %c0_2 = arith.constant 0 : index
    %c0_3 = arith.constant 0 : index
    %11 = vector.load %arg3[%c0_2, %c0_3] : memref<1x32xf32, #tpu.memory_space<vmem>>, vector<1x32xf32>
    %12 = vector.broadcast %11 : vector<1x32xf32> to vector<128x32xf32>
    %13 = arith.addf %10, %12 : vector<128x32xf32>
    %cst_4 = arith.constant 0.000000e+00 : f32
    %14 = vector.broadcast %cst_4 : f32 to vector<128x32xf32>
    %15 = arith.cmpf ogt, %13, %14 : vector<128x32xf32>
    %cst_5 = arith.constant 0.00999999977 : f32
    %16 = vector.broadcast %cst_5 : f32 to vector<128x32xf32>
    %17 = arith.mulf %16, %13 : vector<128x32xf32>
    %18 = arith.select %15, %13, %17 : vector<128x32xi1>, vector<128x32xf32>
    %19 = arith.index_cast %1 : i32 to index
    %c0_6 = arith.constant 0 : index
    %20 = vector.load %arg4[%19, %c0_6] : memref<128x32xf32, #tpu.memory_space<vmem>>, vector<128x32xf32>
    tpu.vector_store %arg4[%19, %c0_6], %18 {strides = array<i32>} : memref<128x32xf32, #tpu.memory_space<vmem>>, vector<128x32xf32>,
    %c1_i32 = arith.constant 1 : i32
    return
  }
  func.func @transform_0(%arg0: i32) -> (i32, i32) {
    %c0_i32 = arith.constant 0 : i32
    %c0_i32_0 = arith.constant 0 : i32
    return %arg0, %c0_i32 : i32, i32
  }
  func.func @transform_1(%arg0: i32) -> (i32, i32) {
    %c0_i32 = arith.constant 0 : i32
    %c0_i32_0 = arith.constant 0 : i32
    %c0_i32_1 = arith.constant 0 : i32
    return %c0_i32, %c0_i32_0 : i32, i32
  }
  func.func @transform_2(%arg0: i32) -> (i32, i32) {
    %c0_i32 = arith.constant 0 : i32
    %c0_i32_0 = arith.constant 0 : i32
    %c0_i32_1 = arith.constant 0 : i32
    return %c0_i32, %c0_i32_0 : i32, i32
  }
  func.func @transform_3(%arg0: i32) -> (i32, i32) {
    %c0_i32 = arith.constant 0 : i32
    %c0_i32_0 = arith.constant 0 : i32
    return %arg0, %c0_i32 : i32, i32
  }
}

module attributes {stable_mosaic.version = 11 : i64} {
  func.func @kernel(%arg0: i32, %arg1: memref<64x3xf32, #tpu.memory_space<vmem>>, %arg2: memref<2x300x32xf32, #tpu.memory_space<vmem>>, %arg3: memref<32x32xf32, #tpu.memory_space<vmem>>, %arg4: memref<1x32xf32, #tpu.memory_space<vmem>>, %arg5: memref<1x32xf32, #tpu.memory_space<vmem>>, %arg6: memref<1x32xf32, #tpu.memory_space<vmem>>, %arg7: memref<64x32xf32, #tpu.memory_space<vmem>>) attributes {dimension_semantics = [#tpu.dimension_semantics<parallel>], iteration_bounds = array<i64: 1>, scalar_prefetch = 0 : i64, scratch_operands = 0 : i64, tpu.core_type = #tpu.core_type<tc>, window_params = [{transform_indices = @transform_0, window_bounds = array<i64: 64, 3>}, {pipeline_mode = #tpu.pipeline_mode<synchronous>, transform_indices = @transform_1, window_bounds = array<i64: 2, 300, 32>}, {pipeline_mode = #tpu.pipeline_mode<synchronous>, transform_indices = @transform_2, window_bounds = array<i64: 32, 32>}, {pipeline_mode = #tpu.pipeline_mode<synchronous>, transform_indices = @transform_3, window_bounds = array<i64: 1, 32>}, {pipeline_mode = #tpu.pipeline_mode<synchronous>, transform_indices = @transform_4, window_bounds = array<i64: 1, 32>}, {pipeline_mode = #tpu.pipeline_mode<synchronous>, transform_indices = @transform_5, window_bounds = array<i64: 1, 32>}, {transform_indices = @transform_6, window_bounds = array<i64: 64, 32>}]} {
    %c0_i32 = arith.constant 0 : i32
    %c64_i32 = arith.constant 64 : i32
    %0 = arith.muli %c0_i32, %c64_i32 : i32
    %1 = tpu.assume_multiple %0, 64 : i32
    %2 = arith.index_cast %1 : i32 to index
    %c0 = arith.constant 0 : index
    %3 = vector.load %arg1[%2, %c0] : memref<64x3xf32, #tpu.memory_space<vmem>>, vector<64x3xf32>
    %4 = vector.extract_strided_slice %3 {offsets = [0, 0], sizes = [64, 1], strides = [1, 1]} : vector<64x3xf32> to vector<64x1xf32>
    %c0_0 = arith.constant 0 : index
    %c0_1 = arith.constant 0 : index
    %5 = vector.load %arg4[%c0_0, %c0_1] : memref<1x32xf32, #tpu.memory_space<vmem>>, vector<1x32xf32>
    %6 = vector.broadcast %4 : vector<64x1xf32> to vector<64x32xf32>
    %7 = vector.broadcast %5 : vector<1x32xf32> to vector<64x32xf32>
    %8 = arith.mulf %6, %7 : vector<64x32xf32>
    %c0_2 = arith.constant 0 : index
    %c0_3 = arith.constant 0 : index
    %9 = vector.load %arg5[%c0_2, %c0_3] : memref<1x32xf32, #tpu.memory_space<vmem>>, vector<1x32xf32>
    %10 = vector.broadcast %9 : vector<1x32xf32> to vector<64x32xf32>
    %11 = arith.addf %8, %10 : vector<64x32xf32>
    %12 = math.sin %11 : vector<64x32xf32>
    %c0_4 = arith.constant 0 : index
    %c0_5 = arith.constant 0 : index
    %13 = vector.load %arg3[%c0_4, %c0_5] : memref<32x32xf32, #tpu.memory_space<vmem>>, vector<32x32xf32>
    %cst = arith.constant dense<0.000000e+00> : vector<64x32xf32>
    %14 = tpu.matmul %12, %13, %cst {dimension_numbers = #tpu.dot_dimension_numbers<[1], [0], [0], [1], [0, 0, 1, 1], [], []>} : vector<64x32xf32>, vector<32x32xf32>, vector<64x32xf32> -> vector<64x32xf32>
    %c0_6 = arith.constant 0 : index
    %c0_7 = arith.constant 0 : index
    %15 = vector.load %arg6[%c0_6, %c0_7] : memref<1x32xf32, #tpu.memory_space<vmem>>, vector<1x32xf32>
    %16 = vector.broadcast %15 : vector<1x32xf32> to vector<64x32xf32>
    %17 = arith.addf %14, %16 : vector<64x32xf32>
    %18 = tpu.iota {dimensions = array<i32: 1>} : vector<64x300xi32>
    %19 = vector.extract_strided_slice %3 {offsets = [0, 1], sizes = [64, 1], strides = [1, 1]} : vector<64x3xf32> to vector<64x1xf32>
    %20 = arith.fptosi %19 : vector<64x1xf32> to vector<64x1xi32>
    %21 = vector.broadcast %20 : vector<64x1xi32> to vector<64x300xi32>
    %22 = arith.cmpi eq, %21, %18 : vector<64x300xi32>
    %23 = arith.extui %22 : vector<64x300xi1> to vector<64x300xi32>
    %24 = arith.sitofp %23 : vector<64x300xi32> to vector<64x300xf32>
    %c0_8 = arith.constant 0 : index
    %c0_9 = arith.constant 0 : index
    %c0_10 = arith.constant 0 : index
    %25 = vector.load %arg2[%c0_8, %c0_9, %c0_10] : memref<2x300x32xf32, #tpu.memory_space<vmem>>, vector<1x300x32xf32>
    %26 = vector.shape_cast %25 : vector<1x300x32xf32> to vector<300x32xf32>
    %cst_11 = arith.constant dense<0.000000e+00> : vector<64x32xf32>
    %27 = tpu.matmul %24, %26, %cst_11 {dimension_numbers = #tpu.dot_dimension_numbers<[1], [0], [0], [1], [0, 0, 1, 1], [], []>} : vector<64x300xf32>, vector<300x32xf32>, vector<64x32xf32> -> vector<64x32xf32>
    %28 = arith.addf %17, %27 : vector<64x32xf32>
    %29 = vector.extract_strided_slice %3 {offsets = [0, 2], sizes = [64, 1], strides = [1, 1]} : vector<64x3xf32> to vector<64x1xf32>
    %30 = arith.fptosi %29 : vector<64x1xf32> to vector<64x1xi32>
    %31 = vector.broadcast %30 : vector<64x1xi32> to vector<64x300xi32>
    %32 = arith.cmpi eq, %31, %18 : vector<64x300xi32>
    %33 = arith.extui %32 : vector<64x300xi1> to vector<64x300xi32>
    %34 = arith.sitofp %33 : vector<64x300xi32> to vector<64x300xf32>
    %c1 = arith.constant 1 : index
    %c0_12 = arith.constant 0 : index
    %c0_13 = arith.constant 0 : index
    %35 = vector.load %arg2[%c1, %c0_12, %c0_13] : memref<2x300x32xf32, #tpu.memory_space<vmem>>, vector<1x300x32xf32>
    %36 = vector.shape_cast %35 : vector<1x300x32xf32> to vector<300x32xf32>
    %cst_14 = arith.constant dense<0.000000e+00> : vector<64x32xf32>
    %37 = tpu.matmul %34, %36, %cst_14 {dimension_numbers = #tpu.dot_dimension_numbers<[1], [0], [0], [1], [0, 0, 1, 1], [], []>} : vector<64x300xf32>, vector<300x32xf32>, vector<64x32xf32> -> vector<64x32xf32>
    %38 = arith.addf %28, %37 : vector<64x32xf32>
    %cst_15 = arith.constant 0.000000e+00 : f32
    %39 = vector.broadcast %cst_15 : f32 to vector<64x32xf32>
    %40 = arith.cmpf ogt, %38, %39 : vector<64x32xf32>
    %cst_16 = arith.constant 0.00999999977 : f32
    %41 = vector.broadcast %cst_16 : f32 to vector<64x32xf32>
    %42 = arith.mulf %41, %38 : vector<64x32xf32>
    %43 = arith.select %40, %38, %42 : vector<64x32xi1>, vector<64x32xf32>
    %44 = arith.index_cast %1 : i32 to index
    %c0_17 = arith.constant 0 : index
    %45 = vector.load %arg7[%44, %c0_17] : memref<64x32xf32, #tpu.memory_space<vmem>>, vector<64x32xf32>
    tpu.vector_store %arg7[%44, %c0_17], %43 {strides = array<i32>} : memref<64x32xf32, #tpu.memory_space<vmem>>, vector<64x32xf32>,
    %c1_i32 = arith.constant 1 : i32
    return
  }
  func.func @transform_0(%arg0: i32) -> (i32, i32) {
    %c0_i32 = arith.constant 0 : i32
    %c0_i32_0 = arith.constant 0 : i32
    return %arg0, %c0_i32 : i32, i32
  }
  func.func @transform_1(%arg0: i32) -> (i32, i32, i32) {
    %c0_i32 = arith.constant 0 : i32
    %c0_i32_0 = arith.constant 0 : i32
    %c0_i32_1 = arith.constant 0 : i32
    %c0_i32_2 = arith.constant 0 : i32
    return %c0_i32, %c0_i32_0, %c0_i32_1 : i32, i32, i32
  }
  func.func @transform_2(%arg0: i32) -> (i32, i32) {
    %c0_i32 = arith.constant 0 : i32
    %c0_i32_0 = arith.constant 0 : i32
    %c0_i32_1 = arith.constant 0 : i32
    return %c0_i32, %c0_i32_0 : i32, i32
  }
  func.func @transform_3(%arg0: i32) -> (i32, i32) {
    %c0_i32 = arith.constant 0 : i32
    %c0_i32_0 = arith.constant 0 : i32
    %c0_i32_1 = arith.constant 0 : i32
    return %c0_i32, %c0_i32_0 : i32, i32
  }
  func.func @transform_4(%arg0: i32) -> (i32, i32) {
    %c0_i32 = arith.constant 0 : i32
    %c0_i32_0 = arith.constant 0 : i32
    %c0_i32_1 = arith.constant 0 : i32
    return %c0_i32, %c0_i32_0 : i32, i32
  }
  func.func @transform_5(%arg0: i32) -> (i32, i32) {
    %c0_i32 = arith.constant 0 : i32
    %c0_i32_0 = arith.constant 0 : i32
    %c0_i32_1 = arith.constant 0 : i32
    return %c0_i32, %c0_i32_0 : i32, i32
  }
  func.func @transform_6(%arg0: i32) -> (i32, i32) {
    %c0_i32 = arith.constant 0 : i32
    %c0_i32_0 = arith.constant 0 : i32
    return %arg0, %c0_i32 : i32, i32
  }
}

</mosaic_0001>

<bundles_post_ra>
// kernel: _forward.2
= control target key start
LH: loop header
LB: loop body
LE: loop exit
PB: predicated region body
PF: predicated region fallthrough
CT: control target
= control target key end

     0   :  { %8 = vsyncpa [#allocation3], 0  ;;  %s657_s15 = smov [#allocation2]   ;;  %s658_s17 = smov 128   ;;  %s876_s0 = inlined_call_operand.vmem [shape: s32[50,1], index: 0, kind: input, shape index: {}]   ;;  %s877_s1 = inlined_call_operand.hbm [shape: f32[200,32], index: 1, kind: input, shape index: {}]   ;;  %s878_s2 = inlined_call_operand.vmem [shape: f32[1,32], index: 2, kind: input, shape index: {}]   ;;  %s879_s3 = inlined_call_operand.vmem [shape: f32[50,32], index: 3, kind: output, shape index: {}]  }
   0x1   :  { %s15_s14 = sshll.u32 %s877_s1, 4  ;;  %s17_s16 = sshll.u32 %s657_s15, 4  ;;  %s16_s14 = int_to_ptr.hbm [resolvable:$true] %s15_s14  ;;  %s18_s16 = int_to_ptr.vmem [resolvable:$true] %s17_s16 }
   0x2   :  { %s659_s18 = smov 8  }
   0x3   :  { %23 = dma.hbm_to_vmem [thread:$0]  %s16_s14, 3200, %s18_s16, [#allocation3], %s658_s17, %s658_s17, %s659_s18  }
   0x4   :  { %655 = dma.done.wait [#allocation3], 3200  }
   0x5   :  { %656 = vsyncadd [#allocation3], 4294964096  ;;  %v660_v0 = vmov 0   ;;  %v38_v1 = vld [vmem:[%s876_s0 + $0x40] sm:$0xff]  ;;  %v37_v2 = vld [vmem:[%s876_s0 + $0x38] sm:$0xff]  ;;  %v46_v36 = vlaneseq  ;;  %vm222_vm1 = vcmask 588800  }
   0x6   :  { %628 = vset.pattern.permute.xlu1 %v660_v0  ;;  %627 = vset.pattern.permute.xlu0 %v660_v0  ;;  %v39_v3 = vld [vmem:[%s876_s0 + $0x48] sm:$0xff]  ;;  %v30_v5 = vld [vmem:[%s876_s0] sm:$0xff]  ;;  %v32_v6 = vld [vmem:[%s876_s0 + $0x10] sm:$0xff]  ;;  %v661_v46 = vmov 0.0   ;;  %v662_v53 = vmov 1.0  }
   0x7   :  { %629 = vset.pattern.permute.xlu2 %v660_v0  ;;  %74 = vperm.xlu1 %628, %v38_v1   ;;  %v31_v4 = vld [vmem:[%s876_s0 + $0x8] sm:$0xff]  ;;  %v208_v7 = vld [vmem:[#allocation2 + $0x78] sm:$0xff]  ;;  %v207_v8 = vld [vmem:[#allocation2 + $0x70] sm:$0xff]  ;;  %v734_v41 = vand.u32 127, %v46_v36 }
   0x8   :  { %71 = vperm.xlu0 %627, %v37_v2   ;;  %77 = vperm.xlu2 %629, %v39_v3   ;;  %v206_v9 = vld [vmem:[#allocation2 + $0x68] sm:$0xff]  ;;  %v205_v10 = vld [vmem:[#allocation2 + $0x60] sm:$0xff]  ;;  %v33_v11 = vld [vmem:[%s876_s0 + $0x18] sm:$0xff] }
   0x9   :  { %596 = vmatpush.msra.mxu2 %v208_v7  ;;  %271 = vmatpush.msra.mxu0 %v208_v7  ;;  %v40_v12 = vld [vmem:[%s876_s0 + $0x50] sm:$0xff]  ;;  %v41_v13 = vld [vmem:[%s876_s0 + $0x58] sm:$0xff]  ;;  %v202_v16 = vld [vmem:[#allocation2 + $0x48] sm:$0xff]  ;;  %v737_v43 = vadd.s32 128, %v734_v41 }
   0xa   :  { %v204_v14 = vld [vmem:[#allocation2 + $0x58] sm:$0xff]  ;;  %v203_v15 = vld [vmem:[#allocation2 + $0x50] sm:$0xff]  ;;  %v42_v17 = vld [vmem:[%s876_s0 + $0x60] sm:$0xff] }
   0xb   :  { %597 = vmatpush.msra.mxu2 %v207_v8  ;;  %272 = vmatpush.msra.mxu0 %v207_v8  ;;  %v34_v18 = vld [vmem:[%s876_s0 + $0x20] sm:$0xff]  ;;  %v35_v19 = vld [vmem:[%s876_s0 + $0x28] sm:$0xff]  ;;  %v36_v20 = vld [vmem:[%s876_s0 + $0x30] sm:$0xff] }
   0xc   :  { %v43_v21 = vld [vmem:[%s876_s0 + $0x68] sm:$0xff]  ;;  %v44_v22 = vld [vmem:[%s876_s0 + $0x70] sm:$0xff]  ;;  %v45_v23 = vld [vmem:[%s876_s0 + $0x78] sm:$0xff] }
   0xd   :  { %598 = vmatpush.msra.mxu2 %v206_v9  ;;  %273 = vmatpush.msra.mxu0 %v206_v9  ;;  %v201_v24 = vld [vmem:[#allocation2 + $0x40] sm:$0xff]  ;;  %v200_v25 = vld [vmem:[#allocation2 + $0x38] sm:$0xff]  ;;  %v199_v26 = vld [vmem:[#allocation2 + $0x30] sm:$0xff] }
   0xe   :  { %v198_v27 = vld [vmem:[#allocation2 + $0x28] sm:$0xff]  ;;  %v197_v28 = vld [vmem:[#allocation2 + $0x20] sm:$0xff]  ;;  %v196_v30 = vld [vmem:[#allocation2 + $0x18] sm:$0xff] }
   0xf   :  { %53 = vperm.xlu1 %628, %v31_v4   ;;  %599 = vmatpush.msra.mxu2 %v205_v10  ;;  %v217_v29 = vld [vmem:[#allocation2 + $0xc0] sm:$0xff]  ;;  %v216_v31 = vld [vmem:[#allocation2 + $0xb8] sm:$0xff]  ;;  %v195_v32 = vld [vmem:[#allocation2 + $0x10] sm:$0xff] }
  0x10   :  { %50 = vperm.xlu0 %627, %v30_v5   ;;  %56 = vperm.xlu2 %629, %v32_v6   ;;  %v215_v33 = vld [vmem:[#allocation2 + $0xb0] sm:$0xff]  ;;  %v194_v34 = vld [vmem:[#allocation2 + $0x8] sm:$0xff]  ;;  %v193_v37 = vld [vmem:[#allocation2] sm:$0xff] }
  0x11   :  { %600 = vmatpush.msra.mxu2 %v204_v14  ;;  %274 = vmatpush.msra.mxu0 %v205_v10  ;;  %v214_v35 = vld [vmem:[#allocation2 + $0xa8] sm:$0xff]  ;;  %v213_v38 = vld [vmem:[#allocation2 + $0xa0] sm:$0xff]  ;;  %v212_v39 = vld [vmem:[#allocation2 + $0x98] sm:$0xff] }
  0x12   :  { %343 = vmatpush.msra.mxu1 %v217_v29  ;;  %612 = vmatpush.msra.mxu3 %v217_v29  ;;  %v211_v40 = vld [vmem:[#allocation2 + $0x90] sm:$0xff]  ;;  %v210_v42 = vld [vmem:[#allocation2 + $0x88] sm:$0xff]  ;;  %v209_v45 = vld [vmem:[#allocation2 + $0x80] sm:$0xff] }
  0x13   :  { %601 = vmatpush.msra.mxu2 %v203_v15  ;;  %275 = vmatpush.msra.mxu0 %v204_v14 }
  0x14   :  { %344 = vmatpush.msra.mxu1 %v216_v31  ;;  %613 = vmatpush.msra.mxu3 %v216_v31 }
  0x15   :  { %602 = vmatpush.msra.mxu2 %v202_v16  ;;  %276 = vmatpush.msra.mxu0 %v203_v15 }
  0x16   :  { %345 = vmatpush.msra.mxu1 %v215_v33  ;;  %614 = vmatpush.msra.mxu3 %v215_v33 }
  0x17   :  { %59 = vperm.xlu1 %628, %v33_v11   ;;  %277 = vmatpush.msra.mxu0 %v202_v16  ;;  %v839_v16 = vld [vmem:[%s878_s2] ss:$0 sm:$0xff] }
  0x18   :  { %80 = vperm.xlu0 %627, %v40_v12   ;;  %83 = vperm.xlu2 %629, %v41_v13  }
  0x19   :  { %603 = vmatpush.msra.mxu2 %v201_v24  ;;  %278 = vmatpush.msra.mxu0 %v201_v24 }
  0x1a   :  { %346 = vmatpush.msra.mxu1 %v214_v35  ;;  %615 = vmatpush.msra.mxu3 %v214_v35 }
  0x1b   :  { %604 = vmatpush.msra.mxu2 %v200_v25  ;;  %279 = vmatpush.msra.mxu0 %v200_v25 }
  0x1c   :  { %347 = vmatpush.msra.mxu1 %v213_v38  ;;  %616 = vmatpush.msra.mxu3 %v213_v38 }
  0x1d   :  { %605 = vmatpush.msra.mxu2 %v199_v26  ;;  %280 = vmatpush.msra.mxu0 %v199_v26 }
  0x1e   :  { %348 = vmatpush.msra.mxu1 %v212_v39  ;;  %617 = vmatpush.msra.mxu3 %v212_v39 }
  0x1f   :  { %86 = vperm.xlu1 %628, %v42_v17   ;;  %606 = vmatpush.msra.mxu2 %v198_v27 }
  0x20   :  { %62 = vperm.xlu0 %627, %v34_v18   ;;  %65 = vperm.xlu2 %629, %v35_v19  }
  0x21   :  { %281 = vmatpush.msra.mxu0 %v198_v27  ;;  %607 = vmatpush.msra.mxu2 %v197_v28 }
  0x22   :  { %349 = vmatpush.msra.mxu1 %v211_v40  ;;  %618 = vmatpush.msra.mxu3 %v211_v40 }
  0x23   :  { %282 = vmatpush.msra.mxu0 %v197_v28  ;;  %608 = vmatpush.msra.mxu2 %v196_v30 }
  0x24   :  { %350 = vmatpush.msra.mxu1 %v210_v42  ;;  %619 = vmatpush.msra.mxu3 %v210_v42 }
  0x25   :  { %283 = vmatpush.msra.mxu0 %v196_v30  ;;  %609 = vmatpush.msra.mxu2 %v195_v32 }
  0x26   :  { %351 = vmatpush.msra.mxu1 %v209_v45  ;;  %620 = vmatpush.msra.mxu3 %v209_v45 }
  0x27   :  { %68 = vperm.xlu1 %628, %v36_v20   ;;  %284 = vmatpush.msra.mxu0 %v195_v32 }
  0x28   :  { %89 = vperm.xlu0 %627, %v43_v21   ;;  %92 = vperm.xlu2 %629, %v44_v22  }
  0x29   :  { %610 = vmatpush.msra.mxu2 %v194_v34  ;;  %285 = vmatpush.msra.mxu0 %v194_v34 }
  0x2b   :  { %611 = vmatpush.msra.mxu2 %v193_v37  ;;  %286 = vmatpush.msra.mxu0 %v193_v37 }
  0x30   :  { %95 = vperm.xlu0 %627, %v45_v23  }
  0x62   :  { %v78_v44 = vpop.permute.xlu2 %77 }
  0x63   :  { %vm116_vm0 = vcmp.eq.s32.totalorder %v78_v44, %v737_v43  ;;  %vm115_vm11 = vcmp.eq.s32.totalorder %v78_v44, %v734_v41 }
  0x64   :  { %v551_v47 = vsel %vm116_vm0, 1.0, %v661_v46 }
  0x65   :  { %589 = vmatmul.msk.f32.vlgmr.msra.gmra.mxu3 %vm222_vm1, %v551_v47 }
  0x6a   :  { %v57_v48 = vpop.permute.xlu2 %56 }
  0x6b   :  { %vm102_vm14 = vcmp.eq.s32.totalorder %v57_v48, %v737_v43  ;;  %vm101_vm0 = vcmp.eq.s32.totalorder %v57_v48, %v734_v41 }
  0x6c   :  { %v537_v4 = vsel %vm102_vm14, 1.0, %v661_v46 }
  0x72   :  { %v84_v49 = vpop.permute.xlu2 %83 }
  0x73   :  { %vm120_vm15 = vcmp.eq.s32.totalorder %v84_v49, %v737_v43 }
  0x74   :  { %v555_v5 = vsel %vm120_vm15, 1.0, %v661_v46 }
  0x79   :  { %v75_v50 = vpop.permute.xlu1 %74 }
  0x7a   :  { %v72_v51 = vpop.permute.xlu0 %71  ;;  %vm114_vm2 = vcmp.eq.s32.totalorder %v75_v50, %v737_v43  ;;  %v745_v52 = vpop.permute.xlu2 %65  ;;  %vm113_vm6 = vcmp.eq.s32.totalorder %v75_v50, %v734_v41 }
  0x7b   :  { %vm112_vm3 = vcmp.eq.s32.totalorder %v72_v51, %v737_v43  ;;  %vm111_vm4 = vcmp.eq.s32.totalorder %v72_v51, %v734_v41  ;;  %vm108_vm5 = vcmp.eq.s32.totalorder %v745_v52, %v737_v43  ;;  %v754_v55 = vsel %vm114_vm2, 1.0, %v661_v46 }
  0x7c   :  { %571 = vmatmul.msk.f32.vlgmr.msra.gmra.mxu2 %vm111_vm4, %v662_v53  ;;  %v751_v54 = vsel %vm112_vm3, 1.0, %v661_v46  ;;  %v757_v56 = vsel %vm108_vm5, 1.0, %v661_v46 }
  0x81   :  { %v54_v57 = vpop.permute.xlu1 %53 }
  0x82   :  { %v51_v58 = vpop.permute.xlu0 %50  ;;  %v762_v59 = vpop.permute.xlu2 %92  ;;  %vm100_vm10 = vcmp.eq.s32.totalorder %v54_v57, %v737_v43  ;;  %vm99_vm13 = vcmp.eq.s32.totalorder %v54_v57, %v734_v41 }
  0x83   :  { %vm98_vm7 = vcmp.eq.s32.totalorder %v51_v58, %v737_v43  ;;  %vm97_vm8 = vcmp.eq.s32.totalorder %v51_v58, %v734_v41  ;;  %vm126_vm9 = vcmp.eq.s32.totalorder %v762_v59, %v737_v43  ;;  %v535_v0 = vsel %vm100_vm10, 1.0, %v661_v46 }
  0x84   :  { %564 = vmatmul.msk.f32.vlgmr.msra.gmra.mxu0 %vm97_vm8, %v662_v53  ;;  %572 = vmatmul.msk.f32.gmra.mxu2 %vm113_vm6, %v662_v53  ;;  %v533_v60 = vsel %vm98_vm7, 1.0, %v661_v46  ;;  %v561_v61 = vsel %vm126_vm9, 1.0, %v661_v46  ;;  %vm119_vm7 = vcmp.eq.s32.totalorder %v84_v49, %v734_v41  ;;  %vm125_vm15 = vcmp.eq.s32.totalorder %v762_v59, %v734_v41 }
  0x85   :  { %580 = vmatmul.msk.f32.vlgmr.msra.gmra.mxu1 %vm222_vm1, %v533_v60 }
  0x89   :  { %v60_v62 = vpop.permute.xlu1 %59 }
  0x8a   :  { %v81_v63 = vpop.permute.xlu0 %80  ;;  %vm104_vm3 = vcmp.eq.s32.totalorder %v60_v62, %v737_v43  ;;  %vm103_vm6 = vcmp.eq.s32.totalorder %v60_v62, %v734_v41 }
  0x8b   :  { %vm118_vm12 = vcmp.eq.s32.totalorder %v81_v63, %v737_v43  ;;  %vm117_vm2 = vcmp.eq.s32.totalorder %v81_v63, %v734_v41  ;;  %v539_v9 = vsel %vm104_vm3, 1.0, %v661_v46 }
  0x8c   :  { %565 = vmatmul.msk.f32.gmra.mxu0 %vm99_vm13, %v662_v53  ;;  %573 = vmatmul.msk.f32.gmra.mxu2 %vm115_vm11, %v662_v53  ;;  %v553_v1 = vsel %vm118_vm12, 1.0, %v661_v46  ;;  %vm107_vm13 = vcmp.eq.s32.totalorder %v745_v52, %v734_v41 }
  0x8d   :  { %581 = vmatmul.msk.f32.gmra.mxu1 %vm222_vm1, %v535_v0  ;;  %590 = vmatmul.msk.f32.gmra.mxu3 %vm222_vm1, %v553_v1 }
  0x91   :  { %v87_v2 = vpop.permute.xlu1 %86 }
  0x92   :  { %v63_v3 = vpop.permute.xlu0 %62  ;;  %vm122_vm4 = vcmp.eq.s32.totalorder %v87_v2, %v737_v43  ;;  %vm121_vm12 = vcmp.eq.s32.totalorder %v87_v2, %v734_v41 }
  0x93   :  { %v557_v10 = vsel %vm122_vm4, 1.0, %v661_v46  ;;  %vm106_vm8 = vcmp.eq.s32.totalorder %v63_v3, %v737_v43  ;;  %vm105_vm11 = vcmp.eq.s32.totalorder %v63_v3, %v734_v41  ;;  %vm449_vm4 = vcmask 261120  }
  0x94   :  { %566 = vmatmul.msk.f32.gmra.mxu0 %vm101_vm0, %v662_v53  ;;  %574 = vmatmul.msk.f32.gmra.mxu2 %vm117_vm2, %v662_v53  ;;  %v541_v13 = vsel %vm106_vm8, 1.0, %v661_v46 }
  0x95   :  { %582 = vmatmul.msk.f32.gmra.mxu1 %vm222_vm1, %v537_v4  ;;  %591 = vmatmul.msk.f32.gmra.mxu3 %vm222_vm1, %v555_v5 }
  0x99   :  { %v69_v6 = vpop.permute.xlu1 %68 }
  0x9a   :  { %v90_v7 = vpop.permute.xlu0 %89  ;;  %vm110_vm5 = vcmp.eq.s32.totalorder %v69_v6, %v737_v43  ;;  %vm109_vm0 = vcmp.eq.s32.totalorder %v69_v6, %v734_v41 }
  0x9b   :  { %v545_v8 = vsel %vm110_vm5, 1.0, %v661_v46  ;;  %vm124_vm9 = vcmp.eq.s32.totalorder %v90_v7, %v737_v43  ;;  %vm123_vm14 = vcmp.eq.s32.totalorder %v90_v7, %v734_v41 }
  0x9c   :  { %567 = vmatmul.msk.f32.gmra.mxu0 %vm103_vm6, %v662_v53  ;;  %575 = vmatmul.msk.f32.gmra.mxu2 %vm119_vm7, %v662_v53  ;;  %v559_v14 = vsel %vm124_vm9, 1.0, %v661_v46 }
  0x9d   :  { %583 = vmatmul.msk.f32.gmra.mxu1 %vm222_vm1, %v539_v9  ;;  %592 = vmatmul.msk.f32.gmra.mxu3 %vm222_vm1, %v557_v10 }
  0xa2   :  { %v96_v11 = vpop.permute.xlu0 %95 }
  0xa3   :  { %vm128_vm10 = vcmp.eq.s32.totalorder %v96_v11, %v737_v43  ;;  %vm127_vm2 = vcmp.eq.s32.totalorder %v96_v11, %v734_v41 }
  0xa4   :  { %v563_v12 = vsel %vm128_vm10, 1.0, %v661_v46  ;;  %568 = vmatmul.msk.f32.gmra.mxu0 %vm105_vm11, %v662_v53  ;;  %576 = vmatmul.msk.f32.gmra.mxu2 %vm121_vm12, %v662_v53 }
  0xa5   :  { %584 = vmatmul.msk.f32.gmra.mxu1 %vm222_vm1, %v541_v13  ;;  %593 = vmatmul.msk.f32.gmra.mxu3 %vm222_vm1, %v559_v14 }
  0xac   :  { %569 = vmatmul.msk.f32.gmra.mxu0 %vm107_vm13, %v662_v53  ;;  %577 = vmatmul.msk.f32.gmra.mxu2 %vm123_vm14, %v662_v53 }
  0xad   :  { %585 = vmatmul.msk.f32.gmra.mxu1 %vm222_vm1, %v757_v56  ;;  %594 = vmatmul.msk.f32.gmra.mxu3 %vm222_vm1, %v561_v61 }
  0xb4   :  { %570 = vmatmul.msk.f32.gmra.mxu0 %vm109_vm0, %v662_v53  ;;  %578 = vmatmul.msk.f32.gmra.mxu2 %vm125_vm15, %v662_v53 }
  0xb5   :  { %586 = vmatmul.msk.f32.gmra.mxu1 %vm222_vm1, %v545_v8  ;;  %595 = vmatmul.msk.f32.gmra.mxu3 %vm222_vm1, %v563_v12 }
  0xbc   :  { %579 = vmatmul.msk.f32.gmra.mxu2 %vm127_vm2, %v662_v53 }
  0xbd   :  { %587 = vmatmul.msk.f32.gmra.mxu1 %vm222_vm1, %v751_v54 }
  0xc5   :  { %588 = vmatmul.msk.f32.gmra.mxu1 %vm222_vm1, %v754_v55 }
  0xe8   :  { %v380_v22 = vpop.f32.mrf.mxu3 }
  0xff   :  { %v309_v15 = vpop.f32.mrf.mxu2 }
 0x101   :  { %v288_v17 = vpop.f32.mrf.mxu0 }
 0x102   :  { %v289_v18 = vadd.f32 %v839_v16, %v288_v17  ;;  %v353_v19 = vpop.f32.mrf.mxu1 }
 0x104   :  { %v354_v20 = vadd.f32 %v353_v19, %v289_v18 }
 0x106   :  { %vm401_vm3 = vcmp.gt.f32.partialorder %v354_v20, 0.0  ;;  %v417_v21 = vmul.f32 0.01, %v354_v20 }
 0x107   :  { %v312_v23 = vpop.f32.mrf.mxu2 }
 0x108   :  { %v433_v24 = vsel %vm401_vm3, %v354_v20, %v417_v21 }
 0x109   :  { %450 = vst.msk [vmem:[#allocation4] sm:$0xff] %vm449_vm4, %v433_v24  ;;  %v291_v25 = vpop.f32.mrf.mxu0 }
 0x10a   :  { %v292_v26 = vadd.f32 %v839_v16, %v291_v25  ;;  %v356_v27 = vpop.f32.mrf.mxu1 }
 0x10c   :  { %v357_v28 = vadd.f32 %v356_v27, %v292_v26 }
 0x10e   :  { %vm402_vm1 = vcmp.gt.f32.partialorder %v357_v28, 0.0  ;;  %v418_v29 = vmul.f32 0.01, %v357_v28 }
 0x10f   :  { %v315_v30 = vpop.f32.mrf.mxu2 }
 0x110   :  { %v508_v31 = vld [vmem:[#allocation4] sm:$0xff]  ;;  %v434_v32 = vsel %vm402_vm1, %v357_v28, %v418_v29  ;;  %v383_v33 = vpop.f32.mrf.mxu3 }
 0x111   :  { %509 = vst [vmem:[%s879_s3] sm:$0xff] %v508_v31  ;;  %v294_v34 = vpop.f32.mrf.mxu0 }
 0x112   :  { %451 = vst.msk [vmem:[#allocation4 + $0x8] sm:$0xff] %vm449_vm4, %v434_v32  ;;  %v295_v35 = vadd.f32 %v839_v16, %v294_v34  ;;  %v359_v36 = vpop.f32.mrf.mxu1 }
 0x114   :  { %v360_v37 = vadd.f32 %v359_v36, %v295_v35 }
 0x116   :  { %vm403_vm5 = vcmp.gt.f32.partialorder %v360_v37, 0.0  ;;  %v419_v38 = vmul.f32 0.01, %v360_v37 }
 0x117   :  { %v318_v39 = vpop.f32.mrf.mxu2 }
 0x118   :  { %v435_v40 = vsel %vm403_vm5, %v360_v37, %v419_v38  ;;  %v386_v42 = vpop.f32.mrf.mxu3 }
 0x119   :  { %v510_v41 = vld [vmem:[#allocation4 + $0x8] sm:$0xff]  ;;  %452 = vst.msk [vmem:[#allocation4 + $0x10] sm:$0xff] %vm449_vm4, %v435_v40  ;;  %v297_v43 = vpop.f32.mrf.mxu0 }
 0x11a   :  { %511 = vst [vmem:[%s879_s3 + $0x8] sm:$0xff] %v510_v41  ;;  %v298_v44 = vadd.f32 %v839_v16, %v297_v43  ;;  %v362_v45 = vpop.f32.mrf.mxu1 }
 0x11c   :  { %v363_v46 = vadd.f32 %v362_v45, %v298_v44 }
 0x11e   :  { %vm404_vm6 = vcmp.gt.f32.partialorder %v363_v46, 0.0  ;;  %v420_v47 = vmul.f32 0.01, %v363_v46 }
 0x11f   :  { %v321_v48 = vpop.f32.mrf.mxu2 }
 0x120   :  { %v512_v49 = vld [vmem:[#allocation4 + $0x10] sm:$0xff]  ;;  %v436_v50 = vsel %vm404_vm6, %v363_v46, %v420_v47  ;;  %v389_v54 = vpop.f32.mrf.mxu3 }
 0x121   :  { %513 = vst [vmem:[%s879_s3 + $0x10] sm:$0xff] %v512_v49  ;;  %v300_v51 = vpop.f32.mrf.mxu0 }
 0x122   :  { %453 = vst.msk [vmem:[#allocation4 + $0x18] sm:$0xff] %vm449_vm4, %v436_v50  ;;  %v301_v52 = vadd.f32 %v839_v16, %v300_v51  ;;  %v365_v53 = vpop.f32.mrf.mxu1 }
 0x124   :  { %v366_v55 = vadd.f32 %v365_v53, %v301_v52 }
 0x126   :  { %vm405_vm7 = vcmp.gt.f32.partialorder %v366_v55, 0.0  ;;  %v421_v56 = vmul.f32 0.01, %v366_v55 }
 0x127   :  { %v324_v57 = vpop.f32.mrf.mxu2 }
 0x128   :  { %v437_v58 = vsel %vm405_vm7, %v366_v55, %v421_v56  ;;  %v392_v0 = vpop.f32.mrf.mxu3 }
 0x129   :  { %v514_v59 = vld [vmem:[#allocation4 + $0x18] sm:$0xff]  ;;  %454 = vst.msk [vmem:[#allocation4 + $0x20] sm:$0xff] %vm449_vm4, %v437_v58  ;;  %v303_v60 = vpop.f32.mrf.mxu0 }
 0x12a   :  { %515 = vst [vmem:[%s879_s3 + $0x18] sm:$0xff] %v514_v59  ;;  %v304_v61 = vadd.f32 %v839_v16, %v303_v60  ;;  %v368_v62 = vpop.f32.mrf.mxu1 }
 0x12c   :  { %v369_v63 = vadd.f32 %v368_v62, %v304_v61 }
 0x12e   :  { %vm406_vm8 = vcmp.gt.f32.partialorder %v369_v63, 0.0  ;;  %v422_v1 = vmul.f32 0.01, %v369_v63 }
 0x12f   :  { %v327_v2 = vpop.f32.mrf.mxu2 }
 0x130   :  { %v516_v3 = vld [vmem:[#allocation4 + $0x20] sm:$0xff]  ;;  %v438_v4 = vsel %vm406_vm8, %v369_v63, %v422_v1  ;;  %v395_v10 = vpop.f32.mrf.mxu3 }
 0x131   :  { %517 = vst [vmem:[%s879_s3 + $0x20] sm:$0xff] %v516_v3  ;;  %v306_v5 = vpop.f32.mrf.mxu0 }
 0x132   :  { %455 = vst.msk [vmem:[#allocation4 + $0x28] sm:$0xff] %vm449_vm4, %v438_v4  ;;  %v307_v6 = vadd.f32 %v839_v16, %v306_v5  ;;  %v371_v7 = vpop.f32.mrf.mxu1 }
 0x134   :  { %v372_v8 = vadd.f32 %v371_v7, %v307_v6 }
 0x136   :  { %vm407_vm9 = vcmp.gt.f32.partialorder %v372_v8, 0.0  ;;  %v423_v9 = vmul.f32 0.01, %v372_v8 }
 0x137   :  { %v330_v11 = vpop.f32.mrf.mxu2 }
 0x138   :  { %v439_v12 = vsel %vm407_vm9, %v372_v8, %v423_v9  ;;  %v398_v16 = vpop.f32.mrf.mxu3 }
 0x139   :  { %v518_v13 = vld [vmem:[#allocation4 + $0x28] sm:$0xff]  ;;  %456 = vst.msk [vmem:[#allocation4 + $0x30] sm:$0xff] %vm449_vm4, %v439_v12 }
 0x13a   :  { %519 = vst [vmem:[%s879_s3 + $0x28] sm:$0xff] %v518_v13  ;;  %v374_v14 = vpop.f32.mrf.mxu1 }
 0x13f   :  { %v333_v15 = vpop.f32.mrf.mxu2 }
 0x140   :  { %v520_v17 = vld [vmem:[#allocation4 + $0x30] sm:$0xff] }
 0x141   :  { %521 = vst [vmem:[%s879_s3 + $0x30] sm:$0xff] %v520_v17 }
 0x142   :  { %v377_v18 = vpop.f32.mrf.mxu1 }
 0x143   :  { %527 = vsyncpa [#allocation3], 1 }

// kernel: _forward.3
= control target key start
LH: loop header
LB: loop body
LE: loop exit
PB: predicated region body
PF: predicated region fallthrough
CT: control target
= control target key end

     0   :  { %11 = vsyncpa [#allocation3], 0  ;;  %s2342_s24 = smov [#allocation2]   ;;  %s2343_s26 = smov 128   ;;  %s3872_s0 = inlined_call_operand.vmem [shape: f32[37,3], index: 0, kind: input, shape index: {}]   ;;  %s3873_s1 = inlined_call_operand.hbm [shape: f32[2,300,32], index: 1, kind: input, shape index: {}]   ;;  %s3874_s2 = inlined_call_operand.vmem [shape: f32[32,32], index: 2, kind: input, shape index: {}]   ;;  %s3875_s3 = inlined_call_operand.vmem [shape: f32[1,32], index: 3, kind: input, shape index: {}]   ;;  %s3876_s4 = inlined_call_operand.vmem [shape: f32[1,32], index: 4, kind: input, shape index: {}]   ;;  %s3877_s5 = inlined_call_operand.vmem [shape: f32[1,32], index: 5, kind: input, shape index: {}]   ;;  %s3878_s6 = inlined_call_operand.vmem [shape: f32[37,32], index: 6, kind: output, shape index: {}]  }
   0x1   :  { %s18_s23 = sshll.u32 %s3873_s1, 4  ;;  %s20_s25 = sshll.u32 %s2342_s24, 4  ;;  %s19_s23 = int_to_ptr.hbm [resolvable:$true] %s18_s23  ;;  %s21_s25 = int_to_ptr.vmem [resolvable:$true] %s20_s25 }
   0x2   :  { %s2344_s27 = smov 8  }
   0x3   :  { %26 = dma.hbm_to_vmem [thread:$0]  %s19_s23, 9728, %s21_s25, [#allocation3], %s2343_s26, %s2343_s26, %s2344_s27  }
   0x4   :  { %2340 = dma.done.wait [#allocation3], 9728  }
   0x5   :  { %2341 = vsyncadd [#allocation3], 4294957568  ;;  %v3880_v0 = vmov 0   ;;  %v43_v1 = vld [vmem:[%s3872_s0 + $0x20] sm:$0xff]  ;;  %v41_v2 = vld [vmem:[%s3872_s0 + $0x10] sm:$0xff]  ;;  %v2346_v17 = vmov 1  }
   0x6   :  { %2306 = vset.pattern.permute.xlu2 %v3880_v0  ;;  %2305 = vset.pattern.permute.xlu1 %v3880_v0  ;;  %v39_v3 = vld [vmem:[%s3872_s0] sm:$0xff]  ;;  %v44_v4 = vld [vmem:[%s3872_s0 + $0x28] sm:$0xff]  ;;  %v42_v5 = vld [vmem:[%s3872_s0 + $0x18] sm:$0xff]  ;;  %v2261_v12 = vceil.f32 %v41_v2  ;;  %v2262_v13 = vfloor.f32 %v41_v2  ;;  %vm2260_vm1 = vcmp.lt.s32.totalorder %v41_v2, 0  ;;  %v2271_v21 = vceil.f32 %v43_v1 }
   0x7   :  { %2304 = vset.pattern.permute.xlu0 %v3880_v0  ;;  %70 = vperm.xlu2 %2306, %v43_v1   ;;  %v2251_v6 = vceil.f32 %v39_v3  ;;  %v2252_v7 = vfloor.f32 %v39_v3  ;;  %v40_v8 = vld [vmem:[%s3872_s0 + $0x8] sm:$0xff]  ;;  %vm2250_vm0 = vcmp.lt.s32.totalorder %v39_v3, 0  ;;  %v46_v10 = vld [vmem:[%s3872_s0 + $0x38] sm:$0xff]  ;;  %v45_v14 = vld [vmem:[%s3872_s0 + $0x30] sm:$0xff]  ;;  %v2272_v22 = vfloor.f32 %v43_v1 }
   0x8   :  { %60 = vperm.xlu1 %2305, %v41_v2   ;;  %50 = vperm.xlu0 %2304, %v39_v3   ;;  %v2256_v15 = vceil.f32 %v40_v8  ;;  %v2257_v16 = vfloor.f32 %v40_v8  ;;  %vm2255_vm2 = vcmp.lt.s32.totalorder %v40_v8, 0  ;;  %v2263_v18 = vsel %vm2260_vm1, %v2261_v12, %v2262_v13  ;;  %v2429_v42 = vld [vmem:[%s3875_s3] ss:$0 sm:$0xff]  ;;  %v1564_v59 = vld [vmem:[#allocation2 + $0xf8] sm:$0xff]  ;;  %v1563_v63 = vld [vmem:[#allocation2 + $0xf0] sm:$0xff] }
   0x9   :  { %v2415_v9 = vsel %vm2250_vm0, %v2251_v6, %v2252_v7  ;;  %v2264_v20 = vcvt.f32.s32 %v2263_v18  ;;  %vm2270_vm3 = vcmp.lt.s32.totalorder %v43_v1, 0  ;;  %v2266_v26 = vceil.f32 %v42_v5  ;;  %v2434_v43 = vld [vmem:[%s3876_s4] ss:$0 sm:$0xff]  ;;  %1641 = vmatpush.msra.mxu2 %v1564_v59  ;;  %v1548_v7 = vld [vmem:[#allocation2 + $0x78] sm:$0xff]  ;;  %v1859_v0 = vld [vmem:[#allocation2 + $0x228] sm:$0xff] }
   0xa   :  { %v2254_v11 = vcvt.f32.s32 %v2415_v9  ;;  %v2258_v19 = vsel %vm2255_vm2, %v2256_v15, %v2257_v16  ;;  %v2273_v24 = vsel %vm2270_vm3, %v2271_v21, %v2272_v22  ;;  %v2267_v27 = vfloor.f32 %v42_v5  ;;  %1600 = vmatpush.msra.mxu1 %v1548_v7  ;;  %v1560_v13 = vld [vmem:[#allocation2 + $0xd8] sm:$0xff]  ;;  %v1546_v16 = vld [vmem:[#allocation2 + $0x68] sm:$0xff]  ;;  %v1545_v21 = vld [vmem:[#allocation2 + $0x60] sm:$0xff] }
   0xb   :  { %v2259_v23 = vcvt.f32.s32 %v2258_v19  ;;  %v2274_v25 = vcvt.f32.s32 %v2273_v24  ;;  %v2281_v28 = vceil.f32 %v45_v14  ;;  %v2282_v29 = vfloor.f32 %v45_v14  ;;  %1642 = vmatpush.msra.mxu2 %v1563_v63  ;;  %v1558_v22 = vld [vmem:[#allocation2 + $0xc8] sm:$0xff]  ;;  %v1569_v63 = vld [vmem:[#allocation2 + $0x120] sm:$0xff] }
   0xc   :  { %vm2280_vm4 = vcmp.lt.s32.totalorder %v45_v14, 0  ;;  %vm2265_vm5 = vcmp.lt.s32.totalorder %v42_v5, 0  ;;  %v2286_v34 = vceil.f32 %v46_v10  ;;  %v2287_v35 = vfloor.f32 %v46_v10 }
   0xd   :  { %v2283_v30 = vsel %vm2280_vm4, %v2281_v28, %v2282_v29  ;;  %v2268_v31 = vsel %vm2265_vm5, %v2266_v26, %v2267_v27  ;;  %vm2285_vm6 = vcmp.lt.s32.totalorder %v46_v10, 0  ;;  %v2276_v38 = vceil.f32 %v44_v4  ;;  %v1544_v26 = vld [vmem:[#allocation2 + $0x58] sm:$0xff]  ;;  %v1557_v27 = vld [vmem:[#allocation2 + $0xc0] sm:$0xff] }
   0xe   :  { %v2284_v32 = vcvt.f32.s32 %v2283_v30  ;;  %v2269_v33 = vcvt.f32.s32 %v2268_v31  ;;  %v2288_v36 = vsel %vm2285_vm6, %v2286_v34, %v2287_v35  ;;  %v2277_v39 = vfloor.f32 %v44_v4  ;;  %v1543_v30 = vld [vmem:[#allocation2 + $0x50] sm:$0xff]  ;;  %v1556_v31 = vld [vmem:[#allocation2 + $0xb8] sm:$0xff] }
   0xf   :  { %75 = vperm.xlu2 %2306, %v44_v4   ;;  %v2289_v37 = vcvt.f32.s32 %v2288_v36  ;;  %vm2275_vm7 = vcmp.lt.s32.totalorder %v44_v4, 0  ;;  %v2347_v48 = vmov 2   ;;  %v3886_v61 = vmov 920167782   ;;  %v1562_v4 = vld [vmem:[#allocation2 + $0xe8] sm:$0xff] }
  0x10   :  { %65 = vperm.xlu1 %2305, %v42_v5   ;;  %55 = vperm.xlu0 %2304, %v40_v8   ;;  %v2278_v40 = vsel %vm2275_vm7, %v2276_v38, %v2277_v39  ;;  %v3890_v2 = vmov 1326507024   ;;  %v1561_v8 = vld [vmem:[#allocation2 + $0xe0] sm:$0xff]  ;;  %v1542_v36 = vld [vmem:[#allocation2 + $0x48] sm:$0xff]  ;;  %vm1596_vm10 = vcmask 1043456   ;;  %vm1571_vm5 = vcmask 359424  }
  0x11   :  { %v2279_v41 = vcvt.f32.s32 %v2278_v40  ;;  %1643 = vmatpush.msra.mxu2 %v1562_v4 }
  0x13   :  { %1644 = vmatpush.msra.mxu2 %v1561_v8  ;;  %v1551_v8 = vld [vmem:[#allocation2 + $0x90] sm:$0xff] }
  0x15   :  { %1645 = vmatpush.msra.mxu2 %v1560_v13 }
  0x17   :  { %2307 = vset.pattern.permute.xlu2 %v2346_v17 }
  0x18   :  { %85 = vperm.xlu1 %2305, %v46_v10   ;;  %80 = vperm.xlu0 %2304, %v45_v14   ;;  %v1547_v10 = vld [vmem:[#allocation2 + $0x70] sm:$0xff] }
  0x19   :  { %1438 = vperm.xlu2 %2307, %v2254_v11   ;;  %1601 = vmatpush.msra.mxu1 %v1547_v10  ;;  %v3888_v10 = vmov 2102212464  }
  0x1b   :  { %1602 = vmatpush.msra.mxu1 %v1546_v16  ;;  %v1537_v16 = vld [vmem:[#allocation2 + $0x20] sm:$0xff] }
  0x1d   :  { %1603 = vmatpush.msra.mxu1 %v1545_v21  ;;  %v1550_v21 = vld [vmem:[#allocation2 + $0x88] sm:$0xff] }
  0x1f   :  { %1604 = vmatpush.msra.mxu1 %v1544_v26 }
  0x20   :  { %2309 = vset.pattern.permute.xlu1 %v2346_v17  ;;  %2308 = vset.pattern.permute.xlu0 %v2346_v17  ;;  %v1559_v17 = vld [vmem:[#allocation2 + $0xd0] sm:$0xff] }
  0x21   :  { %1444 = vperm.xlu1 %2309, %v2264_v20   ;;  %1441 = vperm.xlu0 %2308, %v2259_v23  }
  0x22   :  { %1447 = vperm.xlu2 %2307, %v2269_v33   ;;  %1646 = vmatpush.msra.mxu2 %v1559_v17 }
  0x23   :  { %1605 = vmatpush.msra.mxu1 %v1543_v30 }
  0x24   :  { %1647 = vmatpush.msra.mxu2 %v1558_v22 }
  0x25   :  { %1606 = vmatpush.msra.mxu1 %v1542_v36  ;;  %v1566_v36 = vld [vmem:[#allocation2 + $0x108] sm:$0xff] }
  0x26   :  { %1648 = vmatpush.msra.mxu2 %v1557_v27 }
  0x28   :  { %1649 = vmatpush.msra.mxu2 %v1556_v31 }
  0x29   :  { %1450 = vperm.xlu1 %2309, %v2274_v25   ;;  %1456 = vperm.xlu0 %2308, %v2284_v32  }
  0x2a   :  { %1453 = vperm.xlu2 %2307, %v2279_v41  }
  0x31   :  { %1459 = vperm.xlu1 %2309, %v2289_v37   ;;  %2311 = vset.pattern.permute.xlu0 %v2347_v48 }
  0x32   :  { %1735 = vperm.xlu0 %2311, %v2259_v23   ;;  %2310 = vset.pattern.permute.xlu2 %v2347_v48 }
  0x33   :  { %1732 = vperm.xlu2 %2310, %v2254_v11  }
  0x39   :  { %2312 = vset.pattern.permute.xlu1 %v2347_v48 }
  0x3a   :  { %1738 = vperm.xlu1 %2312, %v2264_v20   ;;  %1750 = vperm.xlu0 %2311, %v2284_v32  }
  0x3b   :  { %1741 = vperm.xlu2 %2310, %v2269_v33  }
  0x42   :  { %1744 = vperm.xlu1 %2312, %v2274_v25  }
  0x43   :  { %1747 = vperm.xlu2 %2310, %v2279_v41   ;;  %v1541_v41 = vld [vmem:[#allocation2 + $0x40] sm:$0xff] }
  0x44   :  { %1607 = vmatpush.msra.mxu1 %v1541_v41 }
  0x4a   :  { %1753 = vperm.xlu1 %2312, %v2289_v37   ;;  %v1555_v37 = vld [vmem:[#allocation2 + $0xb0] sm:$0xff] }
  0x4b   :  { %1650 = vmatpush.msra.mxu2 %v1555_v37 }
  0x61   :  { %v71_v44 = vpop.permute.xlu2 %70 }
  0x62   :  { %v95_v45 = vmul.f32 %v2429_v42, %v71_v44  ;;  %v1554_v44 = vld [vmem:[#allocation2 + $0xa8] sm:$0xff] }
  0x63   :  { %1651 = vmatpush.msra.mxu2 %v1554_v44 }
  0x64   :  { %v2438_v46 = vadd.f32 %v2434_v43, %v95_v45 }
  0x66   :  { %3933 = vst [vmem:[#allocation6_spill] sm:$0xff] %v2438_v46  ;;  %v734_v47 = vand.u32 2139095040, %v2438_v46 }
  0x68   :  { %v735_v49 = vshrl.u32 %v734_v47, 23 }
  0x69   :  { %v76_v50 = vpop.permute.xlu2 %75 }
  0x6a   :  { %v2126_v51 = vadd.s32 4294967169, %v735_v49  ;;  %v96_v52 = vmul.f32 %v2429_v42, %v76_v50  ;;  %v1540_v49 = vld [vmem:[#allocation2 + $0x38] sm:$0xff]  ;;  %v1553_v50 = vld [vmem:[#allocation2 + $0xa0] sm:$0xff] }
  0x6b   :  { %1608 = vmatpush.msra.mxu1 %v1540_v49  ;;  %1652 = vmatpush.msra.mxu2 %v1553_v50 }
  0x6c   :  { %v741_v53 = vadd.s32 1, %v2126_v51  ;;  %v2445_v54 = vadd.f32 %v2434_v43, %v96_v52 }
  0x6e   :  { %3934 = vst [vmem:[#allocation7_spill] sm:$0xff] %v2445_v54  ;;  %vm742_vm8 = vcmp.gt.s32.totalorder %v741_v53, 0  ;;  %v889_v55 = vand.u32 2139095040, %v2445_v54 }
  0x6f   :  { %v2448_v56 = vsel %vm742_vm8, %v741_v53, 0  ;;  %v1570_v53 = vld [vmem:[#allocation2 + $0x128] sm:$0xf] }
  0x70   :  { %v2451_v57 = vand.u32 31, %v2448_v56  ;;  %v890_v58 = vshrl.u32 %v889_v55, 23  ;;  %v1539_v55 = vld [vmem:[#allocation2 + $0x30] sm:$0xff]  ;;  %2186 = vmatpush.msk.msra.mxu3 %vm1596_vm10, %v1570_v53  ;;  %v2510_v22 = vshrl.u32 %v2448_v56, 5  ;;  %v1533_v53 = vld [vmem:[#allocation2] sm:$0xff] }
  0x71   :  { %1609 = vmatpush.msra.mxu1 %v1539_v55 }
  0x72   :  { %3935 = vst [vmem:[#allocation8_spill] sm:$0xff] %v2451_v57  ;;  %v2454_v60 = vsub.s32 32, %v2451_v57  ;;  %v2458_v62 = vshll.u32 %v3886_v61, %v2451_v57  ;;  %v2129_v1 = vadd.s32 4294967169, %v890_v58  ;;  %v1552_v58 = vld [vmem:[#allocation2 + $0x98] sm:$0xff]  ;;  %1693 = vmatpush.msra.mxu3 %v1569_v63  ;;  %vm766_vm12 = vcmp.lt.s32.totalorder %v2510_v22, 4 }
  0x73   :  { %1653 = vmatpush.msra.mxu2 %v1552_v58  ;;  %3939 = vst [vmem:[#allocation12_spill] sm:$0xff] %v2510_v22 }
  0x74   :  { %3936 = vst [vmem:[#allocation9_spill] sm:$0xff] %v2454_v60  ;;  %v2462_v3 = vshrl.u32 %v3890_v2, %v2454_v60  ;;  %v896_v5 = vadd.s32 1, %v2129_v1  ;;  %v1538_v1 = vld [vmem:[#allocation2 + $0x28] sm:$0xff]  ;;  %v758_v13 = vshrl.u32 %v3886_v61, %v2454_v60 }
  0x75   :  { %1610 = vmatpush.msra.mxu1 %v1538_v1  ;;  %1654 = vmatpush.msra.mxu2 %v1551_v8 }
  0x76   :  { %v762_v6 = vor.u32 %v2462_v3, %v2458_v62  ;;  %vm897_vm9 = vcmp.gt.s32.totalorder %v896_v5, 0 }
  0x77   :  { %v2466_v9 = vsel %vm897_vm9, %v896_v5, 0  ;;  %1611 = vmatpush.msra.mxu1 %v1537_v16  ;;  %1655 = vmatpush.msra.mxu2 %v1550_v21 }
  0x78   :  { %v2469_v11 = vand.u32 31, %v2466_v9  ;;  %v2541_v55 = vshrl.u32 %v2466_v9, 5 }
  0x7a   :  { %3937 = vst [vmem:[#allocation10_spill] sm:$0xff] %v2469_v11  ;;  %v61_v12 = vpop.permute.xlu1 %60  ;;  %v51_v15 = vpop.permute.xlu0 %50  ;;  %v2473_v18 = vsub.s32 32, %v2469_v11  ;;  %v2477_v19 = vshll.u32 %v3886_v61, %v2469_v11  ;;  %v912_v1 = vshll.u32 %v3888_v10, %v2469_v11  ;;  %vm921_vm0 = vcmp.lt.s32.totalorder %v2541_v55, 4 }
  0x7b   :  { %v93_v14 = vmul.f32 %v2429_v42, %v61_v12  ;;  %v91_v20 = vmul.f32 %v2429_v42, %v51_v15  ;;  %v757_v12 = vshll.u32 %v3888_v10, %v2451_v57  ;;  %v1568_v15 = vld [vmem:[#allocation2 + $0x118] sm:$0xff] }
  0x7c   :  { %3938 = vst [vmem:[#allocation11_spill] sm:$0xff] %v2473_v18  ;;  %v2482_v23 = vshrl.u32 %v3890_v2, %v2473_v18  ;;  %1694 = vmatpush.msra.mxu3 %v1568_v15 }
  0x7d   :  { %v2485_v24 = vadd.f32 %v2434_v43, %v93_v14  ;;  %v2488_v25 = vadd.f32 %v2434_v43, %v91_v20 }
  0x7f   :  { %v114_v29 = vand.u32 2139095040, %v2488_v25  ;;  %v424_v32 = vand.u32 2139095040, %v2485_v24 }
  0x81   :  { %v115_v38 = vshrl.u32 %v114_v29, 23  ;;  %v425_v45 = vshrl.u32 %v424_v32, 23  ;;  %v1567_v29 = vld [vmem:[#allocation2 + $0x110] sm:$0xff]  ;;  %v1536_v32 = vld [vmem:[#allocation2 + $0x18] sm:$0xff] }
  0x82   :  { %v66_v33 = vpop.permute.xlu1 %65  ;;  %v56_v35 = vpop.permute.xlu0 %55  ;;  %1695 = vmatpush.msra.mxu3 %v1567_v29  ;;  %1612 = vmatpush.msra.mxu1 %v1536_v32 }
  0x83   :  { %v94_v34 = vmul.f32 %v2429_v42, %v66_v33  ;;  %v92_v39 = vmul.f32 %v2429_v42, %v56_v35  ;;  %v2114_v51 = vadd.s32 4294967169, %v115_v38  ;;  %v2120_v4 = vadd.s32 4294967169, %v425_v45  ;;  %v1549_v33 = vld [vmem:[#allocation2 + $0x80] sm:$0xff]  ;;  %v1535_v38 = vld [vmem:[#allocation2 + $0x10] sm:$0xff]  ;;  %v1534_v45 = vld [vmem:[#allocation2 + $0x8] sm:$0xff] }
  0x84   :  { %1656 = vmatpush.msra.mxu2 %v1549_v33  ;;  %1696 = vmatpush.msra.mxu3 %v1566_v36  ;;  %v3882_v36 = vmov 0.0  }
  0x85   :  { %v2497_v40 = vadd.f32 %v2434_v43, %v94_v34  ;;  %v2500_v47 = vadd.f32 %v2434_v43, %v92_v39  ;;  %v121_v17 = vadd.s32 1, %v2114_v51  ;;  %v431_v30 = vadd.s32 1, %v2120_v4  ;;  %v1565_v39 = vld [vmem:[#allocation2 + $0x100] sm:$0xff]  ;;  %1613 = vmatpush.msra.mxu1 %v1535_v38 }
  0x86   :  { %v2514_v34 = vor.u32 %v758_v13, %v757_v12  ;;  %1697 = vmatpush.msra.mxu3 %v1565_v39  ;;  %v913_v4 = vshrl.u32 %v3886_v61, %v2473_v18  ;;  %v1439_v12 = vpop.permute.xlu2 %1438  ;;  %v3879_v13 = vand.u32 2147483647, %v2488_v25 }
  0x87   :  { %v579_v48 = vand.u32 2139095040, %v2497_v40  ;;  %v269_v52 = vand.u32 2139095040, %v2500_v47  ;;  %vm122_vm11 = vcmp.gt.s32.totalorder %v121_v17, 0  ;;  %vm432_vm14 = vcmp.gt.s32.totalorder %v431_v30, 0  ;;  %1614 = vmatpush.msra.mxu1 %v1534_v45 }
  0x88   :  { %3940 = vst [vmem:[#allocation13_spill] sm:$0xff] %v2514_v34  ;;  %v2534_v49 = vsel %vm766_vm12, %v2514_v34, 920167782  ;;  %v433_v58 = vsel %vm432_vm14, %v431_v30, 0  ;;  %v2591_v32 = vand.u32 8388607, %v3879_v13  ;;  %1934 = vmatpush.msrb.mxu3 %v1859_v0 }
  0x89   :  { %v580_v59 = vshrl.u32 %v579_v48, 23  ;;  %v270_v5 = vshrl.u32 %v269_v52, 23  ;;  %v2526_v48 = vsel %vm122_vm11, %v121_v17, 0  ;;  %3943 = vst [vmem:[#allocation16_spill] sm:$0xff] %v2534_v49  ;;  %1615 = vmatpush.msra.mxu1 %v1533_v53  ;;  %v2569_v15 = vand.u32 31, %v433_v58 }
  0x8a   :  { %v86_v7 = vpop.permute.xlu1 %85  ;;  %v81_v14 = vpop.permute.xlu0 %80 }
  0x8b   :  { %v2123_v20 = vadd.s32 4294967169, %v580_v59  ;;  %v98_v26 = vmul.f32 %v2429_v42, %v86_v7  ;;  %v97_v27 = vmul.f32 %v2429_v42, %v81_v14  ;;  %v2117_v31 = vadd.s32 4294967169, %v270_v5 }
  0x8c   :  { %v1425_v42 = vlaneseq  ;;  %v2555_v5 = vand.u32 31, %v2526_v48  ;;  %v2567_v14 = vsel %vm766_vm12, %v762_v6, 1326507024  ;;  %v2586_v6 = vshrl.u32 %v433_v58, 5 }
  0x8d   :  { %v586_v35 = vadd.s32 1, %v2123_v20  ;;  %v2517_v56 = vadd.f32 %v2434_v43, %v98_v26  ;;  %v2520_v37 = vadd.f32 %v2434_v43, %v97_v27  ;;  %v276_v44 = vadd.s32 1, %v2117_v31  ;;  %3944 = vst [vmem:[#allocation17_spill] sm:$0xff] %v2567_v14 }
  0x8e   :  { %v2538_v52 = vand.u32 127, %v1425_v42  ;;  %v2576_v27 = vor.u32 %v913_v4, %v912_v1  ;;  %v2580_v62 = vsub.s32 32, %v2555_v5  ;;  %v3884_v31 = vmov 1.0  }
  0x8f   :  { %3941 = vst [vmem:[#allocation14_spill] sm:$0xff] %v2517_v56  ;;  %vm587_vm13 = vcmp.gt.s32.totalorder %v586_v35, 0  ;;  %v1199_v50 = vand.u32 2139095040, %v2517_v56  ;;  %v1044_v51 = vand.u32 2139095040, %v2520_v37  ;;  %vm277_vm15 = vcmp.gt.s32.totalorder %v276_v44, 0 }
  0x90   :  { %3942 = vst [vmem:[#allocation15_spill] sm:$0xff] %v2520_v37  ;;  %v2523_v41 = vsel %vm587_vm13, %v586_v35, 0  ;;  %v2572_v16 = vadd.s32 128, %v2538_v52  ;;  %v278_v20 = vsel %vm277_vm15, %v276_v44, 0  ;;  %v2584_v3 = vadd.s32 256, %v2538_v52 }
  0x91   :  { %v2529_v43 = vand.u32 31, %v2523_v41  ;;  %v1200_v7 = vshrl.u32 %v1199_v50, 23  ;;  %v1045_v8 = vshrl.u32 %v1044_v51, 23  ;;  %3945 = vst [vmem:[#allocation18_spill] sm:$0xff] %v2576_v27  ;;  %v2594_v33 = vsub.s32 32, %v2569_v15 }
  0x92   :  { %vm1462_vm1 = vcmp.eq.s32.totalorder %v1439_v12, %v2572_v16  ;;  %v2596_v35 = vand.u32 31, %v278_v20  ;;  %vm1463_vm2 = vcmp.eq.s32.totalorder %v1439_v12, %v2584_v3  ;;  %v138_v39 = vshrl.u32 %v3886_v61, %v2580_v62 }
  0x93   :  { %v2544_v59 = vsub.s32 32, %v2529_v43  ;;  %v2548_v63 = vshll.u32 %v3886_v61, %v2529_v43  ;;  %v2135_v21 = vadd.s32 4294967169, %v1200_v7  ;;  %v2132_v26 = vadd.s32 4294967169, %v1045_v8  ;;  %2178 = vmatmul.msk.f32.vlgmr.msra.gmra.mxu2 %vm1462_vm1, %v3884_v31  ;;  %v1442_v38 = vpop.permute.xlu0 %1441 }
  0x94   :  { %v2148_v42 = vsel %vm1463_vm2, 1.0, %v3882_v36  ;;  %vm1461_vm6 = vcmp.eq.s32.totalorder %v1439_v12, %v2538_v52  ;;  %v447_v50 = vshll.u32 %v3888_v10, %v2569_v15  ;;  %v141_v51 = vshrl.u32 %v3890_v2, %v2580_v62 }
  0x95   :  { %v2559_v9 = vshrl.u32 %v3890_v2, %v2544_v59  ;;  %v1206_v29 = vadd.s32 1, %v2135_v21  ;;  %v1051_v30 = vadd.s32 1, %v2132_v26  ;;  %2187 = vmatmul.msk.f32.vlgmr.msra.gmra.mxu3 %vm1571_vm5, %v2148_v42  ;;  %2170 = vmatmul.msk.f32.vlgmr.msra.gmra.mxu1 %vm1461_vm6, %v3884_v31  ;;  %v137_v1 = vshll.u32 %v3888_v10, %v2555_v5 }
  0x96   :  { %v2622_v4 = vsub.s32 32, %v2596_v35  ;;  %vm1465_vm7 = vcmp.eq.s32.totalorder %v1442_v38, %v2572_v16  ;;  %vm1466_vm8 = vcmp.eq.s32.totalorder %v1442_v38, %v2584_v3  ;;  %v2628_v7 = vshll.u32 %v3886_v61, %v2569_v15 }
  0x97   :  { %vm1207_vm3 = vcmp.gt.s32.totalorder %v1206_v29, 0  ;;  %vm1052_vm4 = vcmp.gt.s32.totalorder %v1051_v30, 0  ;;  %v2631_v8 = vshrl.u32 %v2526_v48, 5  ;;  %v140_v12 = vshll.u32 %v3886_v61, %v2555_v5 }
  0x98   :  { %v2602_v44 = vsel %vm1207_vm3, %v1206_v29, 0  ;;  %v2604_v45 = vsel %vm1052_vm4, %v1051_v30, 0  ;;  %v448_v26 = vshrl.u32 %v3886_v61, %v2594_v33  ;;  %v2642_v29 = vshrl.u32 %v3890_v2, %v2594_v33 }
  0x99   :  { %3946 = vst [vmem:[#allocation19_spill] sm:$0xff] %v2602_v44  ;;  %v2613_v53 = vand.u32 31, %v2602_v44  ;;  %v2616_v58 = vand.u32 31, %v2604_v45  ;;  %v2644_v30 = vor.u32 %v138_v39, %v137_v1  ;;  %v142_v48 = vor.u32 %v141_v51, %v140_v12  ;;  %v2669_v12 = vpop.permute.xlu1 %1444 }
  0x9a   :  { %3947 = vst [vmem:[#allocation20_spill] sm:$0xff] %v2604_v45  ;;  %v2151_v13 = vsel %vm1466_vm8, 1.0, %v3882_v36  ;;  %v293_v39 = vshrl.u32 %v3886_v61, %v2622_v4  ;;  %vm1464_vm9 = vcmp.eq.s32.totalorder %v1442_v38, %v2538_v52  ;;  %v2675_v36 = vsel %vm921_vm0, %v2576_v27, 920167782  ;;  %v1856_v38 = vld [vmem:[#allocation2 + $0x210] sm:$0xff] }
  0x9b   :  { %3948 = vst [vmem:[#allocation21_spill] sm:$0xff] %v2613_v53  ;;  %v2636_v21 = vsub.s32 32, %v2613_v53  ;;  %v2647_v42 = vsub.s32 32, %v2616_v58  ;;  %v2651_v28 = vshll.u32 %v3886_v61, %v2613_v53  ;;  %2179 = vmatmul.msk.f32.gmra.mxu2 %vm1465_vm7, %v3884_v31  ;;  %v2663_v1 = vshll.u32 %v3886_v61, %v2616_v58 }
  0x9c   :  { %3949 = vst [vmem:[#allocation22_spill] sm:$0xff] %v2616_v58  ;;  %v2677_v31 = vshrl.u32 %v278_v20, 5  ;;  %v119_v10 = vor.u32 8388608, %v2591_v32  ;;  %vm146_vm11 = vcmp.lt.s32.totalorder %v2631_v8, 4  ;;  %v1858_v20 = vld [vmem:[#allocation2 + $0x220] sm:$0xff]  ;;  %v1354_v32 = vld [vmem:[%s3874_s2 + $0x18] sm:$0xff]  ;;  %v2695_v61 = vor.u32 %v448_v26, %v447_v50 }
  0x9d   :  { %3950 = vst [vmem:[#allocation23_spill] sm:$0xff] %v2636_v21  ;;  %v2655_v17 = vshrl.u32 %v3890_v2, %v2636_v21  ;;  %v2667_v51 = vshrl.u32 %v3890_v2, %v2647_v42  ;;  %v3957_v2 = vmov 2102212464   ;;  %v3958_v21 = vmov 1326507024   ;;  %2188 = vmatmul.msk.f32.gmra.mxu3 %vm1571_vm5, %v2151_v13  ;;  %v1353_v13 = vld [vmem:[%s3874_s2 + $0x10] sm:$0xff]  ;;  %1396 = vmatpush.msra.mxu0 %v1354_v32 }
  0x9e   :  { %3951 = vst [vmem:[#allocation24_spill] sm:$0xff] %v2647_v42  ;;  %v292_v56 = vshll.u32 %v3957_v2, %v2596_v35  ;;  %v2687_v0 = vshrl.u32 %v3958_v21, %v2622_v4  ;;  %vm456_vm13 = vcmp.lt.s32.totalorder %v2586_v6, 4  ;;  %v152_v21 = vsel %vm146_vm11, %v2644_v30, 920167782  ;;  %1935 = vmatpush.msrb.mxu3 %v1858_v20 }
  0x9f   :  { %3952 = vst [vmem:[#allocation25_spill] sm:$0xff] %v2651_v28  ;;  %v3959_v37 = vmov 1.0   ;;  %vm1469_vm14 = vcmp.eq.s32.totalorder %v2669_v12, %v2584_v3  ;;  %v156_v50 = vsel %vm146_vm11, %v142_v48, 1326507024  ;;  %v3960_v28 = vmov 920167782   ;;  %1397 = vmatpush.msra.mxu0 %v1353_v13 }
  0xa0   :  { %3953 = vst [vmem:[#allocation26_spill] sm:$0xff] %v2655_v17  ;;  %2171 = vmatmul.msk.f32.gmra.mxu1 %vm1464_vm9, %v3959_v37  ;;  %v2713_v26 = vor.u32 %v293_v39, %v292_v56  ;;  %v2717_v17 = vshll.u32 %v3960_v28, %v2596_v35  ;;  %vm1468_vm15 = vcmp.eq.s32.totalorder %v2669_v12, %v2572_v16  ;;  %vm301_vm1 = vcmp.lt.s32.totalorder %v2677_v31, 4 }
  0xa1   :  { %3954 = vst [vmem:[#allocation27_spill] sm:$0xff] %v2663_v1  ;;  %v3904_v20 = vmov 683565275   ;;  %v3912_v39 = vmov 2131351028   ;;  %v3961_v27 = vmov 0.0   ;;  %vm1467_vm2 = vcmp.eq.s32.totalorder %v2669_v12, %v2538_v52 }
  0xa2   :  { %3955 = vst [vmem:[#allocation28_spill] sm:$0xff] %v2667_v51  ;;  %v128_v1 = vshll.u32 %v3904_v20, %v2555_v5  ;;  %v3908_v51 = vmov 2475754826   ;;  %v132_v53 = vshrl.u32 %v3912_v39, %v2580_v62  ;;  %v297_v32 = vor.u32 %v2687_v0, %v2717_v17  ;;  %v2736_v20 = vpop.permute.xlu2 %1447  ;;  %v1855_v17 = vld [vmem:[#allocation2 + $0x208] sm:$0xff] }
  0xa3   :  { %3956 = vst [vmem:[#allocation29_spill] sm:$0xff] %v2675_v36  ;;  %v1857_v36 = vld [vmem:[#allocation2 + $0x218] sm:$0xff]  ;;  %v129_v56 = vshrl.u32 %v3908_v51, %v2580_v62  ;;  %v131_v48 = vshll.u32 %v3908_v51, %v2555_v5  ;;  %v134_v42 = vshll.u32 %v3912_v39, %v2555_v5  ;;  %v135_v51 = vshrl.u32 %v3957_v2, %v2580_v62  ;;  %v1352_v0 = vld [vmem:[%s3874_s2 + $0x8] sm:$0xff]  ;;  %v2752_v5 = vpop.permute.xlu1 %1450 }
  0xa4   :  { %1936 = vmatpush.msrb.mxu3 %v1857_v36  ;;  %v2154_v36 = vsel %vm1469_vm14, 1.0, %v3961_v27  ;;  %2180 = vmatmul.msk.f32.gmra.mxu2 %vm1468_vm15, %v3959_v37  ;;  %vm145_vm3 = vcmp.lt.s32.totalorder %v2631_v8, 3  ;;  %vm143_vm4 = vcmp.lt.s32.totalorder %v2631_v8, 1  ;;  %vm1471_vm6 = vcmp.eq.s32.totalorder %v2736_v20, %v2572_v16 }
  0xa5   :  { %v130_v13 = vor.u32 %v129_v56, %v128_v1  ;;  %v133_v18 = vor.u32 %v132_v53, %v131_v48  ;;  %1398 = vmatpush.msra.mxu0 %v1352_v0  ;;  %v136_v39 = vor.u32 %v135_v51, %v134_v42  ;;  %v157_v11 = vsel %vm145_vm3, %v2644_v30, %v156_v50  ;;  %v1854_v51 = vld [vmem:[#allocation2 + $0x200] sm:$0xff]  ;;  %v1853_v30 = vld [vmem:[#allocation2 + $0x1f8] sm:$0xff] }
  0xa6   :  { %1937 = vmatpush.msrb.mxu3 %v1856_v38  ;;  %v2758_v38 = vshll.u32 %v119_v10, 8  ;;  %vm1472_vm7 = vcmp.eq.s32.totalorder %v2736_v20, %v2584_v3  ;;  %v3962_v53 = vmov 683565275   ;;  %v1351_v10 = vld [vmem:[%s3874_s2] sm:$0xff]  ;;  %vm144_vm8 = vcmp.lt.s32.totalorder %v2631_v8, 2 }
  0xa7   :  { %v127_v1 = vshrl.u32 %v3962_v53, %v2580_v62  ;;  %v151_v42 = vsel %vm143_vm4, %v130_v13, %v133_v18  ;;  %2189 = vmatmul.msk.f32.gmra.mxu3 %vm1571_vm5, %v2154_v36  ;;  %v148_v50 = vsel %vm146_vm11, %v136_v39, 2102212464  ;;  %v153_v56 = vsel %vm145_vm3, %v136_v39, %v152_v21  ;;  %1399 = vmatpush.msra.mxu0 %v1351_v10 }
  0xa8   :  { %1938 = vmatpush.msrb.mxu3 %v1855_v17  ;;  %v155_v62 = vsel %vm143_vm4, %v133_v18, %v136_v39  ;;  %2172 = vmatmul.msk.f32.gmra.mxu1 %vm1467_vm2, %v3959_v37  ;;  %vm1475_vm9 = vcmp.eq.s32.totalorder %v2752_v5, %v2584_v3  ;;  %v154_v48 = vsel %vm144_vm8, %v151_v42, %v153_v56  ;;  %v3922_v21 = vand.u32 2147483647, %v2500_v47 }
  0xa9   :  { %v158_v36 = vsel %vm144_vm8, %v155_v62, %v157_v11  ;;  %v147_v39 = vsel %vm143_vm4, %v127_v1, %v130_v13  ;;  %v160_v17 = vand.u32 65535, %v2758_v38  ;;  %v161_v54 = vshrl.u32 %v2758_v38, 16 }
  0xaa   :  { %1939 = vmatpush.msrb.mxu3 %v1854_v51  ;;  %v162_v12 = vand.u32 65535, %v158_v36  ;;  %v163_v0 = vshrl.u32 %v158_v36, 16  ;;  %v149_v51 = vsel %vm145_vm3, %v133_v18, %v148_v50  ;;  %v184_v42 = vand.u32 65535, %v154_v48 }
  0xab   :  { %v185_v56 = vshrl.u32 %v154_v48, 16  ;;  %v3963_v11 = vor.u32 %v2642_v29, %v2628_v7  ;;  %v2806_v13 = vsel %vm301_vm1, %v2713_v26, 920167782  ;;  %v2810_v1 = vsel %vm301_vm1, %v297_v32, 1326507024  ;;  %v2824_v7 = vpop.permute.xlu2 %1453 }
  0xac   :  { %1940 = vmatpush.msrb.mxu3 %v1853_v30  ;;  %vm1470_vm11 = vcmp.eq.s32.totalorder %v2736_v20, %v2538_v52  ;;  %2181 = vmatmul.msk.f32.gmra.mxu2 %vm1471_vm6, %v3959_v37  ;;  %v2157_v18 = vsel %vm1472_vm7, 1.0, %v3961_v27  ;;  %vm1474_vm14 = vcmp.eq.s32.totalorder %v2752_v5, %v2572_v16  ;;  %v165_v29 = vmul.u32 %v163_v0, %v160_v17 }
  0xad   :  { %v2801_v10 = vsel %vm456_vm13, %v3963_v11, 1326507024  ;;  %v166_v32 = vmul.u32 %v162_v12, %v161_v54  ;;  %v2160_v30 = vsel %vm1475_vm9, 1.0, %v3961_v27  ;;  %vm1473_vm15 = vcmp.eq.s32.totalorder %v2752_v5, %v2538_v52 }
  0xae   :  { %v2834_v50 = vsel %vm144_vm8, %v147_v39, %v149_v51  ;;  %v187_v62 = vmul.u32 %v185_v56, %v160_v17  ;;  %v273_v48 = vand.u32 8388607, %v3922_v21  ;;  %v164_v36 = vmul.u32 %v162_v12, %v160_v17 }
  0xaf   :  { %v168_v11 = vshll.u32 %v165_v29, 16  ;;  %v188_v58 = vmul.u32 %v184_v42, %v161_v54  ;;  %v283_v49 = vshll.u32 %v3962_v53, %v2596_v35  ;;  %2190 = vmatmul.msk.f32.gmra.mxu3 %vm1571_vm5, %v2157_v18  ;;  %vm1478_vm2 = vcmp.eq.s32.totalorder %v2824_v7, %v2584_v3 }
  0xb0   :  { %v167_v45 = vmul.u32 %v163_v0, %v161_v54  ;;  %v186_v44 = vmul.u32 %v184_v42, %v160_v17  ;;  %v189_v8 = vmul.u32 %v185_v56, %v161_v54  ;;  %v190_v39 = vshll.u32 %v187_v62, 16  ;;  %2173 = vmatmul.msk.f32.gmra.mxu1 %vm1470_vm11, %v3959_v37 }
  0xb1   :  { %v170_v12 = vshll.u32 %v166_v32, 16  ;;  %vm172_vm3 = vc.u32 %v164_v36, %v168_v11  ;;  %v174_v51 = vadd.s32 %v168_v11, %v164_v36  ;;  %v3964_v21 = vmov 2475754826  }
  0xb2   :  { %v284_v34 = vshrl.u32 %v3964_v21, %v2622_v4  ;;  %vm1477_vm4 = vcmp.eq.s32.totalorder %v2824_v7, %v2572_v16  ;;  %v169_v18 = vshrl.u32 %v165_v29, 16  ;;  %v3965_v14 = vmov 0  }
  0xb3   :  { %v173_v0 = vsel %vm172_vm3, 1, %v3965_v14  ;;  %vm194_vm6 = vc.u32 %v186_v44, %v190_v39  ;;  %v196_v54 = vadd.s32 %v190_v39, %v186_v44  ;;  %vm176_vm7 = vc.u32 %v174_v51, %v170_v12 }
  0xb4   :  { %v175_v17 = vadd.s32 %v173_v0, %v167_v45  ;;  %v192_v42 = vshll.u32 %v188_v58, 16  ;;  %v195_v20 = vsel %vm194_vm6, 1, %v3965_v14  ;;  %v171_v56 = vshrl.u32 %v166_v32, 16  ;;  %2182 = vmatmul.msk.f32.gmra.mxu2 %vm1474_vm14, %v3959_v37 }
  0xb5   :  { %v177_v22 = vsel %vm176_vm7, 1, %v3965_v14  ;;  %v197_v36 = vadd.s32 %v195_v20, %v189_v8  ;;  %v274_v11 = vor.u32 8388608, %v273_v48  ;;  %v2858_v60 = vor.u32 %v284_v34, %v283_v49 }
  0xb6   :  { %v179_v29 = vadd.s32 %v177_v22, %v175_v17  ;;  %vm198_vm8 = vc.u32 %v196_v54, %v192_v42  ;;  %v286_v44 = vshll.u32 %v3964_v21, %v2596_v35  ;;  %v3966_v32 = vmov 2131351028  }
  0xb7   :  { %v199_v45 = vsel %vm198_vm8, 1, %v3965_v14  ;;  %v287_v39 = vshrl.u32 %v3966_v32, %v2622_v4  ;;  %v289_v48 = vshll.u32 %v3966_v32, %v2596_v35  ;;  %v290_v8 = vshrl.u32 %v3957_v2, %v2622_v4  ;;  %2191 = vmatmul.msk.f32.gmra.mxu3 %vm1571_vm5, %v2160_v30 }
  0xb8   :  { %v180_v12 = vadd.s32 %v179_v29, %v169_v18  ;;  %v191_v51 = vshrl.u32 %v187_v62, 16  ;;  %v193_v22 = vshrl.u32 %v188_v58, 16  ;;  %v201_v0 = vadd.s32 %v199_v45, %v197_v36  ;;  %2174 = vmatmul.msk.f32.gmra.mxu1 %vm1473_vm15, %v3959_v37 }
  0xb9   :  { %v2870_v34 = vor.u32 %v287_v39, %v286_v44  ;;  %v291_v49 = vor.u32 %v290_v8, %v289_v48  ;;  %vm298_vm9 = vcmp.lt.s32.totalorder %v2677_v31, 1  ;;  %vm300_vm11 = vcmp.lt.s32.totalorder %v2677_v31, 3 }
  0xba   :  { %v2878_v35 = vadd.s32 %v180_v12, %v171_v56  ;;  %v202_v18 = vadd.s32 %v201_v0, %v191_v51  ;;  %v312_v58 = vsel %vm300_vm11, %v2713_v26, %v2810_v1  ;;  %v2884_v30 = vshll.u32 %v274_v11, 8  ;;  %v2902_v1 = vpop.permute.xlu0 %1456 }
  0xbb   :  { %v2886_v62 = vadd.s32 %v196_v54, %v192_v42  ;;  %v306_v17 = vsel %vm298_vm9, %v2858_v60, %v2870_v34  ;;  %v308_v5 = vsel %vm300_vm11, %v291_v49, %v2806_v13  ;;  %v310_v20 = vsel %vm298_vm9, %v2870_v34, %v291_v49 }
  0xbc   :  { %v2163_v26 = vsel %vm1478_vm2, 1.0, %v3961_v27  ;;  %v203_v54 = vadd.s32 %v202_v18, %v193_v22  ;;  %v204_v42 = vmul.u32 %v2758_v38, %v2834_v50  ;;  %vm299_vm14 = vcmp.lt.s32.totalorder %v2677_v31, 2  ;;  %2183 = vmatmul.msk.f32.gmra.mxu2 %vm1477_vm4, %v3959_v37 }
  0xbd   :  { %vm206_vm15 = vc.u32 %v2878_v35, %v2886_v62  ;;  %v309_v13 = vsel %vm299_vm14, %v306_v17, %v308_v5  ;;  %v313_v56 = vsel %vm299_vm14, %v310_v20, %v312_v58  ;;  %v315_v36 = vand.u32 65535, %v2884_v30 }
  0xbe   :  { %v207_v11 = vadd.s32 1, %v203_v54  ;;  %v316_v38 = vshrl.u32 %v2884_v30, 16  ;;  %v317_v50 = vand.u32 65535, %v313_v56  ;;  %v318_v29 = vshrl.u32 %v313_v56, 16 }
  0xbf   :  { %vm1476_vm2 = vcmp.eq.s32.totalorder %v2824_v7, %v2538_v52  ;;  %vm1481_vm3 = vcmp.eq.s32.totalorder %v2902_v1, %v2584_v3  ;;  %v339_v44 = vand.u32 65535, %v309_v13  ;;  %v340_v45 = vshrl.u32 %v309_v13, 16  ;;  %2192 = vmatmul.msk.f32.gmra.mxu3 %vm1571_vm5, %v2163_v26 }
  0xc0   :  { %v2924_v39 = vshrl.u32 %v2523_v41, 5  ;;  %v208_v48 = vsel %vm206_vm15, %v207_v11, %v203_v54  ;;  %v320_v8 = vmul.u32 %v318_v29, %v315_v36  ;;  %v321_v12 = vmul.u32 %v317_v50, %v316_v38  ;;  %2175 = vmatmul.msk.f32.gmra.mxu1 %vm1476_vm2, %v3959_v37 }
  0xc1   :  { %v602_v51 = vshll.u32 %v3957_v2, %v2529_v43  ;;  %v603_v22 = vshrl.u32 %v3960_v28, %v2544_v59  ;;  %v209_v7 = vadd.s32 %v208_v48, %v204_v42  ;;  %v342_v0 = vmul.u32 %v340_v45, %v315_v36 }
  0xc2   :  { %vm1480_vm4 = vcmp.eq.s32.totalorder %v2902_v1, %v2572_v16  ;;  %v2166_v41 = vsel %vm1481_vm3, 1.0, %v3961_v27  ;;  %v319_v18 = vmul.u32 %v317_v50, %v315_v36  ;;  %v323_v58 = vshll.u32 %v320_v8, 16 }
  0xc3   :  { %v210_v17 = vadd.s32 536870912, %v209_v7  ;;  %v322_v5 = vmul.u32 %v318_v29, %v316_v38  ;;  %v343_v20 = vmul.u32 %v339_v44, %v316_v38  ;;  %v345_v54 = vshll.u32 %v342_v0, 16 }
  0xc4   :  { %v325_v13 = vshll.u32 %v321_v12, 16  ;;  %vm327_vm6 = vc.u32 %v319_v18, %v323_v58  ;;  %v329_v56 = vadd.s32 %v323_v58, %v319_v18  ;;  %v341_v11 = vmul.u32 %v339_v44, %v315_v36  ;;  %2184 = vmatmul.msk.f32.gmra.mxu2 %vm1480_vm4, %v3959_v37 }
  0xc5   :  { %v211_v26 = vshrl.u32 %v210_v17, 30  ;;  %v328_v42 = vsel %vm327_vm6, 1, %v3965_v14  ;;  %v344_v48 = vmul.u32 %v340_v45, %v316_v38  ;;  %v347_v28 = vshll.u32 %v343_v20, 16 }
  0xc6   :  { %v330_v50 = vadd.s32 %v328_v42, %v322_v5  ;;  %vm331_vm7 = vc.u32 %v329_v56, %v325_v13  ;;  %vm349_vm8 = vc.u32 %v341_v11, %v345_v54  ;;  %v351_v29 = vadd.s32 %v345_v54, %v341_v11 }
  0xc7   :  { %v212_v57 = vshll.u32 %v211_v26, 30  ;;  %v303_v46 = vsel %vm301_vm1, %v291_v49, 2102212464  ;;  %v332_v36 = vsel %vm331_vm7, 1, %v3965_v14  ;;  %v350_v44 = vsel %vm349_vm8, 1, %v3965_v14  ;;  %2193 = vmatmul.msk.f32.gmra.mxu3 %vm1571_vm5, %v2166_v41 }
  0xc8   :  { %vm113_vm15 = vcmp.lt.s32.totalorder %v2488_v25, 0  ;;  %v324_v38 = vshrl.u32 %v320_v8, 16  ;;  %v334_v45 = vadd.s32 %v332_v36, %v330_v50  ;;  %v352_v18 = vadd.s32 %v350_v44, %v344_v48 }
  0xc9   :  { %vm353_vm2 = vc.u32 %v351_v29, %v347_v28  ;;  %v213_v58 = vsub.s32 %v209_v7, %v212_v57  ;;  %v282_v17 = vshrl.u32 %v3962_v53, %v2622_v4  ;;  %v326_v5 = vshrl.u32 %v321_v12, 16 }
  0xca   :  { %v354_v54 = vsel %vm353_vm2, 1, %v3965_v14  ;;  %v335_v49 = vadd.s32 %v334_v45, %v324_v38  ;;  %v346_v13 = vshrl.u32 %v342_v0, 16  ;;  %v421_v11 = vand.u32 2147483647, %v2485_v24 }
  0xcb   :  { %v356_v56 = vadd.s32 %v354_v54, %v352_v18  ;;  %vm214_vm1 = vcmp.lt.s32.totalorder %v213_v58, 0  ;;  %v215_v42 = vsub.s32 0, %v213_v58  ;;  %v302_v8 = vsel %vm298_vm9, %v282_v17, %v2858_v60 }
  0xcc   :  { %v304_v57 = vsel %vm300_vm11, %v2870_v34, %v303_v46  ;;  %vm611_vm3 = vcmp.lt.s32.totalorder %v2924_v39, 4  ;;  %v2957_v4 = vadd.s32 %v335_v49, %v326_v5  ;;  %v348_v12 = vshrl.u32 %v343_v20, 16 }
  0xcd   :  { %v357_v7 = vadd.s32 %v356_v56, %v346_v13  ;;  %v2959_v0 = vor.u32 %v603_v22, %v602_v51  ;;  %v216_v41 = vsel %vm214_vm1, %v215_v42, %v213_v58  ;;  %v235_v48 = vsub.s32 4, %v211_v26 }
  0xce   :  { %v2961_v50 = vadd.s32 %v351_v29, %v347_v28  ;;  %v3967_v36 = vand.u32 2147483647, %v2488_v25  ;;  %v217_v44 = vclz %v216_v41  ;;  %v305_v46 = vsel %vm299_vm14, %v302_v8, %v304_v57 }
  0xcf   :  { %v358_v34 = vadd.s32 %v357_v7, %v348_v12  ;;  %v428_v20 = vand.u32 8388607, %v421_v11  ;;  %v205_v51 = vadd.s32 %v2886_v62, %v2878_v35  ;;  %v438_v28 = vshll.u32 %v3962_v53, %v2569_v15 }
  0xd0   :  { %vm2965_vm4 = vcmp.le.f32.partialorder %v3967_v36, 0.7853982  ;;  %vm361_vm9 = vc.u32 %v2957_v4, %v2961_v50  ;;  %v439_v22 = vshrl.u32 %v3964_v21, %v2594_v33  ;;  %v2115_v29 = vadd.s32 4294967294, %v217_v44 }
  0xd1   :  { %v362_v38 = vadd.s32 1, %v358_v34  ;;  %v441_v31 = vshll.u32 %v3964_v21, %v2569_v15  ;;  %v442_v45 = vshrl.u32 %v3966_v32, %v2594_v33  ;;  %v236_v35 = vsel %vm113_vm15, %v235_v48, %v211_v26 }
  0xd2   :  { %v359_v62 = vmul.u32 %v2884_v30, %v305_v46  ;;  %v444_v18 = vshll.u32 %v3966_v32, %v2569_v15  ;;  %v445_v17 = vshrl.u32 %v3957_v2, %v2594_v33  ;;  %vm2116_vm11 = vcmp.lt.s32.totalorder %v2115_v29, 0 }
  0xd3   :  { %v363_v5 = vsel %vm361_vm9, %v362_v38, %v358_v34  ;;  %v429_v54 = vor.u32 8388608, %v428_v20  ;;  %v2992_v49 = vor.u32 %v442_v45, %v441_v31  ;;  %v220_v13 = vsel %vm2116_vm11, 0, %v2115_v29  ;;  %v1843_v29 = vld [vmem:[#allocation2 + $0x1a8] sm:$0xff]  ;;  %v1852_v38 = vld [vmem:[#allocation2 + $0x1f0] sm:$0xff]  ;;  %v3023_v31 = vpop.permute.xlu1 %1459 }
  0xd4   :  { %v364_v56 = vadd.s32 %v363_v5, %v359_v62  ;;  %v446_v42 = vor.u32 %v445_v17, %v444_v18  ;;  %vm453_vm14 = vcmp.lt.s32.totalorder %v2586_v6, 1  ;;  %v221_v8 = vsub.s32 32, %v220_v13  ;;  %v1851_v45 = vld [vmem:[#allocation2 + $0x1e8] sm:$0xff]  ;;  %1893 = vmatpush.msrb.mxu0 %v1843_v29  ;;  %1941 = vmatpush.msrb.mxu3 %v1852_v38  ;;  %v1842_v62 = vld [vmem:[#allocation2 + $0x1a0] sm:$0xff] }
  0xd5   :  { %v225_v26 = vsub.s32 4294967266, %v220_v13  ;;  %v440_v57 = vor.u32 %v439_v22, %v438_v28  ;;  %vm455_vm6 = vcmp.lt.s32.totalorder %v2586_v6, 3  ;;  %v462_v15 = vsel %vm456_vm13, %v2695_v61, 920167782  ;;  %v1850_v17 = vld [vmem:[#allocation2 + $0x1e0] sm:$0xff] }
  0xd6   :  { %v3002_v30 = vsel %vm611_vm3, %v2959_v0, 920167782  ;;  %v365_v12 = vadd.s32 536870912, %v364_v56  ;;  %vm454_vm7 = vcmp.lt.s32.totalorder %v2586_v6, 2  ;;  %v222_v7 = vshll.u32 %v213_v58, %v220_v13  ;;  %1942 = vmatpush.msrb.mxu3 %v1851_v45  ;;  %1894 = vmatpush.msrb.mxu0 %v1842_v62 }
  0xd7   :  { %v223_v41 = vshrl.u32 %v205_v51, %v221_v8  ;;  %v226_v48 = vadd.s32 127, %v225_v26  ;;  %v465_v36 = vsel %vm453_vm14, %v2992_v49, %v446_v42  ;;  %v238_v44 = vsel %vm2965_vm4, 0, %v236_v35 }
  0xd8   :  { %v3010_v46 = vshrl.u32 %v365_v12, 30  ;;  %v467_v34 = vsel %vm455_vm6, %v2695_v61, %v2801_v10  ;;  %v3016_v20 = vshll.u32 %v429_v54, 8  ;;  %v437_v51 = vshrl.u32 %v3962_v53, %v2594_v33  ;;  %1943 = vmatpush.msrb.mxu3 %v1850_v17 }
  0xd9   :  { %v224_v28 = vor.u32 %v223_v41, %v222_v7  ;;  %v227_v58 = vshll.u32 %v226_v48, 23  ;;  %v461_v22 = vsel %vm453_vm14, %v440_v57, %v2992_v49  ;;  %vm1479_vm8 = vcmp.eq.s32.totalorder %v2902_v1, %v2538_v52  ;;  %v1849_v41 = vld [vmem:[#allocation2 + $0x1d8] sm:$0xff] }
  0xda   :  { %v367_v61 = vshll.u32 %v3010_v46, 30  ;;  %v463_v10 = vsel %vm455_vm6, %v446_v42, %v462_v15  ;;  %v468_v33 = vsel %vm454_vm7, %v465_v36, %v467_v34  ;;  %vm1483_vm2 = vcmp.eq.s32.totalorder %v3023_v31, %v2572_v16  ;;  %2176 = vmatmul.msk.f32.gmra.mxu1 %vm1479_vm8, %v3959_v37  ;;  %1944 = vmatpush.msrb.mxu3 %v1849_v41 }
  0xdb   :  { %v228_v35 = vor.u32 4788187, %v227_v58  ;;  %vm1484_vm1 = vcmp.eq.s32.totalorder %v3023_v31, %v2584_v3  ;;  %v470_v1 = vand.u32 65535, %v3016_v20  ;;  %2185 = vmatmul.msk.f32.gmra.mxu2 %vm1483_vm2, %v3959_v37  ;;  %v458_v54 = vsel %vm456_vm13, %v446_v42, 2102212464 }
  0xdc   :  { %v2169_v18 = vsel %vm1484_vm1, 1.0, %v3961_v27  ;;  %v3040_v5 = vsub.s32 %v364_v56, %v367_v61  ;;  %v471_v13 = vshrl.u32 %v3016_v20, 16  ;;  %v231_v26 = vcvt.s32.f32 %v224_v28 }
  0xdd   :  { %v229_v8 = vand.u32 2147483647, %v228_v35  ;;  %v472_v15 = vand.u32 65535, %v468_v33  ;;  %v473_v12 = vshrl.u32 %v468_v33, 16  ;;  %v255_v7 = vadd.s32 3, %v238_v44  ;;  %2194 = vmatmul.msk.f32.gmra.mxu3 %vm1571_vm5, %v2169_v18 }
  0xde   :  { %vm369_vm9 = vcmp.lt.s32.totalorder %v3040_v5, 0  ;;  %v370_v56 = vsub.s32 0, %v3040_v5  ;;  %v464_v48 = vsel %vm454_vm7, %v461_v22, %v463_v10  ;;  %v457_v44 = vsel %vm453_vm14, %v437_v51, %v440_v57 }
  0xdf   :  { %v232_v42 = vmul.f32 %v231_v26, %v229_v8  ;;  %v474_v36 = vmul.u32 %v472_v15, %v470_v1  ;;  %v475_v34 = vmul.u32 %v473_v12, %v470_v1  ;;  %v3050_v28 = vmul.u32 %v472_v15, %v471_v13 }
  0xe0   :  { %v371_v58 = vsel %vm369_vm9, %v370_v56, %v3040_v5  ;;  %v459_v29 = vsel %vm455_vm6, %v2992_v49, %v458_v54  ;;  %v477_v38 = vmul.u32 %v473_v12, %v471_v13  ;;  %v495_v10 = vshrl.u32 %v464_v48, 16 }
  0xe1   :  { %v233_v45 = vxor.u32 2147483648, %v232_v42  ;;  %v372_v61 = vclz %v371_v58  ;;  %v478_v22 = vshll.u32 %v475_v34, 16  ;;  %v3058_v33 = vand.u32 3, %v255_v7 }
  0xe2   :  { %v360_v35 = vadd.s32 %v2961_v50, %v2957_v4  ;;  %v480_v62 = vshll.u32 %v3050_v28, 16  ;;  %v494_v18 = vand.u32 65535, %v464_v48  ;;  %v3067_v49 = vsel %vm454_vm7, %v457_v44, %v459_v29 }
  0xe3   :  { %v234_v57 = vsel %vm113_vm15, %v233_v45, %v232_v42  ;;  %v2118_v51 = vadd.s32 4294967294, %v372_v61  ;;  %vm482_vm13 = vc.u32 %v474_v36, %v478_v22  ;;  %vm268_vm11 = vcmp.lt.s32.totalorder %v2500_v47, 0 }
  0xe4   :  { %v3072_v17 = vsel %vm2965_vm4, %v2488_v25, %v234_v57  ;;  %v390_v4 = vsub.s32 4, %v3010_v46  ;;  %v483_v50 = vsel %vm482_vm13, 1, %v3965_v14  ;;  %v484_v54 = vadd.s32 %v478_v22, %v474_v36 }
  0xe5   :  { %v239_v8 = vmul.f32 %v3072_v17, %v3072_v17  ;;  %vm2119_vm15 = vcmp.lt.s32.totalorder %v2118_v51, 0  ;;  %v485_v6 = vadd.s32 %v483_v50, %v477_v38  ;;  %v3079_v26 = vmul.u32 %v495_v10, %v470_v1 }
  0xe6   :  { %v375_v15 = vsel %vm2119_vm15, 0, %v2118_v51  ;;  %vm486_vm14 = vc.u32 %v484_v54, %v480_v62  ;;  %v496_v12 = vmul.u32 %v494_v18, %v470_v1  ;;  %v3081_v60 = vmul.u32 %v494_v18, %v471_v13 }
  0xe7   :  { %v240_v7 = vmul.f32 -0.001358992, %v239_v8  ;;  %v247_v41 = vmul.f32 -0.00019511016, %v239_v8  ;;  %v376_v56 = vsub.s32 32, %v375_v15  ;;  %v479_v48 = vshrl.u32 %v475_v34, 16 }
  0xe8   :  { %v377_v42 = vshll.u32 %v3040_v5, %v375_v15  ;;  %v380_v58 = vsub.s32 4294967266, %v375_v15  ;;  %v487_v36 = vsel %vm486_vm14, 1, %v3965_v14  ;;  %v500_v44 = vshll.u32 %v3079_v26, 16 }
  0xe9   :  { %v241_v29 = vadd.f32 0.041655596, %v240_v7  ;;  %v248_v38 = vadd.f32 0.008332121, %v247_v41  ;;  %v378_v45 = vshrl.u32 %v360_v35, %v376_v56  ;;  %v489_v61 = vadd.s32 %v487_v36, %v485_v6 }
  0xea   :  { %v3970_v22 = vand.u32 2147483647, %v2500_v47  ;;  %v381_v62 = vadd.s32 127, %v380_v58  ;;  %v499_v18 = vmul.u32 %v495_v10, %v471_v13  ;;  %v502_v34 = vshll.u32 %v3081_v60, 16  ;;  %v1841_v13 = vld [vmem:[#allocation2 + $0x198] sm:$0xff]  ;;  %v1848_v10 = vld [vmem:[#allocation2 + $0x1d0] sm:$0xff] }
  0xeb   :  { %vm504_vm6 = vc.u32 %v496_v12, %v500_v44  ;;  %v242_v5 = vmul.f32 %v241_v29, %v239_v8  ;;  %v249_v57 = vmul.f32 %v248_v38, %v239_v8  ;;  %v379_v51 = vor.u32 %v378_v45, %v377_v42  ;;  %1895 = vmatpush.msrb.mxu0 %v1841_v13  ;;  %v1846_v29 = vld [vmem:[#allocation2 + $0x1c0] sm:$0xff] }
  0xec   :  { %vm3088_vm4 = vcmp.le.f32.partialorder %v3970_v22, 0.7853982  ;;  %v481_v50 = vshrl.u32 %v3050_v28, 16  ;;  %v382_v54 = vshll.u32 %v381_v62, 23  ;;  %v490_v15 = vadd.s32 %v489_v61, %v479_v48  ;;  %v1847_v28 = vld [vmem:[#allocation2 + $0x1c8] sm:$0xff]  ;;  %v1840_v48 = vld [vmem:[#allocation2 + $0x190] sm:$0xff]  ;;  %1945 = vmatpush.msrb.mxu3 %v1848_v10 }
  0xed   :  { %v505_v35 = vsel %vm504_vm6, 1, %v3965_v14  ;;  %v506_v6 = vadd.s32 %v500_v44, %v496_v12  ;;  %v243_v7 = vadd.f32 -0.4999988, %v242_v5  ;;  %v250_v41 = vadd.f32 -0.16666654, %v249_v57  ;;  %1896 = vmatpush.msrb.mxu0 %v1840_v48  ;;  %v1845_v62 = vld [vmem:[#allocation2 + $0x1b8] sm:$0xff] }
  0xee   :  { %v391_v56 = vsel %vm268_vm11, %v390_v4, %v3010_v46  ;;  %vm1482_vm7 = vcmp.eq.s32.totalorder %v3023_v31, %v2538_v52  ;;  %vm258_vm8 = vcmp.eq.s32.totalorder %v3058_v33, 0  ;;  %v383_v42 = vor.u32 4788187, %v382_v54  ;;  %1946 = vmatpush.msrb.mxu3 %v1847_v28 }
  0xef   :  { %2177 = vmatmul.msk.f32.gmra.mxu1 %vm1482_vm7, %v3959_v37  ;;  %v501_v12 = vshrl.u32 %v3079_v26, 16  ;;  %v507_v58 = vadd.s32 %v505_v35, %v499_v18  ;;  %vm508_vm2 = vc.u32 %v506_v6, %v502_v34  ;;  %v244_v36 = vmul.f32 %v243_v7, %v239_v8 }
  0xf0   :  { %v251_v44 = vmul.f32 %v250_v41, %v239_v8  ;;  %vm257_vm1 = vcmp.lt.s32.totalorder %v3058_v33, 2  ;;  %v386_v46 = vcvt.s32.f32 %v379_v51  ;;  %v509_v31 = vsel %vm508_vm2, 1, %v3965_v14  ;;  %1947 = vmatpush.msrb.mxu3 %v1846_v29 }
  0xf1   :  { %vm254_vm9 = vweird.f32 %v2488_v25  ;;  %v384_v4 = vand.u32 2147483647, %v383_v42  ;;  %v3106_v38 = vadd.s32 %v490_v15, %v481_v50  ;;  %v511_v45 = vadd.s32 %v509_v31, %v507_v58 }
  0xf2   :  { %v576_v26 = vand.u32 2147483647, %v2497_v40  ;;  %v245_v61 = vadd.f32 1.0, %v244_v36  ;;  %v252_v22 = vadd.f32 1.0, %v251_v44  ;;  %vm261_vm13 = vcmp.eq.s32.totalorder %v3058_v33, 2  ;;  %1948 = vmatpush.msrb.mxu3 %v1845_v62 }
  0xf3   :  { %vm1359_vm15 = vcmask 261120   ;;  %v387_v8 = vmul.f32 %v386_v46, %v384_v4  ;;  %v503_v18 = vshrl.u32 %v3081_v60, 16  ;;  %v3111_v5 = vadd.s32 %v506_v6, %v502_v34 }
  0xf4   :  { %v512_v57 = vadd.s32 %v511_v45, %v501_v12  ;;  %v253_v51 = vmul.f32 %v252_v22, %v3072_v17  ;;  %v262_v50 = vxor.u32 2147483648, %v245_v61  ;;  %v393_v54 = vsel %vm3088_vm4, 0, %v391_v56 }
  0xf5   :  { %v514_v15 = vmul.u32 %v3016_v20, %v3067_v49  ;;  %v388_v35 = vxor.u32 2147483648, %v387_v8  ;;  %vm516_vm14 = vc.u32 %v3106_v38, %v3111_v5  ;;  %v583_v60 = vand.u32 8388607, %v576_v26 }
  0xf6   :  { %v513_v7 = vadd.s32 %v512_v57, %v503_v18  ;;  %v259_v34 = vxor.u32 2147483648, %v253_v51  ;;  %v593_v17 = vshll.u32 %v3962_v53, %v2529_v43  ;;  %v594_v6 = vshrl.u32 %v3964_v21, %v2544_v59 }
  0xf7   :  { %v596_v41 = vshll.u32 %v3964_v21, %v2529_v43  ;;  %v263_v20 = vsel %vm261_vm13, %v262_v50, %v253_v51  ;;  %v389_v49 = vsel %vm268_vm11, %v388_v35, %v387_v8  ;;  %v597_v13 = vshrl.u32 %v3966_v32, %v2544_v59 }
  0xf8   :  { %v517_v56 = vadd.s32 1, %v513_v7  ;;  %v260_v10 = vsel %vm258_vm8, %v245_v61, %v259_v34  ;;  %v392_v42 = vsel %vm3088_vm4, %v2500_v47, %v389_v49  ;;  %v599_v28 = vshll.u32 %v3966_v32, %v2529_v43 }
  0xf9   :  { %v600_v48 = vshrl.u32 %v3957_v2, %v2544_v59  ;;  %v264_v12 = vsel %vm257_vm1, %v260_v10, %v263_v20  ;;  %v394_v58 = vmul.f32 %v392_v42, %v392_v42  ;;  %v410_v36 = vadd.s32 3, %v393_v54 }
  0xfa   :  { %v518_v44 = vsel %vm516_vm14, %v517_v56, %v513_v7  ;;  %v265_v46 = vsel %vm254_vm9, nan, %v264_v12  ;;  %v598_v31 = vor.u32 %v597_v13, %v596_v41  ;;  %v584_v45 = vor.u32 8388608, %v583_v60 }
  0xfb   :  { %v519_v1 = vadd.s32 %v518_v44, %v514_v15  ;;  %v601_v4 = vor.u32 %v600_v48, %v599_v28  ;;  %2138 = vmatmul.msk.f32.vlgmr.msra.gmra.mxu0 %vm1359_vm15, %v265_v46  ;;  %v395_v43 = vmul.f32 -0.001358992, %v394_v58  ;;  %v402_v29 = vmul.f32 -0.00019511016, %v394_v58 }
  0xfc   :  { %vm608_vm11 = vcmp.lt.s32.totalorder %v2924_v39, 1  ;;  %v3973_v33 = vor.u32 %v2559_v9, %v2548_v63  ;;  %v595_v8 = vor.u32 %v594_v6, %v593_v17  ;;  %vm610_vm4 = vcmp.lt.s32.totalorder %v2924_v39, 3 }
  0xfd   :  { %v520_v22 = vadd.s32 536870912, %v519_v1  ;;  %v396_v25 = vadd.f32 0.041655596, %v395_v43  ;;  %v403_v62 = vadd.f32 0.008332121, %v402_v29  ;;  %vm609_vm6 = vcmp.lt.s32.totalorder %v2924_v39, 2 }
  0xfe   :  { %v621_v61 = vsel %vm611_vm3, %v3973_v33, 1326507024  ;;  %v411_v18 = vand.u32 3, %v410_v36  ;;  %v592_v51 = vshrl.u32 %v3962_v53, %v2544_v59  ;;  %v620_v63 = vsel %vm608_vm11, %v598_v31, %v601_v4 }
  0xff   :  { %v3159_v57 = vshrl.u32 %v520_v22, 30  ;;  %v397_v9 = vmul.f32 %v396_v25, %v394_v58  ;;  %v404_v50 = vmul.f32 %v403_v62, %v394_v58  ;;  %v622_v54 = vsel %vm610_vm4, %v2959_v0, %v621_v61 }
 0x100   :  { %v3168_v15 = vshll.u32 %v584_v45, 8  ;;  %v616_v7 = vsel %vm608_vm11, %v595_v8, %v598_v31  ;;  %v618_v59 = vsel %vm610_vm4, %v601_v4, %v3002_v30  ;;  %v623_v60 = vsel %vm609_vm6, %v620_v63, %v622_v54 }
 0x101   :  { %v522_v35 = vshll.u32 %v3159_v57, 30  ;;  %v3974_v34 = vor.u32 %v2482_v23, %v2477_v19  ;;  %v398_v17 = vadd.f32 -0.4999988, %v397_v9  ;;  %v405_v6 = vadd.f32 -0.16666654, %v404_v50 }
 0x102   :  { %vm413_vm7 = vcmp.eq.s32.totalorder %v411_v18, 0  ;;  %v613_v20 = vsel %vm611_vm3, %v601_v4, 2102212464  ;;  %v627_v49 = vand.u32 65535, %v623_v60  ;;  %v628_v30 = vshrl.u32 %v623_v60, 16 }
 0x103   :  { %v3183_v0 = vsel %vm921_vm0, %v3974_v34, 1326507024  ;;  %v3185_v41 = vsub.s32 %v519_v1, %v522_v35  ;;  %v399_v56 = vmul.f32 %v398_v17, %v394_v58  ;;  %v406_v13 = vmul.f32 %v405_v6, %v394_v58 }
 0x104   :  { %vm412_vm8 = vcmp.lt.s32.totalorder %v411_v18, 2  ;;  %v619_v19 = vsel %vm609_vm6, %v616_v7, %v618_v59  ;;  %v625_v23 = vand.u32 65535, %v3168_v15  ;;  %vm409_vm2 = vweird.f32 %v2500_v47 }
 0x105   :  { %vm524_vm1 = vcmp.lt.s32.totalorder %v3185_v41, 0  ;;  %v525_v10 = vsub.s32 0, %v3185_v41  ;;  %v612_v28 = vsel %vm608_vm11, %v592_v51, %v595_v8  ;;  %v626_v48 = vshrl.u32 %v3168_v15, 16 }
 0x106   :  { %v400_v12 = vadd.f32 1.0, %v399_v56  ;;  %v407_v36 = vadd.f32 1.0, %v406_v13  ;;  %v614_v58 = vsel %vm610_vm4, %v598_v31, %v613_v20  ;;  %v630_v44 = vmul.u32 %v628_v30, %v625_v23 }
 0x107   :  { %v526_v46 = vsel %vm524_vm1, %v525_v10, %v3185_v41  ;;  %v3201_v1 = vmul.u32 %v627_v49, %v626_v48  ;;  %v649_v4 = vand.u32 65535, %v619_v19  ;;  %v650_v43 = vshrl.u32 %v619_v19, 16 }
 0x108   :  { %v408_v29 = vmul.f32 %v407_v36, %v392_v42  ;;  %v417_v45 = vxor.u32 2147483648, %v400_v12  ;;  %v527_v33 = vclz %v526_v46  ;;  %v633_v61 = vshll.u32 %v630_v44, 16  ;;  %v1839_v46 = vld [vmem:[#allocation2 + $0x188] sm:$0xff] }
 0x109   :  { %vm416_vm3 = vcmp.eq.s32.totalorder %v411_v18, 2  ;;  %v515_v22 = vadd.s32 %v3111_v5, %v3106_v38  ;;  %v3207_v8 = vsel %vm609_vm6, %v612_v28, %v614_v58  ;;  %v629_v31 = vmul.u32 %v627_v49, %v625_v23  ;;  %1897 = vmatpush.msrb.mxu0 %v1839_v46 }
 0x10a   :  { %v414_v25 = vxor.u32 2147483648, %v408_v29  ;;  %v418_v62 = vsel %vm416_vm3, %v417_v45, %v408_v29  ;;  %vm423_vm9 = vcmp.lt.s32.totalorder %v2485_v24, 0  ;;  %v2121_v51 = vadd.s32 4294967294, %v527_v33  ;;  %v1865_v29 = vld [vmem:[#allocation2 + $0x258] sm:$0xf]  ;;  %v1838_v33 = vld [vmem:[#allocation2 + $0x180] sm:$0xff] }
 0x10b   :  { %v632_v63 = vmul.u32 %v628_v30, %v626_v48  ;;  %v635_v42 = vshll.u32 %v3201_v1, 16  ;;  %vm637_vm13 = vc.u32 %v629_v31, %v633_v61  ;;  %v639_v9 = vadd.s32 %v633_v61, %v629_v31  ;;  %2235 = vmatpush.msk.msrb.mxu1 %vm1596_vm10, %v1865_v29  ;;  %1898 = vmatpush.msrb.mxu0 %v1838_v33 }
 0x10c   :  { %v3211_v50 = vmul.u32 %v650_v43, %v625_v23  ;;  %v415_v54 = vsel %vm413_vm7, %v400_v12, %v414_v25  ;;  %vm2122_vm14 = vcmp.lt.s32.totalorder %v2121_v51, 0  ;;  %v638_v39 = vsel %vm637_vm13, 1, %v3965_v14  ;;  %v3977_v25 = vld [vmem:[#allocation6_spill] sm:$0xff]  ;;  %2244 = vmatpush.msk.msrb.mxu2 %vm1596_vm10, %v1865_v29 }
 0x10d   :  { %v3215_v38 = vmul.u32 %v649_v4, %v626_v48  ;;  %v419_v5 = vsel %vm412_vm8, %v415_v54, %v418_v62  ;;  %v530_v35 = vsel %vm2122_vm14, 0, %v2121_v51  ;;  %v640_v7 = vadd.s32 %v638_v39, %v632_v63  ;;  %v3979_v54 = vld [vmem:[#allocation9_spill] sm:$0xff] }
 0x10e   :  { %vm641_vm11 = vc.u32 %v639_v9, %v635_v42  ;;  %v420_v59 = vsel %vm409_vm2, nan, %v419_v5  ;;  %v531_v60 = vsub.s32 32, %v530_v35  ;;  %v535_v34 = vsub.s32 4294967266, %v530_v35  ;;  %v3978_v42 = vld [vmem:[#allocation8_spill] sm:$0xff] }
 0x10f   :  { %v545_v17 = vsub.s32 4, %v3159_v57  ;;  %2139 = vmatmul.msk.f32.gmra.mxu0 %vm1359_vm15, %v420_v59  ;;  %v634_v6 = vshrl.u32 %v630_v44, 16  ;;  %v642_v20 = vsel %vm641_vm11, 1, %v3965_v14  ;;  %v651_v49 = vmul.u32 %v649_v4, %v625_v23  ;;  %v3236_v4 = vpop.permute.xlu2 %1732 }
 0x110   :  { %v655_v30 = vshll.u32 %v3211_v50, 16  ;;  %vm3226_vm4 = vcmp.le.f32.partialorder %v421_v11, 0.7853982  ;;  %v532_v47 = vshll.u32 %v3185_v41, %v530_v35  ;;  %v533_v56 = vshrl.u32 %v515_v22, %v531_v60  ;;  %v1844_v41 = vld [vmem:[#allocation2 + $0x1b0] sm:$0xff] }
 0x111   :  { %v536_v13 = vadd.s32 127, %v535_v34  ;;  %v644_v19 = vadd.s32 %v642_v20, %v640_v7  ;;  %v654_v10 = vmul.u32 %v650_v43, %v626_v48  ;;  %v657_v28 = vshll.u32 %v3215_v38, 16  ;;  %1949 = vmatpush.msrb.mxu3 %v1844_v41 }
 0x112   :  { %vm659_vm6 = vc.u32 %v651_v49, %v655_v30  ;;  %v661_v12 = vadd.s32 %v655_v30, %v651_v49  ;;  %v534_v36 = vor.u32 %v533_v56, %v532_v47  ;;  %v546_v11 = vsel %vm423_vm9, %v545_v17, %v3159_v57 }
 0x113   :  { %v537_v23 = vshll.u32 %v536_v13, 23  ;;  %v645_v58 = vadd.s32 %v644_v19, %v634_v6  ;;  %v660_v44 = vsel %vm659_vm6, 1, %v3965_v14  ;;  %v636_v48 = vshrl.u32 %v3201_v1, 16  ;;  %v3980_v13 = vld [vmem:[#allocation12_spill] sm:$0xff] }
 0x114   :  { %v662_v43 = vadd.s32 %v660_v44, %v654_v10  ;;  %vm663_vm7 = vc.u32 %v661_v12, %v657_v28  ;;  %vm1756_vm8 = vcmp.eq.s32.totalorder %v3236_v4, %v2572_v16  ;;  %v656_v61 = vshrl.u32 %v3211_v50, 16  ;;  %v3983_v44 = vld [vmem:[#allocation19_spill] sm:$0xff] }
 0x115   :  { %v538_v45 = vor.u32 4788187, %v537_v23  ;;  %v665_v22 = vadd.s32 %v661_v12, %v657_v28  ;;  %v541_v57 = vcvt.s32.f32 %v534_v36  ;;  %2227 = vmatmul.msk.f32.vlgmr.msrb.gmra.mxu3 %vm1756_vm8, %v3959_v37  ;;  %v646_v31 = vadd.s32 %v645_v58, %v636_v48  ;;  %v3981_v36 = vld [vmem:[#allocation17_spill] sm:$0xff]  ;;  %v3984_v48 = vld [vmem:[#allocation20_spill] sm:$0xff] }
 0x116   :  { %v664_v1 = vsel %vm663_vm7, 1, %v3965_v14  ;;  %v731_v62 = vand.u32 2147483647, %v3977_v25  ;;  %v748_v9 = vshll.u32 %v3962_v53, %v3978_v42  ;;  %v749_v50 = vshrl.u32 %v3964_v21, %v3979_v54  ;;  %v3982_v23 = vld [vmem:[#allocation13_spill] sm:$0xff] }
 0x117   :  { %v539_v51 = vand.u32 2147483647, %v538_v45  ;;  %v666_v63 = vadd.s32 %v664_v1, %v662_v43  ;;  %v3251_v39 = vadd.s32 %v665_v22, %v646_v31  ;;  %vm671_vm2 = vc.u32 %v646_v31, %v665_v22 }
 0x118   :  { %v738_v5 = vand.u32 8388607, %v731_v62  ;;  %v751_v35 = vshll.u32 %v3964_v21, %v3978_v42  ;;  %v658_v59 = vshrl.u32 %v3215_v38, 16  ;;  %v752_v34 = vshrl.u32 %v3966_v32, %v3979_v54 }
 0x119   :  { %v542_v7 = vmul.f32 %v541_v57, %v539_v51  ;;  %v667_v60 = vadd.s32 %v666_v63, %v656_v61  ;;  %v548_v17 = vsel %vm3226_vm4, 0, %v546_v11  ;;  %v754_v20 = vshll.u32 %v3966_v32, %v3978_v42 }
 0x11a   :  { %v739_v6 = vor.u32 8388608, %v738_v5  ;;  %v755_v49 = vshrl.u32 %v3957_v2, %v3979_v54  ;;  %v753_v56 = vor.u32 %v752_v34, %v751_v35  ;;  %vm763_vm10 = vcmp.lt.s32.totalorder %v3980_v13, 1 }
 0x11b   :  { %v543_v30 = vxor.u32 2147483648, %v542_v7  ;;  %v668_v47 = vadd.s32 %v667_v60, %v658_v59  ;;  %v750_v38 = vor.u32 %v749_v50, %v748_v9  ;;  %vm765_vm1 = vcmp.lt.s32.totalorder %v3980_v13, 3  ;;  %v3985_v50 = vld [vmem:[#allocation16_spill] sm:$0xff] }
 0x11c   :  { %v756_v19 = vor.u32 %v755_v49, %v754_v20  ;;  %v3268_v10 = vshll.u32 %v739_v6, 8  ;;  %vm764_vm3 = vcmp.lt.s32.totalorder %v3980_v13, 2  ;;  %v777_v58 = vsel %vm765_vm1, %v3982_v23, %v3981_v36 }
 0x11d   :  { %v544_v28 = vsel %vm423_vm9, %v543_v30, %v542_v7  ;;  %v672_v12 = vadd.s32 1, %v668_v47  ;;  %v3278_v11 = vshrl.u32 %v3983_v44, 5  ;;  %v669_v41 = vmul.u32 %v3168_v15, %v3207_v8 }
 0x11e   :  { %v547_v46 = vsel %vm3226_vm4, %v2485_v24, %v544_v28  ;;  %v775_v29 = vsel %vm763_vm10, %v753_v56, %v756_v19  ;;  %v3288_v43 = vshrl.u32 %v3984_v48, 5  ;;  %v565_v33 = vadd.s32 3, %v548_v17 }
 0x11f   :  { %v549_v45 = vmul.f32 %v547_v46, %v547_v46  ;;  %v673_v61 = vsel %vm671_vm2, %v672_v12, %v668_v47  ;;  %v747_v1 = vshrl.u32 %v3962_v53, %v3979_v54  ;;  %v778_v18 = vsel %vm764_vm3, %v775_v29, %v777_v58  ;;  %v3986_v54 = vld [vmem:[#allocation22_spill] sm:$0xff] }
 0x120   :  { %v674_v57 = vadd.s32 %v673_v61, %v669_v41  ;;  %v780_v51 = vand.u32 65535, %v3268_v10  ;;  %v771_v63 = vsel %vm763_vm10, %v750_v38, %v753_v56  ;;  %v781_v42 = vshrl.u32 %v3268_v10, 16 }
 0x121   :  { %v550_v15 = vmul.f32 -0.001358992, %v549_v45  ;;  %v557_v8 = vmul.f32 -0.00019511016, %v549_v45  ;;  %v773_v22 = vsel %vm765_vm1, %v756_v19, %v3985_v50  ;;  %v782_v31 = vand.u32 65535, %v778_v18 }
 0x122   :  { %v675_v9 = vadd.s32 536870912, %v674_v57  ;;  %v783_v5 = vshrl.u32 %v778_v18, 16  ;;  %v3304_v35 = vshll.u32 %v3957_v2, %v3986_v54  ;;  %v566_v60 = vand.u32 3, %v565_v33 }
 0x123   :  { %v551_v7 = vadd.f32 0.041655596, %v550_v15  ;;  %v558_v59 = vadd.f32 0.008332121, %v557_v8  ;;  %v784_v17 = vmul.u32 %v782_v31, %v780_v51  ;;  %v786_v20 = vmul.u32 %v782_v31, %v781_v42 }
 0x124   :  { %v3306_v34 = vshrl.u32 %v675_v9, 30  ;;  %v785_v6 = vmul.u32 %v783_v5, %v780_v51  ;;  %v767_v47 = vsel %vm763_vm10, %v747_v1, %v750_v38  ;;  %v774_v28 = vsel %vm764_vm3, %v771_v63, %v773_v22 }
 0x125   :  { %v552_v49 = vmul.f32 %v551_v7, %v549_v45  ;;  %v559_v30 = vmul.f32 %v558_v59, %v549_v45  ;;  %v768_v36 = vsel %vm766_vm12, %v756_v19, 2102212464  ;;  %v787_v23 = vmul.u32 %v783_v5, %v781_v42 }
 0x126   :  { %v677_v12 = vshll.u32 %v3306_v34, 30  ;;  %v788_v58 = vshll.u32 %v785_v6, 16  ;;  %v790_v29 = vshll.u32 %v786_v20, 16  ;;  %v804_v48 = vand.u32 65535, %v774_v28 }
 0x127   :  { %v553_v44 = vadd.f32 -0.4999988, %v552_v49  ;;  %v560_v41 = vadd.f32 -0.16666654, %v559_v30  ;;  %v805_v18 = vshrl.u32 %v774_v28, 16  ;;  %v769_v15 = vsel %vm765_vm1, %v753_v56, %v768_v36 }
 0x128   :  { %v3315_v33 = vsub.s32 %v674_v57, %v677_v12  ;;  %vm792_vm9 = vc.u32 %v784_v17, %v788_v58  ;;  %v794_v61 = vadd.s32 %v788_v58, %v784_v17  ;;  %v789_v63 = vshrl.u32 %v785_v6, 16 }
 0x129   :  { %v554_v38 = vmul.f32 %v553_v44, %v549_v45  ;;  %v561_v1 = vmul.f32 %v560_v41, %v549_v45  ;;  %v793_v8 = vsel %vm792_vm9, 1, %v3965_v14  ;;  %v791_v57 = vshrl.u32 %v786_v20, 16 }
 0x12a   :  { %vm679_vm12 = vcmp.lt.s32.totalorder %v3315_v33, 0  ;;  %v680_v19 = vsub.s32 0, %v3315_v33  ;;  %v795_v9 = vadd.s32 %v793_v8, %v787_v23  ;;  %vm796_vm13 = vc.u32 %v794_v61, %v790_v29 }
 0x12b   :  { %v555_v50 = vadd.f32 1.0, %v554_v38  ;;  %v562_v22 = vadd.f32 1.0, %v561_v1  ;;  %v797_v5 = vsel %vm796_vm13, 1, %v3965_v14  ;;  %v807_v45 = vmul.u32 %v805_v18, %v780_v51 }
 0x12c   :  { %v681_v31 = vsel %vm679_vm12, %v680_v19, %v3315_v33  ;;  %v3324_v7 = vmul.u32 %v804_v48, %v781_v42  ;;  %v799_v49 = vadd.s32 %v797_v5, %v795_v9  ;;  %vm564_vm14 = vweird.f32 %v2485_v24  ;;  %v3354_v5 = vpop.permute.xlu0 %1735 }
 0x12d   :  { %v563_v56 = vmul.f32 %v562_v22, %v547_v46  ;;  %v572_v59 = vxor.u32 2147483648, %v555_v50  ;;  %v682_v17 = vclz %v681_v31  ;;  %vm567_vm11 = vcmp.lt.s32.totalorder %v566_v60, 2  ;;  %v1837_v31 = vld [vmem:[#allocation2 + $0x178] sm:$0xff] }
 0x12e   :  { %vm568_vm4 = vcmp.eq.s32.totalorder %v566_v60, 0  ;;  %v806_v6 = vmul.u32 %v804_v48, %v780_v51  ;;  %vm571_vm6 = vcmp.eq.s32.totalorder %v566_v60, 2  ;;  %v800_v28 = vadd.s32 %v799_v49, %v789_v63  ;;  %1899 = vmatpush.msrb.mxu0 %v1837_v31 }
 0x12f   :  { %v569_v30 = vxor.u32 2147483648, %v563_v56  ;;  %v2124_v20 = vadd.s32 4294967294, %v682_v17  ;;  %v3329_v12 = vsel %vm764_vm3, %v767_v47, %v769_v15  ;;  %v809_v36 = vmul.u32 %v805_v18, %v781_v42  ;;  %v3988_v17 = vld [vmem:[#allocation10_spill] sm:$0xff] }
 0x130   :  { %v810_v23 = vshll.u32 %v807_v45, 16  ;;  %v812_v46 = vshll.u32 %v3324_v7, 16  ;;  %v573_v44 = vsel %vm571_vm6, %v572_v59, %v563_v56  ;;  %vm578_vm7 = vcmp.lt.s32.totalorder %v2497_v40, 0  ;;  %v1836_v56 = vld [vmem:[#allocation2 + $0x170] sm:$0xff] }
 0x131   :  { %v570_v58 = vsel %vm568_vm4, %v555_v50, %v569_v30  ;;  %vm2125_vm8 = vcmp.lt.s32.totalorder %v2124_v20, 0  ;;  %v3333_v41 = vadd.s32 %v800_v28, %v791_v57  ;;  %v811_v61 = vshrl.u32 %v807_v45, 16  ;;  %v1864_v45 = vld [vmem:[#allocation2 + $0x250] sm:$0xff]  ;;  %v3989_v30 = vld [vmem:[#allocation11_spill] sm:$0xff]  ;;  %1900 = vmatpush.msrb.mxu0 %v1836_v56 }
 0x132   :  { %v574_v51 = vsel %vm567_vm11, %v570_v58, %v573_v44  ;;  %v685_v29 = vsel %vm2125_vm8, 0, %v2124_v20  ;;  %vm814_vm2 = vc.u32 %v806_v6, %v810_v23  ;;  %v816_v48 = vadd.s32 %v810_v23, %v806_v6  ;;  %1986 = vmatpush.msrb.mxu1 %v1864_v45  ;;  %2245 = vmatpush.msrb.mxu2 %v1864_v45 }
 0x133   :  { %v575_v13 = vsel %vm564_vm14, nan, %v574_v51  ;;  %v686_v47 = vsub.s32 32, %v685_v29  ;;  %v690_v42 = vsub.s32 4294967266, %v685_v29  ;;  %v687_v18 = vshll.u32 %v3315_v33, %v685_v29  ;;  %v3987_v33 = vld [vmem:[#allocation7_spill] sm:$0xff] }
 0x134   :  { %2140 = vmatmul.msk.f32.gmra.mxu0 %vm1359_vm15, %v575_v13  ;;  %v815_v38 = vsel %vm814_vm2, 1, %v3965_v14  ;;  %vm818_vm10 = vc.u32 %v816_v48, %v812_v46  ;;  %v3341_v1 = vadd.s32 %v816_v48, %v812_v46  ;;  %v700_v24 = vsub.s32 4, %v3306_v34  ;;  %v3990_v46 = vld [vmem:[#allocation24_spill] sm:$0xff]  ;;  %v1862_v48 = vld [vmem:[#allocation2 + $0x240] sm:$0xff]  ;;  %v1835_v13 = vld [vmem:[#allocation2 + $0x168] sm:$0xff] }
 0x135   :  { %v688_v60 = vshrl.u32 %v3251_v39, %v686_v47  ;;  %v691_v15 = vadd.s32 127, %v690_v42  ;;  %v817_v8 = vadd.s32 %v815_v38, %v809_v36  ;;  %v819_v19 = vsel %vm818_vm10, 1, %v3965_v14  ;;  %v1861_v38 = vld [vmem:[#allocation2 + $0x238] sm:$0xff]  ;;  %1901 = vmatpush.msrb.mxu0 %v1835_v13 }
 0x136   :  { %v3348_v63 = vadd.s32 %v3341_v1, %v3333_v41  ;;  %vm826_vm1 = vc.u32 %v3333_v41, %v3341_v1  ;;  %v886_v9 = vand.u32 2147483647, %v3987_v33  ;;  %v813_v57 = vshrl.u32 %v3324_v7, 16  ;;  %v1863_v7 = vld [vmem:[#allocation2 + $0x248] sm:$0xff] }
 0x137   :  { %v689_v50 = vor.u32 %v688_v60, %v687_v18  ;;  %v692_v22 = vshll.u32 %v691_v15, 23  ;;  %v821_v39 = vadd.s32 %v819_v19, %v817_v8  ;;  %v903_v49 = vshll.u32 %v3962_v53, %v3988_v17  ;;  %1987 = vmatpush.msrb.mxu1 %v1863_v7  ;;  %2246 = vmatpush.msrb.mxu2 %v1863_v7 }
 0x138   :  { %v893_v59 = vand.u32 8388607, %v886_v9  ;;  %v906_v6 = vshll.u32 %v3964_v21, %v3988_v17  ;;  %v907_v20 = vshrl.u32 %v3966_v32, %v3989_v30  ;;  %vm1759_vm3 = vcmp.eq.s32.totalorder %v3354_v5, %v2572_v16 }
 0x139   :  { %v693_v28 = vor.u32 4788187, %v692_v22  ;;  %v822_v36 = vadd.s32 %v821_v39, %v811_v61  ;;  %v904_v23 = vshrl.u32 %v3964_v21, %v3989_v30  ;;  %v3991_v58 = vmov 920167782   ;;  %2228 = vmatmul.msk.f32.gmra.mxu3 %vm1759_vm3, %v3959_v37  ;;  %1988 = vmatpush.msrb.mxu1 %v1862_v48  ;;  %v3994_v22 = vld [vmem:[#allocation18_spill] sm:$0xff] }
 0x13a   :  { %v1068_v44 = vshrl.u32 %v3991_v58, %v3990_v46  ;;  %vm3372_vm9 = vcmp.le.f32.partialorder %v576_v26, 0.7853982  ;;  %v701_v29 = vsel %vm578_vm7, %v700_v24, %v3306_v34  ;;  %v894_v47 = vor.u32 8388608, %v893_v59  ;;  %2247 = vmatpush.msrb.mxu2 %v1862_v48 }
 0x13b   :  { %v694_v42 = vand.u32 2147483647, %v693_v28  ;;  %v696_v61 = vcvt.s32.f32 %v689_v50  ;;  %v823_v18 = vadd.s32 %v822_v36, %v813_v57  ;;  %v909_v26 = vshll.u32 %v3966_v32, %v3988_v17  ;;  %v3995_v57 = vld [vmem:[#allocation21_spill] sm:$0xff]  ;;  %1989 = vmatpush.msrb.mxu1 %v1861_v38 }
 0x13c   :  { %v824_v60 = vmul.u32 %v3268_v10, %v3329_v12  ;;  %v908_v15 = vor.u32 %v907_v20, %v906_v6  ;;  %v910_v34 = vshrl.u32 %v3957_v2, %v3989_v30  ;;  %vm920_vm12 = vcmp.lt.s32.totalorder %v2541_v55, 3  ;;  %2248 = vmatpush.msrb.mxu2 %v1861_v38  ;;  %v3996_v20 = vld [vmem:[#allocation29_spill] sm:$0xff] }
 0x13d   :  { %v697_v8 = vmul.f32 %v696_v61, %v694_v42  ;;  %v827_v19 = vadd.s32 1, %v823_v18  ;;  %v905_v24 = vor.u32 %v904_v23, %v903_v49  ;;  %vm918_vm13 = vcmp.lt.s32.totalorder %v2541_v55, 1 }
 0x13e   :  { %v911_v50 = vor.u32 %v910_v34, %v909_v26  ;;  %vm919_vm14 = vcmp.lt.s32.totalorder %v2541_v55, 2  ;;  %v932_v10 = vsel %vm920_vm12, %v3994_v22, %v3183_v0  ;;  %v3393_v12 = vshll.u32 %v894_v47, 8  ;;  %v3998_v34 = vld [vmem:[#allocation27_spill] sm:$0xff] }
 0x13f   :  { %v3397_v39 = vshll.u32 %v3957_v2, %v3995_v57  ;;  %v698_v31 = vxor.u32 2147483648, %v697_v8  ;;  %v703_v45 = vsel %vm3372_vm9, 0, %v701_v29  ;;  %v828_v56 = vsel %vm826_vm1, %v827_v19, %v823_v18 }
 0x140   :  { %v3405_v59 = vor.u32 %v1068_v44, %v3304_v35  ;;  %vm1076_vm11 = vcmp.lt.s32.totalorder %v3288_v43, 4  ;;  %v829_v0 = vadd.s32 %v828_v56, %v824_v60  ;;  %v930_v17 = vsel %vm918_vm13, %v908_v15, %v911_v50  ;;  %v3997_v60 = vld [vmem:[#allocation28_spill] sm:$0xff] }
 0x141   :  { %v699_v49 = vsel %vm578_vm7, %v698_v31, %v697_v8  ;;  %v926_v6 = vsel %vm918_vm13, %v905_v24, %v908_v15  ;;  %v928_v41 = vsel %vm920_vm12, %v911_v50, %v3996_v20  ;;  %v933_v35 = vsel %vm919_vm14, %v930_v17, %v932_v10 }
 0x142   :  { %v3422_v1 = vsel %vm3372_vm9, %v2497_v40, %v699_v49  ;;  %v720_v28 = vadd.s32 3, %v703_v45  ;;  %v830_v7 = vadd.s32 536870912, %v829_v0  ;;  %v935_v36 = vand.u32 65535, %v3393_v12 }
 0x143   :  { %v704_v23 = vmul.f32 %v3422_v1, %v3422_v1  ;;  %v936_v44 = vshrl.u32 %v3393_v12, 16  ;;  %v937_v29 = vand.u32 65535, %v933_v35  ;;  %v938_v48 = vshrl.u32 %v933_v35, 16 }
 0x144   :  { %v3428_v13 = vshrl.u32 %v830_v7, 30  ;;  %v902_v47 = vshrl.u32 %v3962_v53, %v3989_v30  ;;  %v923_v51 = vsel %vm921_vm0, %v911_v50, 2102212464  ;;  %v929_v42 = vsel %vm919_vm14, %v926_v6, %v928_v41 }
 0x145   :  { %v705_v61 = vmul.f32 -0.001358992, %v704_v23  ;;  %v712_v18 = vmul.f32 -0.00019511016, %v704_v23  ;;  %v939_v26 = vmul.u32 %v937_v29, %v935_v36  ;;  %v940_v38 = vmul.u32 %v938_v48, %v935_v36 }
 0x146   :  { %v3999_v8 = vor.u32 %v3997_v60, %v3998_v34  ;;  %v3443_v22 = vand.u32 3, %v720_v28  ;;  %v832_v30 = vshll.u32 %v3428_v13, 30  ;;  %v941_v10 = vmul.u32 %v937_v29, %v936_v44 }
 0x147   :  { %v706_v50 = vadd.f32 0.041655596, %v705_v61  ;;  %v713_v31 = vadd.f32 0.008332121, %v712_v18  ;;  %v942_v45 = vmul.u32 %v938_v48, %v936_v44  ;;  %v943_v56 = vshll.u32 %v940_v38, 16 }
 0x148   :  { %v3441_v19 = vsel %vm1076_vm11, %v3999_v8, 1326507024  ;;  %v3446_v17 = vsub.s32 %v829_v0, %v832_v30  ;;  %v922_v49 = vsel %vm918_vm13, %v902_v47, %v905_v24  ;;  %v924_v6 = vsel %vm920_vm12, %v908_v15, %v923_v51  ;;  %v4000_v30 = vld [vmem:[#allocation15_spill] sm:$0xff] }
 0x149   :  { %v960_v20 = vshrl.u32 %v929_v42, 16  ;;  %v707_v41 = vmul.f32 %v706_v50, %v704_v23  ;;  %v714_v35 = vmul.f32 %v713_v31, %v704_v23  ;;  %v945_v28 = vshll.u32 %v941_v10, 16 }
 0x14a   :  { %vm947_vm0 = vc.u32 %v939_v26, %v943_v56  ;;  %vm834_vm4 = vcmp.lt.s32.totalorder %v3446_v17, 0  ;;  %v835_v7 = vsub.s32 0, %v3446_v17  ;;  %v959_v48 = vand.u32 65535, %v929_v42 }
 0x14b   :  { %v948_v29 = vsel %vm947_vm0, 1, %v3965_v14  ;;  %v708_v0 = vadd.f32 -0.4999988, %v707_v41  ;;  %v715_v61 = vadd.f32 -0.16666654, %v714_v35  ;;  %v949_v18 = vadd.s32 %v943_v56, %v939_v26 }
 0x14c   :  { %v950_v60 = vadd.s32 %v948_v29, %v942_v45  ;;  %vm723_vm6 = vcmp.eq.s32.totalorder %v3443_v22, 0  ;;  %vm726_vm7 = vcmp.eq.s32.totalorder %v3443_v22, 2  ;;  %v836_v15 = vsel %vm834_vm4, %v835_v7, %v3446_v17 }
 0x14d   :  { %v944_v24 = vshrl.u32 %v940_v38, 16  ;;  %v3458_v47 = vmul.u32 %v960_v20, %v935_v36  ;;  %v709_v51 = vmul.f32 %v708_v0, %v704_v23  ;;  %v716_v34 = vmul.f32 %v715_v61, %v704_v23 }
 0x14e   :  { %vm722_vm8 = vcmp.lt.s32.totalorder %v3443_v22, 2  ;;  %v837_v8 = vclz %v836_v15  ;;  %vm951_vm2 = vc.u32 %v949_v18, %v945_v28  ;;  %vm1757_vm10 = vcmp.eq.s32.totalorder %v3236_v4, %v2584_v3 }
 0x14f   :  { %vm719_vm1 = vweird.f32 %v2497_v40  ;;  %vm733_vm3 = vcmp.lt.s32.totalorder %v3977_v25, 0  ;;  %v3467_v42 = vsel %vm919_vm14, %v922_v49, %v924_v6  ;;  %v952_v26 = vsel %vm951_vm2, 1, %v3965_v14  ;;  %v1860_v40 = vld [vmem:[#allocation2 + $0x230] sm:$0xff] }
 0x150   :  { %v961_v38 = vmul.u32 %v959_v48, %v935_v36  ;;  %v1041_v23 = vand.u32 2147483647, %v4000_v30  ;;  %v710_v50 = vadd.f32 1.0, %v709_v51  ;;  %v717_v31 = vadd.f32 1.0, %v716_v34  ;;  %1990 = vmatpush.msrb.mxu1 %v1860_v40  ;;  %2249 = vmatpush.msrb.mxu2 %v1860_v40 }
 0x151   :  { %v2127_v45 = vadd.s32 4294967294, %v837_v8  ;;  %v954_v56 = vadd.s32 %v952_v26, %v950_v60  ;;  %v946_v41 = vshrl.u32 %v941_v10, 16  ;;  %v963_v35 = vmul.u32 %v959_v48, %v936_v44 }
 0x152   :  { %v964_v28 = vmul.u32 %v960_v20, %v936_v44  ;;  %v965_v7 = vshll.u32 %v3458_v47, 16  ;;  %v718_v29 = vmul.f32 %v717_v31, %v3422_v1  ;;  %v727_v0 = vxor.u32 2147483648, %v710_v50 }
 0x153   :  { %vm2128_vm9 = vcmp.lt.s32.totalorder %v2127_v45, 0  ;;  %v955_v55 = vadd.s32 %v954_v56, %v944_v24  ;;  %v855_v6 = vsub.s32 4, %v3428_v13  ;;  %v967_v36 = vshll.u32 %v963_v35, 16 }
 0x154   :  { %v840_v49 = vsel %vm2128_vm9, 0, %v2127_v45  ;;  %vm969_vm12 = vc.u32 %v961_v38, %v965_v7  ;;  %v724_v61 = vxor.u32 2147483648, %v718_v29  ;;  %v728_v18 = vsel %vm726_vm7, %v727_v0, %v718_v29 }
 0x155   :  { %v841_v60 = vsub.s32 32, %v840_v49  ;;  %v842_v10 = vshll.u32 %v3446_v17, %v840_v49  ;;  %vm3479_vm13 = vcmp.le.f32.partialorder %v731_v62, 0.7853982  ;;  %v845_v1 = vsub.s32 4294967266, %v840_v49  ;;  %v3490_v62 = vpop.permute.xlu1 %1738 }
 0x156   :  { %v956_v20 = vadd.s32 %v955_v55, %v946_v41  ;;  %v970_v48 = vsel %vm969_vm12, 1, %v3965_v14  ;;  %v971_v15 = vadd.s32 %v965_v7, %v961_v38  ;;  %v725_v24 = vsel %vm723_vm6, %v710_v50, %v724_v61 }
 0x157   :  { %v843_v51 = vshrl.u32 %v3348_v63, %v841_v60  ;;  %v966_v34 = vshrl.u32 %v3458_v47, 16  ;;  %v972_v8 = vadd.s32 %v970_v48, %v964_v28  ;;  %v729_v17 = vsel %vm722_vm8, %v725_v24, %v728_v18  ;;  %v1834_v28 = vld [vmem:[#allocation2 + $0x160] sm:$0xff]  ;;  %v4003_v48 = vld [vmem:[#allocation23_spill] sm:$0xff] }
 0x158   :  { %v846_v26 = vadd.s32 127, %v845_v1  ;;  %vm973_vm14 = vc.u32 %v971_v15, %v967_v36  ;;  %v975_v31 = vadd.s32 %v971_v15, %v967_v36  ;;  %v730_v45 = vsel %vm719_vm1, nan, %v729_v17  ;;  %1902 = vmatpush.msrb.mxu0 %v1834_v28  ;;  %v4005_v28 = vld [vmem:[#allocation25_spill] sm:$0xff] }
 0x159   :  { %v844_v38 = vor.u32 %v843_v51, %v842_v10  ;;  %v968_v56 = vshrl.u32 %v963_v35, 16  ;;  %v974_v50 = vsel %vm973_vm14, 1, %v3965_v14  ;;  %2141 = vmatmul.msk.f32.gmra.mxu0 %vm1359_vm15, %v730_v45  ;;  %v856_v22 = vsel %vm733_vm3, %v855_v6, %v3428_v13 }
 0x15a   :  { %v847_v63 = vshll.u32 %v846_v26, 23  ;;  %v976_v47 = vadd.s32 %v974_v50, %v972_v8  ;;  %v3496_v41 = vadd.s32 %v975_v31, %v956_v20  ;;  %vm981_vm0 = vc.u32 %v956_v20, %v975_v31 }
 0x15b   :  { %vm1762_vm4 = vcmp.eq.s32.totalorder %v3490_v62, %v2572_v16  ;;  %v2197_v35 = vsel %vm1757_vm10, 1.0, %v3961_v27  ;;  %v1048_v7 = vand.u32 8388607, %v1041_v23  ;;  %v851_v0 = vcvt.s32.f32 %v844_v38 }
 0x15c   :  { %v848_v29 = vor.u32 4788187, %v847_v63  ;;  %2229 = vmatmul.msk.f32.gmra.mxu3 %vm1762_vm4, %v3959_v37  ;;  %v977_v55 = vadd.s32 %v976_v47, %v966_v34  ;;  %v1058_v13 = vshll.u32 %v3962_v53, %v3986_v54  ;;  %2236 = vmatmul.msk.f32.vlgmr.msrb.gmra.mxu1 %vm1571_vm5, %v2197_v35  ;;  %v1059_v6 = vshrl.u32 %v3964_v21, %v3990_v46  ;;  %v4004_v35 = vld [vmem:[#allocation26_spill] sm:$0xff] }
 0x15d   :  { %v1049_v49 = vor.u32 8388608, %v1048_v7  ;;  %v1061_v36 = vshll.u32 %v3964_v21, %v3986_v54  ;;  %v1062_v61 = vshrl.u32 %v3966_v32, %v3990_v46  ;;  %v1064_v10 = vshll.u32 %v3966_v32, %v3986_v54 }
 0x15e   :  { %v849_v18 = vand.u32 2147483647, %v848_v29  ;;  %v978_v60 = vadd.s32 %v977_v55, %v968_v56  ;;  %v1065_v1 = vshrl.u32 %v3957_v2, %v3990_v46  ;;  %v1223_v15 = vshrl.u32 %v3991_v58, %v4003_v48 }
 0x15f   :  { %v979_v24 = vmul.u32 %v3393_v12, %v3467_v42  ;;  %v1060_v51 = vor.u32 %v1059_v6, %v1058_v13  ;;  %v1063_v34 = vor.u32 %v1062_v61, %v1061_v36  ;;  %vm1075_vm6 = vcmp.lt.s32.totalorder %v3288_v43, 3 }
 0x160   :  { %v852_v8 = vmul.f32 %v851_v0, %v849_v18  ;;  %v982_v17 = vadd.s32 1, %v978_v60  ;;  %v1066_v26 = vor.u32 %v1065_v1, %v1064_v10  ;;  %vm1231_vm7 = vcmp.lt.s32.totalorder %v3278_v11, 4 }
 0x161   :  { %v1082_v54 = vsel %vm1076_vm11, %v3405_v59, 920167782  ;;  %v858_v45 = vsel %vm3479_vm13, 0, %v856_v22  ;;  %v1087_v58 = vsel %vm1075_vm6, %v3405_v59, %v3441_v19  ;;  %vm1073_vm8 = vcmp.lt.s32.totalorder %v3288_v43, 1 }
 0x162   :  { %v853_v12 = vxor.u32 2147483648, %v852_v8  ;;  %v983_v42 = vsel %vm981_vm0, %v982_v17, %v978_v60  ;;  %v3540_v38 = vshll.u32 %v1049_v49, 8  ;;  %v3543_v56 = vor.u32 %v1223_v15, %v3397_v39 }
 0x163   :  { %v984_v50 = vadd.s32 %v983_v42, %v979_v24  ;;  %vm1074_vm2 = vcmp.lt.s32.totalorder %v3288_v43, 2  ;;  %v1085_v63 = vsel %vm1073_vm8, %v1063_v34, %v1066_v26  ;;  %v875_v59 = vadd.s32 3, %v858_v45 }
 0x164   :  { %v854_v47 = vsel %vm733_vm3, %v853_v12, %v852_v8  ;;  %v1081_v19 = vsel %vm1073_vm8, %v1060_v51, %v1063_v34  ;;  %v1088_v20 = vsel %vm1074_vm2, %v1085_v63, %v1087_v58  ;;  %v1083_v22 = vsel %vm1075_vm6, %v1066_v26, %v1082_v54 }
 0x165   :  { %v3557_v39 = vsel %vm3479_vm13, %v3977_v25, %v854_v47  ;;  %v985_v31 = vadd.s32 536870912, %v984_v50  ;;  %v1092_v40 = vand.u32 65535, %v1088_v20  ;;  %v4006_v7 = vor.u32 %v4004_v35, %v4005_v28 }
 0x166   :  { %v859_v0 = vmul.f32 %v3557_v39, %v3557_v39  ;;  %v1090_v55 = vand.u32 65535, %v3540_v38  ;;  %v1093_v44 = vshrl.u32 %v1088_v20, 16  ;;  %v1057_v49 = vshrl.u32 %v3962_v53, %v3990_v46 }
 0x167   :  { %v3566_v29 = vsel %vm1231_vm7, %v4006_v7, 1326507024  ;;  %v3571_v13 = vshrl.u32 %v985_v31, 30  ;;  %v1078_v6 = vsel %vm1076_vm11, %v1066_v26, 2102212464  ;;  %v1091_v36 = vshrl.u32 %v3540_v38, 16 }
 0x168   :  { %v860_v61 = vmul.f32 -0.001358992, %v859_v0  ;;  %v867_v18 = vmul.f32 -0.00019511016, %v859_v0  ;;  %v1084_v60 = vsel %vm1074_vm2, %v1081_v19, %v1083_v22  ;;  %v1095_v10 = vmul.u32 %v1093_v44, %v1090_v55 }
 0x169   :  { %v3580_v1 = vand.u32 3, %v875_v59  ;;  %v987_v15 = vshll.u32 %v3571_v13, 30  ;;  %v1077_v24 = vsel %vm1073_vm8, %v1057_v49, %v1060_v51  ;;  %v1096_v8 = vmul.u32 %v1092_v40, %v1091_v36 }
 0x16a   :  { %v861_v46 = vadd.f32 0.041655596, %v860_v61  ;;  %v868_v17 = vadd.f32 0.008332121, %v867_v18  ;;  %v1094_v54 = vmul.u32 %v1092_v40, %v1090_v55  ;;  %v1098_v26 = vshll.u32 %v1095_v10, 16 }
 0x16b   :  { %v3585_v45 = vsub.s32 %v984_v50, %v987_v15  ;;  %v1079_v58 = vsel %vm1075_vm6, %v1063_v34, %v1078_v6  ;;  %v1114_v12 = vand.u32 65535, %v1084_v60  ;;  %v1115_v42 = vshrl.u32 %v1084_v60, 16 }
 0x16c   :  { %v862_v63 = vmul.f32 %v861_v46, %v859_v0  ;;  %v869_v47 = vmul.f32 %v868_v17, %v859_v0  ;;  %v1097_v59 = vmul.u32 %v1093_v44, %v1091_v36  ;;  %vm1102_vm11 = vc.u32 %v1094_v54, %v1098_v26 }
 0x16d   :  { %vm989_vm10 = vcmp.lt.s32.totalorder %v3585_v45, 0  ;;  %v990_v51 = vsub.s32 0, %v3585_v45  ;;  %v1100_v19 = vshll.u32 %v1096_v8, 16  ;;  %v1103_v20 = vsel %vm1102_vm11, 1, %v3965_v14 }
 0x16e   :  { %v863_v31 = vadd.f32 -0.4999988, %v862_v63  ;;  %v870_v22 = vadd.f32 -0.16666654, %v869_v47  ;;  %v1104_v50 = vadd.s32 %v1098_v26, %v1094_v54  ;;  %v1105_v40 = vadd.s32 %v1103_v20, %v1097_v59 }
 0x16f   :  { %vm878_vm1 = vcmp.eq.s32.totalorder %v3580_v1, 0  ;;  %vm881_vm3 = vcmp.eq.s32.totalorder %v3580_v1, 2  ;;  %v991_v34 = vsel %vm989_vm10, %v990_v51, %v3585_v45  ;;  %v1117_v35 = vmul.u32 %v1115_v42, %v1090_v55 }
 0x170   :  { %v3595_v28 = vmul.u32 %v1114_v12, %v1091_v36  ;;  %v864_v7 = vmul.f32 %v863_v31, %v859_v0  ;;  %v871_v44 = vmul.f32 %v870_v22, %v859_v0  ;;  %vm877_vm9 = vcmp.lt.s32.totalorder %v3580_v1, 2 }
 0x171   :  { %v992_v49 = vclz %v991_v34  ;;  %vm1106_vm12 = vc.u32 %v1104_v50, %v1100_v19  ;;  %vm874_vm13 = vweird.f32 %v3977_v25  ;;  %v3601_v6 = vsel %vm1074_vm2, %v1077_v24, %v1079_v58  ;;  %v4007_v58 = vld [vmem:[#allocation14_spill] sm:$0xff]  ;;  %v1832_v25 = vld [vmem:[#allocation2 + $0x150] sm:$0xff] }
 0x172   :  { %v1099_v61 = vshrl.u32 %v1095_v10, 16  ;;  %v1101_v18 = vshrl.u32 %v1096_v8, 16  ;;  %v1107_v60 = vsel %vm1106_vm12, 1, %v3965_v14  ;;  %v865_v15 = vadd.f32 1.0, %v864_v7 }
 0x173   :  { %v872_v46 = vadd.f32 1.0, %v871_v44  ;;  %v2130_v17 = vadd.s32 4294967294, %v992_v49  ;;  %v1109_v54 = vadd.s32 %v1107_v60, %v1105_v40  ;;  %vm888_vm14 = vcmp.lt.s32.totalorder %v3987_v33, 0 }
 0x174   :  { %v1116_v0 = vmul.u32 %v1114_v12, %v1090_v55  ;;  %v1119_v26 = vmul.u32 %v1115_v42, %v1091_v36  ;;  %v1120_v63 = vshll.u32 %v1117_v35, 16  ;;  %v1122_v47 = vshll.u32 %v3595_v28, 16 }
 0x175   :  { %v873_v59 = vmul.f32 %v872_v46, %v3557_v39  ;;  %v882_v43 = vxor.u32 2147483648, %v865_v15  ;;  %vm2131_vm0 = vcmp.lt.s32.totalorder %v2130_v17, 0  ;;  %v1110_v24 = vadd.s32 %v1109_v54, %v1099_v61  ;;  %v1833_v46 = vld [vmem:[#allocation2 + $0x158] sm:$0xff] }
 0x176   :  { %v995_v10 = vsel %vm2131_vm0, 0, %v2130_v17  ;;  %vm1124_vm4 = vc.u32 %v1116_v0, %v1120_v63  ;;  %v1126_v8 = vadd.s32 %v1120_v63, %v1116_v0  ;;  %v1196_v51 = vand.u32 2147483647, %v4007_v58  ;;  %v3626_v17 = vpop.permute.xlu2 %1741  ;;  %1903 = vmatpush.msrb.mxu0 %v1833_v46 }
 0x177   :  { %v879_v19 = vxor.u32 2147483648, %v873_v59  ;;  %v883_v20 = vsel %vm881_vm3, %v882_v43, %v873_v59  ;;  %v996_v31 = vsub.s32 32, %v995_v10  ;;  %v997_v55 = vshll.u32 %v3585_v45, %v995_v10 }
 0x178   :  { %v1000_v36 = vsub.s32 4294967266, %v995_v10  ;;  %v1111_v12 = vadd.s32 %v1110_v24, %v1101_v18  ;;  %v1125_v42 = vsel %vm1124_vm4, 1, %v3965_v14  ;;  %vm1128_vm6 = vc.u32 %v1126_v8, %v1122_v47  ;;  %1904 = vmatpush.msrb.mxu0 %v1832_v25 }
 0x179   :  { %v880_v39 = vsel %vm878_vm1, %v865_v15, %v879_v19  ;;  %v998_v22 = vshrl.u32 %v3496_v41, %v996_v31  ;;  %v1127_v50 = vadd.s32 %v1125_v42, %v1119_v26  ;;  %v1129_v40 = vsel %vm1128_vm6, 1, %v3965_v14 }
 0x17a   :  { %v884_v34 = vsel %vm877_vm9, %v880_v39, %v883_v20  ;;  %v1001_v7 = vadd.s32 127, %v1000_v36  ;;  %v1010_v44 = vsub.s32 4, %v3571_v13  ;;  %v1130_v45 = vadd.s32 %v1126_v8, %v1122_v47 }
 0x17b   :  { %v885_v49 = vsel %vm874_vm13, nan, %v884_v34  ;;  %v999_v61 = vor.u32 %v998_v22, %v997_v55  ;;  %v1121_v18 = vshrl.u32 %v1117_v35, 16  ;;  %v1131_v60 = vadd.s32 %v1129_v40, %v1127_v50 }
 0x17c   :  { %2142 = vmatmul.msk.f32.gmra.mxu0 %vm1359_vm15, %v885_v49  ;;  %v1002_v15 = vshll.u32 %v1001_v7, 23  ;;  %v3622_v41 = vadd.s32 %v1130_v45, %v1111_v12  ;;  %vm1136_vm8 = vc.u32 %v1111_v12, %v1130_v45  ;;  %v1203_v1 = vand.u32 8388607, %v1196_v51 }
 0x17d   :  { %vm1760_vm2 = vcmp.eq.s32.totalorder %v3354_v5, %v2584_v3  ;;  %v1123_v54 = vshrl.u32 %v3595_v28, 16  ;;  %v1132_v35 = vadd.s32 %v1131_v60, %v1121_v18  ;;  %v1134_v0 = vmul.u32 %v3540_v38, %v3601_v6  ;;  %v1831_v38 = vld [vmem:[#allocation2 + $0x148] sm:$0xff] }
 0x17e   :  { %v1003_v26 = vor.u32 4788187, %v1002_v15  ;;  %v1006_v63 = vcvt.s32.f32 %v999_v61  ;;  %vm1765_vm11 = vcmp.eq.s32.totalorder %v3626_v17, %v2572_v16  ;;  %v2200_v47 = vsel %vm1760_vm2, 1.0, %v3961_v27  ;;  %1905 = vmatpush.msrb.mxu0 %v1831_v38 }
 0x17f   :  { %vm3638_vm10 = vcmp.le.f32.partialorder %v886_v9, 0.7853982  ;;  %v1011_v28 = vsel %vm888_vm14, %v1010_v44, %v3571_v13  ;;  %2230 = vmatmul.msk.f32.gmra.mxu3 %vm1765_vm11, %v3959_v37  ;;  %2237 = vmatmul.msk.f32.gmra.mxu1 %vm1571_vm5, %v2200_v47  ;;  %v1133_v6 = vadd.s32 %v1132_v35, %v1123_v54  ;;  %v1214_v43 = vshrl.u32 %v3964_v21, %v4003_v48 }
 0x180   :  { %v1004_v24 = vand.u32 2147483647, %v1003_v26  ;;  %v1204_v10 = vor.u32 8388608, %v1203_v1  ;;  %v1216_v9 = vshll.u32 %v3964_v21, %v3995_v57  ;;  %v1217_v8 = vshrl.u32 %v3966_v32, %v4003_v48 }
 0x181   :  { %v1137_v19 = vadd.s32 1, %v1133_v6  ;;  %v1213_v13 = vshll.u32 %v3962_v53, %v3995_v57  ;;  %v1219_v20 = vshll.u32 %v3966_v32, %v3995_v57  ;;  %v1220_v31 = vshrl.u32 %v3957_v2, %v4003_v48 }
 0x182   :  { %v1007_v55 = vmul.f32 %v1006_v63, %v1004_v24  ;;  %v1013_v36 = vsel %vm3638_vm10, 0, %v1011_v28  ;;  %v3661_v42 = vor.u32 %v1217_v8, %v1216_v9  ;;  %vm1230_vm1 = vcmp.lt.s32.totalorder %v3278_v11, 3 }
 0x183   :  { %v1138_v21 = vsel %vm1136_vm8, %v1137_v19, %v1133_v6  ;;  %v3665_v39 = vor.u32 %v1214_v43, %v1213_v13  ;;  %v3667_v22 = vor.u32 %v1220_v31, %v1219_v20  ;;  %v1242_v2 = vsel %vm1230_vm1, %v3543_v56, %v3566_v29 }
 0x184   :  { %v1237_v32 = vsel %vm1231_vm7, %v3543_v56, 920167782  ;;  %v1008_v57 = vxor.u32 2147483648, %v1007_v55  ;;  %v1139_v50 = vadd.s32 %v1138_v21, %v1134_v0  ;;  %vm1228_vm3 = vcmp.lt.s32.totalorder %v3278_v11, 1 }
 0x185   :  { %v1240_v12 = vsel %vm1228_vm3, %v3661_v42, %v3667_v22  ;;  %v3681_v40 = vshll.u32 %v1204_v10, 8  ;;  %v1030_v7 = vadd.s32 3, %v1013_v36  ;;  %vm1229_vm9 = vcmp.lt.s32.totalorder %v3278_v11, 2 }
 0x186   :  { %v1009_v34 = vsel %vm888_vm14, %v1008_v57, %v1007_v55  ;;  %v1140_v29 = vadd.s32 536870912, %v1139_v50  ;;  %v1236_v44 = vsel %vm1228_vm3, %v3665_v39, %v3661_v42  ;;  %v1238_v45 = vsel %vm1230_vm1, %v3667_v22, %v1237_v32 }
 0x187   :  { %v1012_v56 = vsel %vm3638_vm10, %v3987_v33, %v1009_v34  ;;  %v1243_v49 = vsel %vm1229_vm9, %v1240_v12, %v1242_v2  ;;  %v1245_v1 = vand.u32 65535, %v3681_v40  ;;  %v1246_v46 = vshrl.u32 %v3681_v40, 16 }
 0x188   :  { %v1014_v61 = vmul.f32 %v1012_v56, %v1012_v56  ;;  %v3698_v18 = vshrl.u32 %v1140_v29, 30  ;;  %v1247_v60 = vand.u32 65535, %v1243_v49  ;;  %v1248_v15 = vshrl.u32 %v1243_v49, 16 }
 0x189   :  { %v1239_v0 = vsel %vm1229_vm9, %v1236_v44, %v1238_v45  ;;  %v3707_v28 = vand.u32 3, %v1030_v7  ;;  %vm1029_vm6 = vweird.f32 %v3987_v33  ;;  %v1212_v44 = vshrl.u32 %v3962_v53, %v4003_v48 }
 0x18a   :  { %v1015_v25 = vmul.f32 -0.001358992, %v1014_v61  ;;  %v1022_v54 = vmul.f32 -0.00019511016, %v1014_v61  ;;  %v1142_v35 = vshll.u32 %v3698_v18, 30  ;;  %v1250_v26 = vmul.u32 %v1248_v15, %v1245_v1 }
 0x18b   :  { %v3705_v63 = vmul.u32 %v1247_v60, %v1246_v46  ;;  %v1249_v6 = vmul.u32 %v1247_v60, %v1245_v1  ;;  %v1269_v24 = vand.u32 65535, %v1239_v0  ;;  %v1270_v10 = vshrl.u32 %v1239_v0, 16 }
 0x18c   :  { %v1016_v47 = vadd.f32 0.041655596, %v1015_v25  ;;  %v1023_v59 = vadd.f32 0.008332121, %v1022_v54  ;;  %v1143_v38 = vsub.s32 %v1139_v50, %v1142_v35  ;;  %v1253_v43 = vshll.u32 %v1250_v26, 16 }
 0x18d   :  { %v1252_v13 = vmul.u32 %v1248_v15, %v1246_v46  ;;  %v1255_v20 = vshll.u32 %v3705_v63, 16  ;;  %vm1033_vm14 = vcmp.eq.s32.totalorder %v3707_v28, 0  ;;  %vm1032_vm4 = vcmp.lt.s32.totalorder %v3707_v28, 2 }
 0x18e   :  { %v1017_v9 = vmul.f32 %v1016_v47, %v1014_v61  ;;  %v1024_v8 = vmul.f32 %v1023_v59, %v1014_v61  ;;  %vm1144_vm12 = vcmp.lt.s32.totalorder %v1143_v38, 0  ;;  %v1145_v19 = vsub.s32 0, %v1143_v38 }
 0x18f   :  { %vm1257_vm13 = vc.u32 %v1249_v6, %v1253_v43  ;;  %v1259_v31 = vadd.s32 %v1253_v43, %v1249_v6  ;;  %v1272_v7 = vmul.u32 %v1270_v10, %v1245_v1  ;;  %vm1036_vm8 = vcmp.eq.s32.totalorder %v3707_v28, 2 }
 0x190   :  { %v1018_v55 = vadd.f32 -0.4999988, %v1017_v9  ;;  %v1025_v36 = vadd.f32 -0.16666654, %v1024_v8  ;;  %v1146_v21 = vsel %vm1144_vm12, %v1145_v19, %v1143_v38  ;;  %v1258_v2 = vsel %vm1257_vm13, 1, %v3965_v14 }
 0x191   :  { %v1147_v32 = vclz %v1146_v21  ;;  %v1260_v57 = vadd.s32 %v1258_v2, %v1252_v13  ;;  %vm1261_vm0 = vc.u32 %v1259_v31, %v1255_v20  ;;  %v1273_v45 = vmul.u32 %v1269_v24, %v1246_v46  ;;  %v1830_v21 = vld [vmem:[#allocation2 + $0x140] sm:$0xff] }
 0x192   :  { %v1019_v50 = vmul.f32 %v1018_v55, %v1014_v61  ;;  %v1026_v12 = vmul.f32 %v1025_v36, %v1014_v61  ;;  %v1262_v34 = vsel %vm1261_vm0, 1, %v3965_v14  ;;  %v1254_v15 = vshrl.u32 %v1250_v26, 16  ;;  %v3721_v26 = vpop.permute.xlu1 %1744  ;;  %1906 = vmatpush.msrb.mxu0 %v1830_v21 }
 0x193   :  { %v2133_v29 = vadd.s32 4294967294, %v1147_v32  ;;  %v1264_v25 = vadd.s32 %v1262_v34, %v1260_v57  ;;  %v1256_v61 = vshrl.u32 %v3705_v63, 16  ;;  %v1271_v54 = vmul.u32 %v1269_v24, %v1245_v1 }
 0x194   :  { %v1020_v49 = vadd.f32 1.0, %v1019_v50  ;;  %v1027_v60 = vadd.f32 1.0, %v1026_v12  ;;  %v1275_v35 = vshll.u32 %v1272_v7, 16  ;;  %v1274_v8 = vmul.u32 %v1270_v10, %v1246_v46 }
 0x195   :  { %vm2134_vm2 = vcmp.lt.s32.totalorder %v2133_v29, 0  ;;  %v1265_v6 = vadd.s32 %v1264_v25, %v1254_v15  ;;  %v1277_v19 = vshll.u32 %v1273_v45, 16  ;;  %v1233_v46 = vsel %vm1231_vm7, %v3667_v22, 2102212464 }
 0x196   :  { %v1028_v0 = vmul.f32 %v1027_v60, %v1012_v56  ;;  %v1037_v47 = vxor.u32 2147483648, %v1020_v49  ;;  %v1150_v59 = vsel %vm2134_vm2, 0, %v2133_v29  ;;  %vm1279_vm11 = vc.u32 %v1271_v54, %v1275_v35 }
 0x197   :  { %v1151_v43 = vsub.s32 32, %v1150_v59  ;;  %v1155_v9 = vsub.s32 4294967266, %v1150_v59  ;;  %v1152_v48 = vshll.u32 %v1143_v38, %v1150_v59  ;;  %v1280_v56 = vsel %vm1279_vm11, 1, %v3965_v14 }
 0x198   :  { %v1034_v13 = vxor.u32 2147483648, %v1028_v0  ;;  %v1038_v53 = vsel %vm1036_vm8, %v1037_v47, %v1028_v0  ;;  %v1281_v24 = vadd.s32 %v1275_v35, %v1271_v54  ;;  %v1266_v10 = vadd.s32 %v1265_v6, %v1256_v61 }
 0x199   :  { %v1153_v63 = vshrl.u32 %v3622_v41, %v1151_v43  ;;  %v1156_v1 = vadd.s32 127, %v1155_v9  ;;  %v1282_v31 = vadd.s32 %v1280_v56, %v1274_v8  ;;  %vm1768_vm12 = vcmp.eq.s32.totalorder %v3721_v26, %v2572_v16 }
 0x19a   :  { %v1035_v20 = vsel %vm1033_vm14, %v1020_v49, %v1034_v13  ;;  %vm1283_vm10 = vc.u32 %v1281_v24, %v1277_v19  ;;  %vm1763_vm13 = vcmp.eq.s32.totalorder %v3490_v62, %v2584_v3  ;;  %2231 = vmatmul.msk.f32.gmra.mxu3 %vm1768_vm12, %v3959_v37  ;;  %v1285_v32 = vadd.s32 %v1281_v24, %v1277_v19 }
 0x19b   :  { %v1039_v38 = vsel %vm1032_vm4, %v1035_v20, %v1038_v53  ;;  %v1154_v55 = vor.u32 %v1153_v63, %v1152_v48  ;;  %v1157_v36 = vshll.u32 %v1156_v1, 23  ;;  %v1284_v22 = vsel %vm1283_vm10, 1, %v3965_v14 }
 0x19c   :  { %v1040_v41 = vsel %vm1029_vm6, nan, %v1039_v38  ;;  %v2203_v28 = vsel %vm1763_vm13, 1.0, %v3961_v27  ;;  %v1232_v33 = vsel %vm1228_vm3, %v1212_v44, %v3665_v39  ;;  %v1234_v57 = vsel %vm1230_vm1, %v3661_v42, %v1233_v46  ;;  %v3782_v42 = vpop.permute.xlu0 %1750 }
 0x19d   :  { %2143 = vmatmul.msk.f32.gmra.mxu0 %vm1359_vm15, %v1040_v41  ;;  %v1158_v2 = vor.u32 4788187, %v1157_v36  ;;  %2238 = vmatmul.msk.f32.gmra.mxu1 %vm1571_vm5, %v2203_v28  ;;  %v1276_v14 = vshrl.u32 %v1272_v7, 16  ;;  %v1286_v50 = vadd.s32 %v1284_v22, %v1282_v31  ;;  %v1161_v34 = vcvt.s32.f32 %v1154_v55 }
 0x19e   :  { %v1290_v29 = vadd.s32 %v1285_v32, %v1266_v10  ;;  %vm1291_vm7 = vc.u32 %v1266_v10, %v1285_v32  ;;  %v1278_v49 = vshrl.u32 %v1273_v45, 16  ;;  %v1235_v25 = vsel %vm1229_vm9, %v1232_v33, %v1234_v57 }
 0x19f   :  { %v1159_v12 = vand.u32 2147483647, %v1158_v2  ;;  %v1287_v60 = vadd.s32 %v1286_v50, %v1276_v14  ;;  %vm1043_vm3 = vcmp.lt.s32.totalorder %v4000_v30, 0  ;;  %v1165_v39 = vsub.s32 4, %v3698_v18 }
 0x1a0   :  { %vm3755_vm1 = vcmp.le.f32.partialorder %v1041_v23, 0.7853982  ;;  %v1289_v45 = vmul.u32 %v3681_v40, %v1235_v25  ;;  %vm1184_vm8 = vweird.f32 %v4000_v30  ;;  %vm1766_vm2 = vcmp.eq.s32.totalorder %v3626_v17, %v2584_v3 }
 0x1a1   :  { %v1162_v15 = vmul.f32 %v1161_v34, %v1159_v12  ;;  %v1288_v61 = vadd.s32 %v1287_v60, %v1278_v49  ;;  %v1166_v59 = vsel %vm1043_vm3, %v1165_v39, %v3698_v18  ;;  %vm1775_vm12 = vcmp.eq.s32.totalorder %v3782_v42, %v2584_v3 }
 0x1a2   :  { %v1168_v23 = vsel %vm3755_vm1, 0, %v1166_v59  ;;  %vm1198_vm13 = vcmp.lt.s32.totalorder %v4007_v58, 0 }
 0x1a3   :  { %v1163_v54 = vxor.u32 2147483648, %v1162_v15  ;;  %v1292_v44 = vadd.s32 1, %v1288_v61  ;;  %v1185_v63 = vadd.s32 3, %v1168_v23 }
 0x1a5   :  { %v1164_v7 = vsel %vm1043_vm3, %v1163_v54, %v1162_v15  ;;  %v1293_v35 = vsel %vm1291_vm7, %v1292_v44, %v1288_v61  ;;  %v1186_v10 = vand.u32 3, %v1185_v63  ;;  %v1829_v61 = vld [vmem:[#allocation2 + $0x138] sm:$0xff]  ;;  %v3771_v54 = vpop.permute.xlu2 %1747  ;;  %v2206_v44 = vsel %vm1766_vm2, 1.0, %v3961_v27 }
 0x1a6   :  { %v1167_v11 = vsel %vm3755_vm1, %v4000_v30, %v1164_v7  ;;  %v1294_v47 = vadd.s32 %v1293_v35, %v1289_v45  ;;  %1907 = vmatpush.msrb.mxu0 %v1829_v61  ;;  %vm1772_vm11 = vcmp.eq.s32.totalorder %v3771_v54, %v2584_v3  ;;  %vm1771_vm10 = vcmp.eq.s32.totalorder %v3771_v54, %v2572_v16  ;;  %v1828_v30 = vld [vmem:[#allocation2 + $0x130] sm:$0xff] }
 0x1a7   :  { %v1169_v0 = vmul.f32 %v1167_v11, %v1167_v11  ;;  %vm1191_vm14 = vcmp.eq.s32.totalorder %v1186_v10, 2  ;;  %vm1188_vm0 = vcmp.eq.s32.totalorder %v1186_v10, 0  ;;  %vm1187_vm6 = vcmp.lt.s32.totalorder %v1186_v10, 2  ;;  %2232 = vmatmul.msk.f32.gmra.mxu3 %vm1771_vm10, %v3959_v37  ;;  %2239 = vmatmul.msk.f32.gmra.mxu1 %vm1571_vm5, %v2206_v44 }
 0x1a8   :  { %v1295_v9 = vadd.s32 536870912, %v1294_v47  ;;  %1908 = vmatpush.msrb.mxu0 %v1828_v30  ;;  %vm1774_vm7 = vcmp.eq.s32.totalorder %v3782_v42, %v2572_v16  ;;  %vm3795_vm3 = vcmp.le.f32.partialorder %v1196_v51, 0.7853982  ;;  %vm1758_vm2 = vcmp.eq.s32.totalorder %v3354_v5, %v2538_v52  ;;  %v1401_v5 = vpop.f32.mrf.mxu0 }
 0x1a9   :  { %v1170_v6 = vmul.f32 -0.001358992, %v1169_v0  ;;  %v1177_v43 = vmul.f32 -0.00019511016, %v1169_v0  ;;  %vm1764_vm10 = vcmp.eq.s32.totalorder %v3626_v17, %v2538_v52 }
 0x1aa   :  { %v3766_v13 = vshrl.u32 %v1295_v9, 30  ;;  %v3803_v9 = vpop.permute.xlu1 %1753 }
 0x1ab   :  { %v1171_v8 = vadd.f32 0.041655596, %v1170_v6  ;;  %v1178_v19 = vadd.f32 0.008332121, %v1177_v43  ;;  %vm1778_vm1 = vcmp.eq.s32.totalorder %v3803_v9, %v2584_v3 }
 0x1ac   :  { %v1297_v48 = vshll.u32 %v3766_v13, 30  ;;  %v2218_v63 = vsel %vm1778_vm1, 1.0, %v3961_v27 }
 0x1ad   :  { %v1172_v40 = vmul.f32 %v1171_v8, %v1169_v0  ;;  %v1179_v53 = vmul.f32 %v1178_v19, %v1169_v0 }
 0x1ae   :  { %v1298_v24 = vsub.s32 %v1294_v47, %v1297_v48  ;;  %v2215_v47 = vsel %vm1775_vm12, 1.0, %v3961_v27  ;;  %vm1767_vm12 = vcmp.eq.s32.totalorder %v3721_v26, %v2538_v52 }
 0x1af   :  { %v1173_v1 = vadd.f32 -0.4999988, %v1172_v40  ;;  %v1180_v56 = vadd.f32 -0.16666654, %v1179_v53  ;;  %2233 = vmatmul.msk.f32.gmra.mxu3 %vm1774_vm7, %v3959_v37  ;;  %vm1773_vm7 = vcmp.eq.s32.totalorder %v3782_v42, %v2538_v52 }
 0x1b0   :  { %vm1299_vm9 = vcmp.lt.s32.totalorder %v1298_v24, 0  ;;  %v1300_v46 = vsub.s32 0, %v1298_v24  ;;  %v1404_v17 = vpop.f32.mrf.mxu0 }
 0x1b1   :  { %v1174_v20 = vmul.f32 %v1173_v1, %v1169_v0  ;;  %v1181_v18 = vmul.f32 %v1180_v56, %v1169_v0  ;;  %v1320_v0 = vsub.s32 4, %v3766_v13 }
 0x1b2   :  { %v1301_v55 = vsel %vm1299_vm9, %v1300_v46, %v1298_v24  ;;  %vm1777_vm9 = vcmp.eq.s32.totalorder %v3803_v9, %v2572_v16 }
 0x1b3   :  { %v1175_v31 = vadd.f32 1.0, %v1174_v20  ;;  %v1182_v38 = vadd.f32 1.0, %v1181_v18  ;;  %v1302_v36 = vclz %v1301_v55  ;;  %v1321_v8 = vsel %vm1198_vm13, %v1320_v0, %v3766_v13 }
 0x1b4   :  { %v1323_v51 = vsel %vm3795_vm3, 0, %v1321_v8 }
 0x1b5   :  { %v1183_v41 = vmul.f32 %v1182_v38, %v1167_v11  ;;  %v1192_v21 = vxor.u32 2147483648, %v1175_v31  ;;  %v2136_v22 = vadd.s32 4294967294, %v1302_v36 }
 0x1b7   :  { %v1189_v2 = vxor.u32 2147483648, %v1183_v41  ;;  %v1193_v28 = vsel %vm1191_vm14, %v1192_v21, %v1183_v41  ;;  %vm2137_vm4 = vcmp.lt.s32.totalorder %v2136_v22, 0  ;;  %vm1769_vm14 = vcmp.eq.s32.totalorder %v3721_v26, %v2584_v3  ;;  %2234 = vmatmul.msk.f32.gmra.mxu3 %vm1777_vm9, %v3959_v37 }
 0x1b8   :  { %v1305_v33 = vsel %vm2137_vm4, 0, %v2136_v22  ;;  %v2209_v56 = vsel %vm1769_vm14, 1.0, %v3961_v27 }
 0x1b9   :  { %v1190_v32 = vsel %vm1188_vm0, %v1175_v31, %v1189_v2  ;;  %v1306_v14 = vsub.s32 32, %v1305_v33  ;;  %v1310_v50 = vsub.s32 4294967266, %v1305_v33  ;;  %v1307_v34 = vshll.u32 %v1298_v24, %v1305_v33  ;;  %2240 = vmatmul.msk.f32.gmra.mxu1 %vm1571_vm5, %v2209_v56  ;;  %v1617_v2 = vpop.f32.mrf.mxu1 }
 0x1ba   :  { %v1194_v57 = vsel %vm1187_vm6, %v1190_v32, %v1193_v28  ;;  %v1340_v24 = vadd.s32 3, %v1323_v51  ;;  %v1658_v28 = vpop.f32.mrf.mxu2  ;;  %v1699_v32 = vpop.f32.mrf.mxu3 }
 0x1bb   :  { %v1195_v12 = vsel %vm1184_vm8, nan, %v1194_v57  ;;  %v1308_v49 = vshrl.u32 %v1290_v29, %v1306_v14  ;;  %v1311_v60 = vadd.s32 127, %v1310_v50  ;;  %v2212_v29 = vsel %vm1772_vm11, 1.0, %v3961_v27 }
 0x1bc   :  { %2144 = vmatmul.msk.f32.gmra.mxu0 %vm1359_vm15, %v1195_v12  ;;  %2241 = vmatmul.msk.f32.vlgmr.msrb.gmra.mxu2 %vm1571_vm5, %v2212_v29  ;;  %v1341_v10 = vand.u32 3, %v1340_v24  ;;  %vm1339_vm8 = vweird.f32 %v4007_v58  ;;  %vm1761_vm11 = vcmp.eq.s32.totalorder %v3490_v62, %v2538_v52  ;;  %v1659_v57 = vadd.f32 %v1658_v28, %v1617_v2 }
 0x1bd   :  { %v1309_v15 = vor.u32 %v1308_v49, %v1307_v34  ;;  %v1312_v25 = vshll.u32 %v1311_v60, 23 }
 0x1be   :  { %vm1346_vm0 = vcmp.eq.s32.totalorder %v1341_v10, 2  ;;  %vm1343_vm4 = vcmp.eq.s32.totalorder %v1341_v10, 0  ;;  %vm1342_vm6 = vcmp.lt.s32.totalorder %v1341_v10, 2  ;;  %v1700_v50 = vadd.f32 %v1699_v32, %v1659_v57 }
 0x1bf   :  { %v1313_v39 = vor.u32 4788187, %v1312_v25  ;;  %v1316_v45 = vcvt.s32.f32 %v1309_v15 }
 0x1c1   :  { %v1314_v7 = vand.u32 2147483647, %v1313_v39 }
 0x1c2   :  { %v1661_v33 = vpop.f32.mrf.mxu2  ;;  %v1702_v14 = vpop.f32.mrf.mxu3 }
 0x1c3   :  { %v1317_v11 = vmul.f32 %v1316_v45, %v1314_v7  ;;  %v1407_v7 = vpop.f32.mrf.mxu0 }
 0x1c4   :  { %2242 = vmatmul.msk.f32.gmra.mxu2 %vm1571_vm5, %v2215_v47 }
 0x1c5   :  { %v1318_v35 = vxor.u32 2147483648, %v1317_v11 }
 0x1c7   :  { %v1319_v6 = vsel %vm1198_vm13, %v1318_v35, %v1317_v11  ;;  %vm1770_vm13 = vcmp.eq.s32.totalorder %v3771_v54, %v2538_v52 }
 0x1c8   :  { %v1322_v43 = vsel %vm3795_vm3, %v4007_v58, %v1319_v6  ;;  %v1620_v58 = vpop.f32.mrf.mxu1  ;;  %vm1776_vm3 = vcmp.eq.s32.totalorder %v3803_v9, %v2538_v52 }
 0x1c9   :  { %v1324_v23 = vmul.f32 %v1322_v43, %v1322_v43  ;;  %v1662_v60 = vadd.f32 %v1661_v33, %v1620_v58 }
 0x1ca   :  { %v1664_v62 = vpop.f32.mrf.mxu2  ;;  %v1705_v15 = vpop.f32.mrf.mxu3 }
 0x1cb   :  { %v1325_v19 = vmul.f32 -0.001358992, %v1324_v23  ;;  %v1332_v40 = vmul.f32 -0.00019511016, %v1324_v23  ;;  %v1703_v25 = vadd.f32 %v1702_v14, %v1662_v60 }
 0x1cc   :  { %2243 = vmatmul.msk.f32.gmra.mxu2 %vm1571_vm5, %v2218_v63  ;;  %vm1755_vm5 = vcmp.eq.s32.totalorder %v3236_v4, %v2538_v52  ;;  %v2315_v4 = vld [vmem:[%s3877_s5] ss:$0 sm:$0xff] }
 0x1cd   :  { %v1326_v53 = vadd.f32 0.041655596, %v1325_v19  ;;  %v1333_v48 = vadd.f32 0.008332121, %v1332_v40  ;;  %v1402_v12 = vadd.f32 %v2315_v4, %v1401_v5  ;;  %v1405_v61 = vadd.f32 %v2315_v4, %v1404_v17 }
 0x1ce   :  { %v1408_v11 = vadd.f32 %v2315_v4, %v1407_v7 }
 0x1cf   :  { %v1327_v1 = vmul.f32 %v1326_v53, %v1324_v23  ;;  %v1334_v13 = vmul.f32 %v1333_v48, %v1324_v23  ;;  %v1723_v49 = vadd.f32 %v1700_v50, %v1402_v12  ;;  %v1724_v39 = vadd.f32 %v1703_v25, %v1405_v61 }
 0x1d0   :  { %v1623_v34 = vpop.f32.mrf.mxu1 }
 0x1d1   :  { %v1328_v20 = vadd.f32 -0.4999988, %v1327_v1  ;;  %v1335_v18 = vadd.f32 -0.16666654, %v1334_v13  ;;  %v1665_v30 = vadd.f32 %v1664_v62, %v1623_v34 }
 0x1d2   :  { %v1667_v44 = vpop.f32.mrf.mxu2  ;;  %v1708_v35 = vpop.f32.mrf.mxu3 }
 0x1d3   :  { %v1329_v46 = vmul.f32 %v1328_v20, %v1324_v23  ;;  %v1336_v16 = vmul.f32 %v1335_v18, %v1324_v23  ;;  %v1706_v45 = vadd.f32 %v1705_v15, %v1665_v30 }
 0x1d5   :  { %v1330_v31 = vadd.f32 1.0, %v1329_v46  ;;  %v1337_v3 = vadd.f32 1.0, %v1336_v16  ;;  %v1725_v26 = vadd.f32 %v1706_v45, %v1408_v11 }
 0x1d6   :  { %v1410_v6 = vpop.f32.mrf.mxu0 }
 0x1d7   :  { %v1338_v38 = vmul.f32 %v1337_v3, %v1322_v43  ;;  %v1347_v55 = vxor.u32 2147483648, %v1330_v31  ;;  %v1411_v23 = vadd.f32 %v2315_v4, %v1410_v6 }
 0x1d8   :  { %v1626_v29 = vpop.f32.mrf.mxu1 }
 0x1d9   :  { %v1344_v36 = vxor.u32 2147483648, %v1338_v38  ;;  %v1348_v41 = vsel %vm1346_vm0, %v1347_v55, %v1338_v38  ;;  %v1668_v0 = vadd.f32 %v1667_v44, %v1626_v29 }
 0x1da   :  { %v1670_v59 = vpop.f32.mrf.mxu2  ;;  %v1711_v54 = vpop.f32.mrf.mxu3 }
 0x1db   :  { %v1345_v27 = vsel %vm1343_vm4, %v1330_v31, %v1344_v36  ;;  %v1709_v43 = vadd.f32 %v1708_v35, %v1668_v0 }
 0x1dc   :  { %v1349_v21 = vsel %vm1342_vm6, %v1345_v27, %v1348_v41 }
 0x1dd   :  { %v1350_v22 = vsel %vm1339_vm8, nan, %v1349_v21  ;;  %v1726_v8 = vadd.f32 %v1709_v43, %v1411_v23 }
 0x1de   :  { %2145 = vmatmul.msk.f32.gmra.mxu0 %vm1359_vm15, %v1350_v22 }
 0x1e0   :  { %v1629_v47 = vpop.f32.mrf.mxu1 }
 0x1e1   :  { %v1671_v19 = vadd.f32 %v1670_v59, %v1629_v47 }
 0x1e2   :  { %v1673_v63 = vpop.f32.mrf.mxu2  ;;  %v1714_v1 = vpop.f32.mrf.mxu3 }
 0x1e3   :  { %v1712_v51 = vadd.f32 %v1711_v54, %v1671_v19 }
 0x1e6   :  { %2219 = vmatmul.msk.f32.vlgmr.msrb.gmra.mxu0 %vm1755_vm5, %v3959_v37 }
 0x1e8   :  { %v1632_v48 = vpop.f32.mrf.mxu1 }
 0x1ea   :  { %v1676_v24 = vpop.f32.mrf.mxu2  ;;  %v1717_v20 = vpop.f32.mrf.mxu3 }
 0x1ee   :  { %2220 = vmatmul.msk.f32.gmra.mxu0 %vm1758_vm2, %v3959_v37 }
 0x1f0   :  { %v1635_v56 = vpop.f32.mrf.mxu1 }
 0x1f2   :  { %v1720_v46 = vpop.f32.mrf.mxu3  ;;  %v1679_v10 = vpop.f32.mrf.mxu2 }
 0x1f6   :  { %2221 = vmatmul.msk.f32.gmra.mxu0 %vm1761_vm11, %v3959_v37 }
 0x1f8   :  { %v1638_v16 = vpop.f32.mrf.mxu1 }
 0x1f9   :  { %v1413_v40 = vpop.f32.mrf.mxu0 }
 0x1fa   :  { %v1414_v53 = vadd.f32 %v2315_v4, %v1413_v40  ;;  %v1951_v31 = vpop.f32.mrf.mxu3 }
 0x1fc   :  { %v3849_v42 = vadd.f32 %v1712_v51, %v1414_v53 }
 0x1fe   :  { %2222 = vmatmul.msk.f32.gmra.mxu0 %vm1764_vm10, %v3959_v37 }
 0x200   :  { %v1992_v9 = vpop.f32.mrf.mxu1 }
 0x206   :  { %2223 = vmatmul.msk.f32.gmra.mxu0 %vm1767_vm12, %v3959_v37 }
 0x208   :  { %v1995_v36 = vpop.f32.mrf.mxu1 }
 0x20e   :  { %2224 = vmatmul.msk.f32.gmra.mxu0 %vm1770_vm13, %v3959_v37 }
 0x216   :  { %2225 = vmatmul.msk.f32.gmra.mxu0 %vm1773_vm7, %v3959_v37 }
 0x21a   :  { %v1416_v13 = vpop.f32.mrf.mxu0  ;;  %v1998_v33 = vpop.f32.mrf.mxu1 }
 0x21e   :  { %2226 = vmatmul.msk.f32.gmra.mxu0 %vm1776_vm3, %v3959_v37  ;;  %v1954_v37 = vpop.f32.mrf.mxu3 }
 0x224   :  { %v2001_v61 = vpop.f32.mrf.mxu1 }
 0x226   :  { %v1957_v27 = vpop.f32.mrf.mxu3 }
 0x22e   :  { %v1960_v14 = vpop.f32.mrf.mxu3 }
 0x236   :  { %v1963_v25 = vpop.f32.mrf.mxu3 }
 0x239   :  { %v1419_v18 = vpop.f32.mrf.mxu0 }
 0x23e   :  { %v1966_v47 = vpop.f32.mrf.mxu3 }
 0x23f   :  { %v2007_v6 = vpop.f32.mrf.mxu2 }
 0x246   :  { %v1969_v19 = vpop.f32.mrf.mxu3 }
 0x247   :  { %v2010_v40 = vpop.f32.mrf.mxu2 }
 0x24e   :  { %v1972_v48 = vpop.f32.mrf.mxu3 }
 0x25b   :  { %v1422_v52 = vpop.f32.mrf.mxu0 }
 0x263   :  { %v1910_v3 = vpop.f32.mrf.mxu0 }
 0x264   :  { %v1952_v38 = vadd.f32 %v1951_v31, %v1910_v3 }
 0x266   :  { %v1993_v55 = vadd.f32 %v1992_v9, %v1952_v38 }
 0x268   :  { %v2016_v41 = vadd.f32 %v1993_v55, %v1723_v49 }
 0x26a   :  { %vm2024_vm1 = vcmp.gt.f32.partialorder %v2016_v41, 0.0  ;;  %v2032_v21 = vmul.f32 0.01, %v2016_v41 }
 0x26b   :  { %v1913_v22 = vpop.f32.mrf.mxu0 }
 0x26c   :  { %v2040_v2 = vsel %vm2024_vm1, %v2016_v41, %v2032_v21  ;;  %v1955_v28 = vadd.f32 %v1954_v37, %v1913_v22 }
 0x26d   :  { %2048 = vst.msk [vmem:[#allocation4] sm:$0xff] %vm1359_vm15, %v2040_v2 }
 0x26e   :  { %v1996_v32 = vadd.f32 %v1995_v36, %v1955_v28 }
 0x270   :  { %v2017_v58 = vadd.f32 %v1996_v32, %v1724_v39 }
 0x272   :  { %vm2025_vm9 = vcmp.gt.f32.partialorder %v2017_v58, 0.0  ;;  %v2033_v57 = vmul.f32 0.01, %v2017_v58 }
 0x273   :  { %v1916_v4 = vpop.f32.mrf.mxu0 }
 0x274   :  { %v2094_v5 = vld [vmem:[#allocation4] sm:$0xff]  ;;  %v2041_v50 = vsel %vm2025_vm9, %v2017_v58, %v2033_v57  ;;  %v1958_v12 = vadd.f32 %v1957_v27, %v1916_v4 }
 0x275   :  { %2095 = vst [vmem:[%s3878_s6] sm:$0xff] %v2094_v5 }
 0x276   :  { %2049 = vst.msk [vmem:[#allocation4 + $0x8] sm:$0xff] %vm1359_vm15, %v2041_v50  ;;  %v1999_v34 = vadd.f32 %v1998_v33, %v1958_v12 }
 0x278   :  { %v2018_v62 = vadd.f32 %v1999_v34, %v1725_v26  ;;  %v2004_v26 = vpop.f32.mrf.mxu1 }
 0x27a   :  { %vm2026_vm14 = vcmp.gt.f32.partialorder %v2018_v62, 0.0  ;;  %v2034_v49 = vmul.f32 0.01, %v2018_v62 }
 0x27b   :  { %v1919_v60 = vpop.f32.mrf.mxu0 }
 0x27c   :  { %v2042_v15 = vsel %vm2026_vm14, %v2018_v62, %v2034_v49  ;;  %v1961_v17 = vadd.f32 %v1960_v14, %v1919_v60 }
 0x27d   :  { %v2096_v39 = vld [vmem:[#allocation4 + $0x8] sm:$0xff]  ;;  %2050 = vst.msk [vmem:[#allocation4 + $0x10] sm:$0xff] %vm1359_vm15, %v2042_v15 }
 0x27e   :  { %2097 = vst [vmem:[%s3878_s6 + $0x8] sm:$0xff] %v2096_v39  ;;  %v2002_v30 = vadd.f32 %v2001_v61, %v1961_v17 }
 0x280   :  { %v2019_v29 = vadd.f32 %v2002_v30, %v1726_v8 }
 0x282   :  { %vm2027_vm0 = vcmp.gt.f32.partialorder %v2019_v29, 0.0  ;;  %v2035_v44 = vmul.f32 0.01, %v2019_v29 }
 0x283   :  { %v1922_v7 = vpop.f32.mrf.mxu0 }
 0x284   :  { %v2098_v45 = vld [vmem:[#allocation4 + $0x10] sm:$0xff]  ;;  %v2043_v11 = vsel %vm2027_vm0, %v2019_v29, %v2035_v44  ;;  %v1964_v35 = vadd.f32 %v1963_v25, %v1922_v7 }
 0x285   :  { %2099 = vst [vmem:[%s3878_s6 + $0x10] sm:$0xff] %v2098_v45 }
 0x286   :  { %2051 = vst.msk [vmem:[#allocation4 + $0x18] sm:$0xff] %vm1359_vm15, %v2043_v11  ;;  %v2005_v0 = vadd.f32 %v2004_v26, %v1964_v35 }
 0x288   :  { %v2020_v59 = vadd.f32 %v2005_v0, %v3849_v42  ;;  %v2013_v42 = vpop.f32.mrf.mxu2 }
 0x28a   :  { %vm2028_vm4 = vcmp.gt.f32.partialorder %v2020_v59, 0.0  ;;  %v2036_v43 = vmul.f32 0.01, %v2020_v59 }
 0x28b   :  { %v1925_v23 = vpop.f32.mrf.mxu0 }
 0x28c   :  { %v2044_v8 = vsel %vm2028_vm4, %v2020_v59, %v2036_v43 }
 0x28d   :  { %v2100_v54 = vld [vmem:[#allocation4 + $0x18] sm:$0xff]  ;;  %2052 = vst.msk [vmem:[#allocation4 + $0x20] sm:$0xff] %vm1359_vm15, %v2044_v8 }
 0x28e   :  { %2101 = vst [vmem:[%s3878_s6 + $0x18] sm:$0xff] %v2100_v54 }
 0x293   :  { %v1928_v51 = vpop.f32.mrf.mxu0 }
 0x294   :  { %v2102_v53 = vld [vmem:[#allocation4 + $0x20] sm:$0xff] }
 0x295   :  { %2103 = vst [vmem:[%s3878_s6 + $0x20] sm:$0xff] %v2102_v53 }
 0x29b   :  { %v1931_v63 = vpop.f32.mrf.mxu0 }
 0x29c   :  { %2109 = vsyncpa [#allocation3], 1 }

</bundles_post_ra>
